<compile_context>
chip_gen: v6e
topology: v6e:2x2x1
jax: 0.10.0
libtpu: 0.0.40
codegen_flags: <defaults>
</compile_context>

<pallas_src>
import functools

import jax
import jax.numpy as jnp
from jax.experimental import pallas as pl
from jax.experimental.pallas import tpu as pltpu

LANE = 128
SUBLANE = 8

_VMEM = pl.BlockSpec(memory_space=pltpu.MemorySpace.VMEM)


def _round_up(n, m):
    return ((n + m - 1) // m) * m


# ----------------------------------------------------------------------------
# Kernel 1: fused bidirectional Elman-RNN layer (grid over direction)
# ----------------------------------------------------------------------------

def _bidir_rnn_layer_kernel(x_ref, wih_ref, whh_ref, b_ref, y_ref, hT_ref,
                            pre_ref):
    """One encoder layer, both directions via grid=(2,).

    x_ref:   (T*B, Din) bf16  time-major flattened input (shared by both dirs)
    wih_ref: (1, Din, H) bf16 this direction's input->hidden weight
    whh_ref: (1, H, H)   bf16 this direction's hidden->hidden weight
    b_ref:   (1, 1, H)   f32  b_ih + b_hh
    y_ref:   (T*B, H)    bf16 this direction's half of the (T*B, 2H) output
    hT_ref:  (1, B, H)   f32  this direction's final hidden
    pre_ref: (T*B, H)    f32  VMEM scratch: hoisted input projection
    """
    direction = pl.program_id(0)
    TB = x_ref.shape[0]
    B = hT_ref.shape[1]
    H = hT_ref.shape[2]
    T = TB // B

    # Hoist weight loads out of the loop.
    wih = wih_ref[0]
    whh = whh_ref[0]
    b = b_ref[0]

    # Hoisted input projection: one big MXU matmul for all timesteps, staged
    # in an f32 scratch so the recurrence adds it at full precision.
    pre_ref[...] = jnp.dot(x_ref[...], wih,
                           preferred_element_type=jnp.float32) + b

    def body(t, h):
        t_eff = jnp.where(direction == 0, t, T - 1 - t)   # in-kernel reverse
        row = pl.multiple_of(t_eff * B, B)
        h_new = jnp.tanh(
            pre_ref[pl.ds(row, B), :]
            + jnp.dot(h.astype(jnp.bfloat16), whh,
                      preferred_element_type=jnp.float32))
        y_ref[pl.ds(row, B), :] = h_new.astype(y_ref.dtype)
        return h_new

    hT = jax.lax.fori_loop(0, T, body, jnp.zeros((B, H), jnp.float32),
                           unroll=True)
    hT_ref[0] = hT


def bidir_rnn_layer(x, wih, whh, b, *, batch):
    TB, Din = x.shape
    H = whh.shape[1]
    return pl.pallas_call(
        _bidir_rnn_layer_kernel,
        grid=(2,),
        out_shape=(jax.ShapeDtypeStruct((TB, 2 * H), jnp.bfloat16),
                   jax.ShapeDtypeStruct((2, batch, H), jnp.float32)),
        in_specs=[
            pl.BlockSpec((TB, Din), lambda d: (0, 0)),
            pl.BlockSpec((1, Din, H), lambda d: (d, 0, 0)),
            pl.BlockSpec((1, H, H), lambda d: (d, 0, 0)),
            pl.BlockSpec((1, 1, H), lambda d: (d, 0, 0)),
        ],
        out_specs=(
            pl.BlockSpec((TB, H), lambda d: (0, d)),      # fwd half / bwd half
            pl.BlockSpec((1, batch, H), lambda d: (d, 0, 0)),
        ),
        scratch_shapes=[pltpu.VMEM((TB, H), jnp.float32)],
        compiler_params=pltpu.CompilerParams(
            dimension_semantics=("parallel",)),           # v7x: 1 dir per core
    )(x, wih, whh, b)


# ----------------------------------------------------------------------------
# Kernel 2: fused greedy decoder (enc_dec_fc + full max_len decode loop)
# ----------------------------------------------------------------------------

def _greedy_decoder_kernel(henc_ref, wed_ref, bed_ref, x0_ref,
                           wih_ref, whh_ref, b_ref, wfc_ref, bfc_ref, emb_ref,
                           out_ref, *, vocab):
    """Whole greedy decode in one kernel.

    henc_ref: (L, B, Henc)  combined (fwd+bwd) encoder final hiddens, f32
    wed/bed:  enc_dec_fc (or identity) in f32 (exact for the Identity case)
    x0_ref:   (B, D)        BOS embedding, bf16
    wih/whh:  (L, D, D)     decoder RNN weights (pre-transposed, padded), bf16
    b_ref:    (L, 1, D) f32 b_ih + b_hh
    wfc/bfc:  decoder_fc (bf16 / f32)
    emb_ref:  (Vp, D) bf16  decoder embedding table (padded)
    out_ref:  (max_len, B, Vp) f32 logits
    """
    num_layers = henc_ref.shape[0]
    max_len, B, V_p = out_ref.shape

    # Keep everything resident across the whole decode.
    wed, bed = wed_ref[...], bed_ref[...]
    wfc, bfc = wfc_ref[...], bfc_ref[...]
    emb = emb_ref[...]
    wih = [wih_ref[l] for l in range(num_layers)]
    whh = [whh_ref[l] for l in range(num_layers)]
    bias = [b_ref[l] for l in range(num_layers)]

    # enc_dec_fc applied to every layer's initial hidden (f32 → exact when it
    # stands in for nn.Identity via an identity matrix).
    h_init = tuple(
        jnp.dot(henc_ref[l], wed, preferred_element_type=jnp.float32) + bed
        for l in range(num_layers))

    col = jax.lax.broadcasted_iota(jnp.int32, (B, V_p), 1)
    pad_mask = jnp.where(col < vocab, 0.0, -1e30).astype(jnp.float32)

    def step(t, carry):
        x = carry[0]
        hs = list(carry[1:])
        for l in range(num_layers):
            hs[l] = jnp.tanh(
                jnp.dot(x.astype(jnp.bfloat16), wih[l],
                        preferred_element_type=jnp.float32)
                + jnp.dot(hs[l].astype(jnp.bfloat16), whh[l],
                          preferred_element_type=jnp.float32)
                + bias[l])
            x = hs[l]
        logits = jnp.dot(x.astype(jnp.bfloat16), wfc,
                         preferred_element_type=jnp.float32) + bfc
        out_ref[t] = logits

        # Greedy first-argmax over the real vocab (padding masked), expressed
        # as a one-hot so the embedding lookup becomes an MXU matmul.
        masked = logits + pad_mask
        row_max = jnp.max(masked, axis=1, keepdims=True)
        first_max = jnp.min(jnp.where(masked == row_max, col, V_p),
                            axis=1, keepdims=True)
        onehot = (col == first_max).astype(jnp.bfloat16)
        x_next = jnp.dot(onehot, emb,
                         preferred_element_type=jnp.float32).astype(jnp.bfloat16)
        return (x_next, *hs)

    jax.lax.fori_loop(0, max_len, step, (x0_ref[...],) + h_init, unroll=True)


def decode_greedy(params, h_enc, x0, max_len, dec_vocab):
    _, B, _ = h_enc.shape
    V_p = params['dec_fc']['w'].shape[1]
    kernel = functools.partial(_greedy_decoder_kernel, vocab=dec_vocab)
    return pl.pallas_call(
        kernel,
        out_shape=jax.ShapeDtypeStruct((max_len, B, V_p), jnp.float32),
        in_specs=[_VMEM] * 10,
        out_specs=_VMEM,
    )(h_enc, params['enc_dec_fc']['w'], params['enc_dec_fc']['b'], x0,
      params['dec_rnn']['wih'], params['dec_rnn']['whh'],
      params['dec_rnn']['b'],
      params['dec_fc']['w'], params['dec_fc']['b'], params['dec_emb_p'])


# ----------------------------------------------------------------------------
# Parameter init (PyTorch-like U(-1/sqrt(H), 1/sqrt(H))), padded + transposed
# ----------------------------------------------------------------------------

def _uniform(key, shape, scale):
    return jax.random.uniform(key, shape, jnp.float32, -scale, scale)


def init_params(key, enc_vocab, enc_embed, enc_H, enc_L,
                dec_vocab, dec_embed, dec_H, dec_L):
    assert enc_L == dec_L, "hidden handoff requires equal layer counts"
    keys = iter(jax.random.split(key, 64))

    E_enc_p = _round_up(enc_embed, LANE)
    H_enc_p = _round_up(enc_H, LANE)
    PD = max(_round_up(dec_embed, LANE), _round_up(dec_H, LANE))
    V_p = _round_up(dec_vocab, LANE)

    p = {}
    enc_emb = jax.random.normal(next(keys), (enc_vocab, enc_embed), jnp.float32)
    p['enc_emb_p'] = (jnp.zeros((enc_vocab, E_enc_p), jnp.float32)
                      .at[:, :enc_embed].set(enc_emb)).astype(jnp.bfloat16)
    dec_emb = jax.random.normal(next(keys), (dec_vocab, dec_embed), jnp.float32)
    p['dec_emb_p'] = (jnp.zeros((V_p, PD), jnp.float32)
                      .at[:dec_vocab, :dec_embed].set(dec_emb)
                      ).astype(jnp.bfloat16)

    # ---- encoder (bidirectional, enc_L layers) ----
    ke = enc_H ** -0.5
    enc_rnn = []
    for l in range(enc_L):
        din = enc_embed if l == 0 else 2 * enc_H
        din_p = E_enc_p if l == 0 else 2 * H_enc_p
        wihs, whhs, bs = [], [], []
        for _d in range(2):                      # fwd, bwd
            wih = _uniform(next(keys), (enc_H, din), ke)      # torch (H, Din)
            whh = _uniform(next(keys), (enc_H, enc_H), ke)
            b_ih = _uniform(next(keys), (enc_H,), ke)
            b_hh = _uniform(next(keys), (enc_H,), ke)
            wih_t = wih.T
            wih_p = jnp.zeros((din_p, H_enc_p), jnp.float32)
            if l == 0:
                wih_p = wih_p.at[:din, :enc_H].set(wih_t)
            else:
                # padded input layout of layer l>0: [fwd | 0.. | bwd | 0..]
                wih_p = wih_p.at[:enc_H, :enc_H].set(wih_t[:enc_H])
                wih_p = wih_p.at[H_enc_p:H_enc_p + enc_H, :enc_H].set(
                    wih_t[enc_H:])
            whh_p = (jnp.zeros((H_enc_p, H_enc_p), jnp.float32)
                     .at[:enc_H, :enc_H].set(whh.T))
            b_p = (jnp.zeros((1, H_enc_p), jnp.float32)
                   .at[0, :enc_H].set(b_ih + b_hh))
            wihs.append(wih_p); whhs.append(whh_p); bs.append(b_p)
        enc_rnn.append({
            'wih': jnp.stack(wihs).astype(jnp.bfloat16),   # (2, Din_p, H_p)
            'whh': jnp.stack(whhs).astype(jnp.bfloat16),   # (2, H_p, H_p)
            'b': jnp.stack(bs),                            # (2, 1, H_p) f32
        })
    p['enc_rnn'] = enc_rnn

    # ---- decoder (unidirectional, dec_L layers), stacked over layers ----
    kd = dec_H ** -0.5
    wihs, whhs, bs = [], [], []
    for l in range(dec_L):
        din = dec_embed if l == 0 else dec_H
        wih = _uniform(next(keys), (dec_H, din), kd)
        whh = _uniform(next(keys), (dec_H, dec_H), kd)
        b_ih = _uniform(next(keys), (dec_H,), kd)
        b_hh = _uniform(next(keys), (dec_H,), kd)
        wihs.append(jnp.zeros((PD, PD), jnp.float32).at[:din, :dec_H].set(wih.T))
        whhs.append(jnp.zeros((PD, PD), jnp.float32)
                    .at[:dec_H, :dec_H].set(whh.T))
        bs.append(jnp.zeros((1, PD), jnp.float32).at[0, :dec_H].set(b_ih + b_hh))
    p['dec_rnn'] = {'wih': jnp.stack(wihs).astype(jnp.bfloat16),
                    'whh': jnp.stack(whhs).astype(jnp.bfloat16),
                    'b': jnp.stack(bs)}

    # ---- enc_dec_fc: Linear(enc_H -> dec_H), Identity when dims equal ----
    if enc_H != dec_H:
        kf = enc_H ** -0.5
        w = _uniform(next(keys), (dec_H, enc_H), kf)
        b = _uniform(next(keys), (dec_H,), kf)
        w_ed = jnp.zeros((H_enc_p, PD), jnp.float32).at[:enc_H, :dec_H].set(w.T)
        b_ed = jnp.zeros((1, PD), jnp.float32).at[0, :dec_H].set(b)
    else:
        w_ed = (jnp.zeros((H_enc_p, PD), jnp.float32)
                .at[:enc_H, :dec_H].set(jnp.eye(enc_H, dtype=jnp.float32)))
        b_ed = jnp.zeros((1, PD), jnp.float32)
    p['enc_dec_fc'] = {'w': w_ed, 'b': b_ed}               # kept f32 (exact)

    # ---- decoder_fc: Linear(dec_H -> dec_vocab) ----
    kv = dec_H ** -0.5
    wfc = _uniform(next(keys), (dec_vocab, dec_H), kv)
    bfc = _uniform(next(keys), (dec_vocab,), kv)
    p['dec_fc'] = {
        'w': (jnp.zeros((PD, V_p), jnp.float32)
              .at[:dec_H, :dec_vocab].set(wfc.T)).astype(jnp.bfloat16),
        'b': jnp.zeros((1, V_p), jnp.float32).at[0, :dec_vocab].set(bfc),
    }
    return p


# ----------------------------------------------------------------------------
# Forward pass (XLA glue is just embedding lookup / layout plumbing / slicing)
# ----------------------------------------------------------------------------

@functools.partial(jax.jit, static_argnames=("max_len", "bos_token_id",
                                             "eos_token_id", "dec_vocab"))
def forward(params, enc_x, *, max_len, bos_token_id, eos_token_id, dec_vocab):
    B, T = enc_x.shape
    B_pad = max(SUBLANE, _round_up(B, SUBLANE))
    enc_x_p = jnp.pad(enc_x, ((0, B_pad - B), (0, 0)))

    # encoder embedding (bf16) + time-major flat layout (T*B, E)
    emb = jnp.take(params['enc_emb_p'], enc_x_p, axis=0)       # (B_pad, T, E_p)
    x = jnp.transpose(emb, (1, 0, 2)).reshape(T * B_pad, -1)

    hs = []
    for layer in params['enc_rnn']:
        x, hT = bidir_rnn_layer(x, layer['wih'], layer['whh'], layer['b'],
                                batch=B_pad)
        hs.append(hT[0] + hT[1])                 # _combine_directions (sum)
    h_enc = jnp.stack(hs, axis=0)                # (L, B_pad, H_enc_p) f32

    # fused greedy decoder
    PD = params['dec_rnn']['whh'].shape[1]
    x0 = jnp.broadcast_to(params['dec_emb_p'][bos_token_id], (B_pad, PD))
    logits_p = decode_greedy(params, h_enc, x0, max_len, dec_vocab)

    # TODO(synk): PyTorch breaks out of the decode loop once every row has
    # emitted eos_token_id (data-dependent length); we always run the static
    # max_len steps, matching PyTorch on the common prefix.
    return jnp.transpose(logits_p, (1, 0, 2))[:B, :, :dec_vocab]


# ----------------------------------------------------------------------------

if __name__ == "__main__":
    ENC_VOCAB, ENC_EMBED, ENC_H, ENC_L = 32, 16, 16, 2
    DEC_VOCAB, DEC_EMBED, DEC_H, DEC_L = 24, 16, 32, 2
    B, T, MAX_LEN = 2, 8, 6
    BOS, EOS = 1, 2

    root = jax.random.PRNGKey(0)
    k_param, k_data = jax.random.split(root)
    params = init_params(k_param, ENC_VOCAB, ENC_EMBED, ENC_H, ENC_L,
                         DEC_VOCAB, DEC_EMBED, DEC_H, DEC_L)

    enc_x = jax.random.randint(k_data, (B, T), 0, ENC_VOCAB, dtype=jnp.int32)

    dec_y = forward(params, enc_x, max_len=MAX_LEN, bos_token_id=BOS,
                    eos_token_id=EOS, dec_vocab=DEC_VOCAB)
    dec_y = jax.block_until_ready(dec_y)

    assert dec_y.shape == (B, MAX_LEN, DEC_VOCAB), dec_y.shape
    assert jnp.all(jnp.isfinite(dec_y))
    print("KERNEL_OK")
</pallas_src>

<mosaic_0001>
module attributes {stable_mosaic.version = 11 : i64} {
  func.func @_bidir_rnn_layer_kernel(%arg0: i32, %arg1: memref<64x128xbf16, #tpu.memory_space<vmem>>, %arg2: memref<1x128x128xbf16, #tpu.memory_space<vmem>>, %arg3: memref<1x128x128xbf16, #tpu.memory_space<vmem>>, %arg4: memref<1x1x128xf32, #tpu.memory_space<vmem>>, %arg5: memref<64x128xbf16, #tpu.memory_space<vmem>>, %arg6: memref<1x8x128xf32, #tpu.memory_space<vmem>>, %arg7: memref<64x128xf32, #tpu.memory_space<vmem>>) attributes {dimension_semantics = [#tpu.dimension_semantics<parallel>], iteration_bounds = array<i64: 2>, scalar_prefetch = 0 : i64, scratch_operands = 1 : i64, tpu.core_type = #tpu.core_type<tc>, window_params = [{pipeline_mode = #tpu.pipeline_mode<synchronous>, transform_indices = @transform_0, window_bounds = array<i64: 64, 128>}, {transform_indices = @transform_1, window_bounds = array<i64: 1, 128, 128>}, {transform_indices = @transform_2, window_bounds = array<i64: 1, 128, 128>}, {transform_indices = @transform_3, window_bounds = array<i64: 1, 1, 128>}, {transform_indices = @transform_4, window_bounds = array<i64: 64, 128>}, {transform_indices = @transform_5, window_bounds = array<i64: 1, 8, 128>}]} {
    %c0 = arith.constant 0 : index
    %c0_0 = arith.constant 0 : index
    %c0_1 = arith.constant 0 : index
    %0 = vector.load %arg2[%c0, %c0_0, %c0_1] : memref<1x128x128xbf16, #tpu.memory_space<vmem>>, vector<1x128x128xbf16>
    %1 = vector.shape_cast %0 : vector<1x128x128xbf16> to vector<128x128xbf16>
    %c0_2 = arith.constant 0 : index
    %c0_3 = arith.constant 0 : index
    %c0_4 = arith.constant 0 : index
    %2 = vector.load %arg3[%c0_2, %c0_3, %c0_4] : memref<1x128x128xbf16, #tpu.memory_space<vmem>>, vector<1x128x128xbf16>
    %3 = vector.shape_cast %2 : vector<1x128x128xbf16> to vector<128x128xbf16>
    %c0_5 = arith.constant 0 : index
    %c0_6 = arith.constant 0 : index
    %c0_7 = arith.constant 0 : index
    %4 = vector.load %arg4[%c0_5, %c0_6, %c0_7] : memref<1x1x128xf32, #tpu.memory_space<vmem>>, vector<1x1x128xf32>
    %5 = vector.shape_cast %4 : vector<1x1x128xf32> to vector<1x128xf32>
    %c0_8 = arith.constant 0 : index
    %c0_9 = arith.constant 0 : index
    %6 = vector.load %arg1[%c0_8, %c0_9] : memref<64x128xbf16, #tpu.memory_space<vmem>>, vector<64x128xbf16>
    %cst = arith.constant dense<0.000000e+00> : vector<64x128xf32>
    %7 = tpu.matmul %6, %1, %cst {dimension_numbers = #tpu.dot_dimension_numbers<[1], [0], [0], [1], [0, 0, 1, 1], [], []>} : vector<64x128xbf16>, vector<128x128xbf16>, vector<64x128xf32> -> vector<64x128xf32>
    %8 = vector.broadcast %5 : vector<1x128xf32> to vector<64x128xf32>
    %9 = arith.addf %7, %8 : vector<64x128xf32>
    %c0_10 = arith.constant 0 : index
    %c0_11 = arith.constant 0 : index
    %10 = vector.load %arg7[%c0_10, %c0_11] : memref<64x128xf32, #tpu.memory_space<vmem>>, vector<64x128xf32>
    tpu.vector_store %arg7[%c0_10, %c0_11], %9 {strides = array<i32>} : memref<64x128xf32, #tpu.memory_space<vmem>>, vector<64x128xf32>,
    %cst_12 = arith.constant 0.000000e+00 : f32
    %11 = vector.broadcast %cst_12 : f32 to vector<8x128xf32>
    %c0_i32 = arith.constant 0 : i32
    %c0_i32_13 = arith.constant 0 : i32
    %12 = arith.cmpi eq, %arg0, %c0_i32_13 : i32
    %c7_i32 = arith.constant 7 : i32
    %13 = arith.subi %c7_i32, %c0_i32 : i32
    %14 = arith.select %12, %c0_i32, %13 : i32
    %c8_i32 = arith.constant 8 : i32
    %15 = arith.muli %14, %c8_i32 : i32
    %16 = tpu.assume_multiple %15, 8 : i32
    %17 = arith.index_cast %16 : i32 to index
    %c0_14 = arith.constant 0 : index
    %18 = vector.load %arg7[%17, %c0_14] : memref<64x128xf32, #tpu.memory_space<vmem>>, vector<8x128xf32>
    %19 = arith.truncf %11 : vector<8x128xf32> to vector<8x128xbf16>
    %cst_15 = arith.constant dense<0.000000e+00> : vector<8x128xf32>
    %20 = tpu.matmul %19, %3, %cst_15 {dimension_numbers = #tpu.dot_dimension_numbers<[1], [0], [0], [1], [0, 0, 1, 1], [], []>} : vector<8x128xbf16>, vector<128x128xbf16>, vector<8x128xf32> -> vector<8x128xf32>
    %21 = arith.addf %18, %20 : vector<8x128xf32>
    %22 = math.tanh %21 : vector<8x128xf32>
    %23 = arith.truncf %22 : vector<8x128xf32> to vector<8x128xbf16>
    %24 = arith.index_cast %16 : i32 to index
    %c0_16 = arith.constant 0 : index
    %25 = vector.load %arg5[%24, %c0_16] : memref<64x128xbf16, #tpu.memory_space<vmem>>, vector<8x128xbf16>
    tpu.vector_store %arg5[%24, %c0_16], %23 {strides = array<i32>} : memref<64x128xbf16, #tpu.memory_space<vmem>>, vector<8x128xbf16>,
    %c1_i32 = arith.constant 1 : i32
    %c0_i32_17 = arith.constant 0 : i32
    %26 = arith.cmpi eq, %arg0, %c0_i32_17 : i32
    %c7_i32_18 = arith.constant 7 : i32
    %27 = arith.subi %c7_i32_18, %c1_i32 : i32
    %28 = arith.select %26, %c1_i32, %27 : i32
    %c8_i32_19 = arith.constant 8 : i32
    %29 = arith.muli %28, %c8_i32_19 : i32
    %30 = tpu.assume_multiple %29, 8 : i32
    %31 = arith.index_cast %30 : i32 to index
    %c0_20 = arith.constant 0 : index
    %32 = vector.load %arg7[%31, %c0_20] : memref<64x128xf32, #tpu.memory_space<vmem>>, vector<8x128xf32>
    %33 = arith.truncf %22 : vector<8x128xf32> to vector<8x128xbf16>
    %cst_21 = arith.constant dense<0.000000e+00> : vector<8x128xf32>
    %34 = tpu.matmul %33, %3, %cst_21 {dimension_numbers = #tpu.dot_dimension_numbers<[1], [0], [0], [1], [0, 0, 1, 1], [], []>} : vector<8x128xbf16>, vector<128x128xbf16>, vector<8x128xf32> -> vector<8x128xf32>
    %35 = arith.addf %32, %34 : vector<8x128xf32>
    %36 = math.tanh %35 : vector<8x128xf32>
    %37 = arith.truncf %36 : vector<8x128xf32> to vector<8x128xbf16>
    %38 = arith.index_cast %30 : i32 to index
    %c0_22 = arith.constant 0 : index
    %39 = vector.load %arg5[%38, %c0_22] : memref<64x128xbf16, #tpu.memory_space<vmem>>, vector<8x128xbf16>
    tpu.vector_store %arg5[%38, %c0_22], %37 {strides = array<i32>} : memref<64x128xbf16, #tpu.memory_space<vmem>>, vector<8x128xbf16>,
    %c2_i32 = arith.constant 2 : i32
    %c0_i32_23 = arith.constant 0 : i32
    %40 = arith.cmpi eq, %arg0, %c0_i32_23 : i32
    %c7_i32_24 = arith.constant 7 : i32
    %41 = arith.subi %c7_i32_24, %c2_i32 : i32
    %42 = arith.select %40, %c2_i32, %41 : i32
    %c8_i32_25 = arith.constant 8 : i32
    %43 = arith.muli %42, %c8_i32_25 : i32
    %44 = tpu.assume_multiple %43, 8 : i32
    %45 = arith.index_cast %44 : i32 to index
    %c0_26 = arith.constant 0 : index
    %46 = vector.load %arg7[%45, %c0_26] : memref<64x128xf32, #tpu.memory_space<vmem>>, vector<8x128xf32>
    %47 = arith.truncf %36 : vector<8x128xf32> to vector<8x128xbf16>
    %cst_27 = arith.constant dense<0.000000e+00> : vector<8x128xf32>
    %48 = tpu.matmul %47, %3, %cst_27 {dimension_numbers = #tpu.dot_dimension_numbers<[1], [0], [0], [1], [0, 0, 1, 1], [], []>} : vector<8x128xbf16>, vector<128x128xbf16>, vector<8x128xf32> -> vector<8x128xf32>
    %49 = arith.addf %46, %48 : vector<8x128xf32>
    %50 = math.tanh %49 : vector<8x128xf32>
    %51 = arith.truncf %50 : vector<8x128xf32> to vector<8x128xbf16>
    %52 = arith.index_cast %44 : i32 to index
    %c0_28 = arith.constant 0 : index
    %53 = vector.load %arg5[%52, %c0_28] : memref<64x128xbf16, #tpu.memory_space<vmem>>, vector<8x128xbf16>
    tpu.vector_store %arg5[%52, %c0_28], %51 {strides = array<i32>} : memref<64x128xbf16, #tpu.memory_space<vmem>>, vector<8x128xbf16>,
    %c3_i32 = arith.constant 3 : i32
    %c0_i32_29 = arith.constant 0 : i32
    %54 = arith.cmpi eq, %arg0, %c0_i32_29 : i32
    %c7_i32_30 = arith.constant 7 : i32
    %55 = arith.subi %c7_i32_30, %c3_i32 : i32
    %56 = arith.select %54, %c3_i32, %55 : i32
    %c8_i32_31 = arith.constant 8 : i32
    %57 = arith.muli %56, %c8_i32_31 : i32
    %58 = tpu.assume_multiple %57, 8 : i32
    %59 = arith.index_cast %58 : i32 to index
    %c0_32 = arith.constant 0 : index
    %60 = vector.load %arg7[%59, %c0_32] : memref<64x128xf32, #tpu.memory_space<vmem>>, vector<8x128xf32>
    %61 = arith.truncf %50 : vector<8x128xf32> to vector<8x128xbf16>
    %cst_33 = arith.constant dense<0.000000e+00> : vector<8x128xf32>
    %62 = tpu.matmul %61, %3, %cst_33 {dimension_numbers = #tpu.dot_dimension_numbers<[1], [0], [0], [1], [0, 0, 1, 1], [], []>} : vector<8x128xbf16>, vector<128x128xbf16>, vector<8x128xf32> -> vector<8x128xf32>
    %63 = arith.addf %60, %62 : vector<8x128xf32>
    %64 = math.tanh %63 : vector<8x128xf32>
    %65 = arith.truncf %64 : vector<8x128xf32> to vector<8x128xbf16>
    %66 = arith.index_cast %58 : i32 to index
    %c0_34 = arith.constant 0 : index
    %67 = vector.load %arg5[%66, %c0_34] : memref<64x128xbf16, #tpu.memory_space<vmem>>, vector<8x128xbf16>
    tpu.vector_store %arg5[%66, %c0_34], %65 {strides = array<i32>} : memref<64x128xbf16, #tpu.memory_space<vmem>>, vector<8x128xbf16>,
    %c4_i32 = arith.constant 4 : i32
    %c0_i32_35 = arith.constant 0 : i32
    %68 = arith.cmpi eq, %arg0, %c0_i32_35 : i32
    %c7_i32_36 = arith.constant 7 : i32
    %69 = arith.subi %c7_i32_36, %c4_i32 : i32
    %70 = arith.select %68, %c4_i32, %69 : i32
    %c8_i32_37 = arith.constant 8 : i32
    %71 = arith.muli %70, %c8_i32_37 : i32
    %72 = tpu.assume_multiple %71, 8 : i32
    %73 = arith.index_cast %72 : i32 to index
    %c0_38 = arith.constant 0 : index
    %74 = vector.load %arg7[%73, %c0_38] : memref<64x128xf32, #tpu.memory_space<vmem>>, vector<8x128xf32>
    %75 = arith.truncf %64 : vector<8x128xf32> to vector<8x128xbf16>
    %cst_39 = arith.constant dense<0.000000e+00> : vector<8x128xf32>
    %76 = tpu.matmul %75, %3, %cst_39 {dimension_numbers = #tpu.dot_dimension_numbers<[1], [0], [0], [1], [0, 0, 1, 1], [], []>} : vector<8x128xbf16>, vector<128x128xbf16>, vector<8x128xf32> -> vector<8x128xf32>
    %77 = arith.addf %74, %76 : vector<8x128xf32>
    %78 = math.tanh %77 : vector<8x128xf32>
    %79 = arith.truncf %78 : vector<8x128xf32> to vector<8x128xbf16>
    %80 = arith.index_cast %72 : i32 to index
    %c0_40 = arith.constant 0 : index
    %81 = vector.load %arg5[%80, %c0_40] : memref<64x128xbf16, #tpu.memory_space<vmem>>, vector<8x128xbf16>
    tpu.vector_store %arg5[%80, %c0_40], %79 {strides = array<i32>} : memref<64x128xbf16, #tpu.memory_space<vmem>>, vector<8x128xbf16>,
    %c5_i32 = arith.constant 5 : i32
    %c0_i32_41 = arith.constant 0 : i32
    %82 = arith.cmpi eq, %arg0, %c0_i32_41 : i32
    %c7_i32_42 = arith.constant 7 : i32
    %83 = arith.subi %c7_i32_42, %c5_i32 : i32
    %84 = arith.select %82, %c5_i32, %83 : i32
    %c8_i32_43 = arith.constant 8 : i32
    %85 = arith.muli %84, %c8_i32_43 : i32
    %86 = tpu.assume_multiple %85, 8 : i32
    %87 = arith.index_cast %86 : i32 to index
    %c0_44 = arith.constant 0 : index
    %88 = vector.load %arg7[%87, %c0_44] : memref<64x128xf32, #tpu.memory_space<vmem>>, vector<8x128xf32>
    %89 = arith.truncf %78 : vector<8x128xf32> to vector<8x128xbf16>
    %cst_45 = arith.constant dense<0.000000e+00> : vector<8x128xf32>
    %90 = tpu.matmul %89, %3, %cst_45 {dimension_numbers = #tpu.dot_dimension_numbers<[1], [0], [0], [1], [0, 0, 1, 1], [], []>} : vector<8x128xbf16>, vector<128x128xbf16>, vector<8x128xf32> -> vector<8x128xf32>
    %91 = arith.addf %88, %90 : vector<8x128xf32>
    %92 = math.tanh %91 : vector<8x128xf32>
    %93 = arith.truncf %92 : vector<8x128xf32> to vector<8x128xbf16>
    %94 = arith.index_cast %86 : i32 to index
    %c0_46 = arith.constant 0 : index
    %95 = vector.load %arg5[%94, %c0_46] : memref<64x128xbf16, #tpu.memory_space<vmem>>, vector<8x128xbf16>
    tpu.vector_store %arg5[%94, %c0_46], %93 {strides = array<i32>} : memref<64x128xbf16, #tpu.memory_space<vmem>>, vector<8x128xbf16>,
    %c6_i32 = arith.constant 6 : i32
    %c0_i32_47 = arith.constant 0 : i32
    %96 = arith.cmpi eq, %arg0, %c0_i32_47 : i32
    %c7_i32_48 = arith.constant 7 : i32
    %97 = arith.subi %c7_i32_48, %c6_i32 : i32
    %98 = arith.select %96, %c6_i32, %97 : i32
    %c8_i32_49 = arith.constant 8 : i32
    %99 = arith.muli %98, %c8_i32_49 : i32
    %100 = tpu.assume_multiple %99, 8 : i32
    %101 = arith.index_cast %100 : i32 to index
    %c0_50 = arith.constant 0 : index
    %102 = vector.load %arg7[%101, %c0_50] : memref<64x128xf32, #tpu.memory_space<vmem>>, vector<8x128xf32>
    %103 = arith.truncf %92 : vector<8x128xf32> to vector<8x128xbf16>
    %cst_51 = arith.constant dense<0.000000e+00> : vector<8x128xf32>
    %104 = tpu.matmul %103, %3, %cst_51 {dimension_numbers = #tpu.dot_dimension_numbers<[1], [0], [0], [1], [0, 0, 1, 1], [], []>} : vector<8x128xbf16>, vector<128x128xbf16>, vector<8x128xf32> -> vector<8x128xf32>
    %105 = arith.addf %102, %104 : vector<8x128xf32>
    %106 = math.tanh %105 : vector<8x128xf32>
    %107 = arith.truncf %106 : vector<8x128xf32> to vector<8x128xbf16>
    %108 = arith.index_cast %100 : i32 to index
    %c0_52 = arith.constant 0 : index
    %109 = vector.load %arg5[%108, %c0_52] : memref<64x128xbf16, #tpu.memory_space<vmem>>, vector<8x128xbf16>
    tpu.vector_store %arg5[%108, %c0_52], %107 {strides = array<i32>} : memref<64x128xbf16, #tpu.memory_space<vmem>>, vector<8x128xbf16>,
    %c7_i32_53 = arith.constant 7 : i32
    %c0_i32_54 = arith.constant 0 : i32
    %110 = arith.cmpi eq, %arg0, %c0_i32_54 : i32
    %c7_i32_55 = arith.constant 7 : i32
    %111 = arith.subi %c7_i32_55, %c7_i32_53 : i32
    %112 = arith.select %110, %c7_i32_53, %111 : i32
    %c8_i32_56 = arith.constant 8 : i32
    %113 = arith.muli %112, %c8_i32_56 : i32
    %114 = tpu.assume_multiple %113, 8 : i32
    %115 = arith.index_cast %114 : i32 to index
    %c0_57 = arith.constant 0 : index
    %116 = vector.load %arg7[%115, %c0_57] : memref<64x128xf32, #tpu.memory_space<vmem>>, vector<8x128xf32>
    %117 = arith.truncf %106 : vector<8x128xf32> to vector<8x128xbf16>
    %cst_58 = arith.constant dense<0.000000e+00> : vector<8x128xf32>
    %118 = tpu.matmul %117, %3, %cst_58 {dimension_numbers = #tpu.dot_dimension_numbers<[1], [0], [0], [1], [0, 0, 1, 1], [], []>} : vector<8x128xbf16>, vector<128x128xbf16>, vector<8x128xf32> -> vector<8x128xf32>
    %119 = arith.addf %116, %118 : vector<8x128xf32>
    %120 = math.tanh %119 : vector<8x128xf32>
    %121 = arith.truncf %120 : vector<8x128xf32> to vector<8x128xbf16>
    %122 = arith.index_cast %114 : i32 to index
    %c0_59 = arith.constant 0 : index
    %123 = vector.load %arg5[%122, %c0_59] : memref<64x128xbf16, #tpu.memory_space<vmem>>, vector<8x128xbf16>
    tpu.vector_store %arg5[%122, %c0_59], %121 {strides = array<i32>} : memref<64x128xbf16, #tpu.memory_space<vmem>>, vector<8x128xbf16>,
    %c8_i32_60 = arith.constant 8 : i32
    %c0_61 = arith.constant 0 : index
    %c0_62 = arith.constant 0 : index
    %c0_63 = arith.constant 0 : index
    %124 = vector.load %arg6[%c0_61, %c0_62, %c0_63] : memref<1x8x128xf32, #tpu.memory_space<vmem>>, vector<1x8x128xf32>
    %125 = vector.shape_cast %124 : vector<1x8x128xf32> to vector<8x128xf32>
    %126 = vector.shape_cast %120 : vector<8x128xf32> to vector<1x8x128xf32>
    tpu.vector_store %arg6[%c0_61, %c0_62, %c0_63], %126 {strides = array<i32>} : memref<1x8x128xf32, #tpu.memory_space<vmem>>, vector<1x8x128xf32>,
    return
  }
  func.func @transform_0(%arg0: i32) -> (i32, i32) {
    %c0_i32 = arith.constant 0 : i32
    %c0_i32_0 = arith.constant 0 : i32
    %c0_i32_1 = arith.constant 0 : i32
    return %c0_i32, %c0_i32_0 : i32, i32
  }
  func.func @transform_1(%arg0: i32) -> (i32, i32, i32) {
    %c0_i32 = arith.constant 0 : i32
    %c0_i32_0 = arith.constant 0 : i32
    %c0_i32_1 = arith.constant 0 : i32
    return %arg0, %c0_i32, %c0_i32_0 : i32, i32, i32
  }
  func.func @transform_2(%arg0: i32) -> (i32, i32, i32) {
    %c0_i32 = arith.constant 0 : i32
    %c0_i32_0 = arith.constant 0 : i32
    %c0_i32_1 = arith.constant 0 : i32
    return %arg0, %c0_i32, %c0_i32_0 : i32, i32, i32
  }
  func.func @transform_3(%arg0: i32) -> (i32, i32, i32) {
    %c0_i32 = arith.constant 0 : i32
    %c0_i32_0 = arith.constant 0 : i32
    %c0_i32_1 = arith.constant 0 : i32
    return %arg0, %c0_i32, %c0_i32_0 : i32, i32, i32
  }
  func.func @transform_4(%arg0: i32) -> (i32, i32) {
    %c0_i32 = arith.constant 0 : i32
    %c0_i32_0 = arith.constant 0 : i32
    return %c0_i32, %arg0 : i32, i32
  }
  func.func @transform_5(%arg0: i32) -> (i32, i32, i32) {
    %c0_i32 = arith.constant 0 : i32
    %c0_i32_0 = arith.constant 0 : i32
    %c0_i32_1 = arith.constant 0 : i32
    return %arg0, %c0_i32, %c0_i32_0 : i32, i32, i32
  }
}

module attributes {stable_mosaic.version = 11 : i64} {
  func.func @_bidir_rnn_layer_kernel(%arg0: i32, %arg1: memref<64x256xbf16, #tpu.memory_space<vmem>>, %arg2: memref<1x256x128xbf16, #tpu.memory_space<vmem>>, %arg3: memref<1x128x128xbf16, #tpu.memory_space<vmem>>, %arg4: memref<1x1x128xf32, #tpu.memory_space<vmem>>, %arg5: memref<64x128xbf16, #tpu.memory_space<vmem>>, %arg6: memref<1x8x128xf32, #tpu.memory_space<vmem>>, %arg7: memref<64x128xf32, #tpu.memory_space<vmem>>) attributes {dimension_semantics = [#tpu.dimension_semantics<parallel>], iteration_bounds = array<i64: 2>, scalar_prefetch = 0 : i64, scratch_operands = 1 : i64, tpu.core_type = #tpu.core_type<tc>, window_params = [{pipeline_mode = #tpu.pipeline_mode<synchronous>, transform_indices = @transform_0, window_bounds = array<i64: 64, 256>}, {transform_indices = @transform_1, window_bounds = array<i64: 1, 256, 128>}, {transform_indices = @transform_2, window_bounds = array<i64: 1, 128, 128>}, {transform_indices = @transform_3, window_bounds = array<i64: 1, 1, 128>}, {transform_indices = @transform_4, window_bounds = array<i64: 64, 128>}, {transform_indices = @transform_5, window_bounds = array<i64: 1, 8, 128>}]} {
    %c0 = arith.constant 0 : index
    %c0_0 = arith.constant 0 : index
    %c0_1 = arith.constant 0 : index
    %0 = vector.load %arg2[%c0, %c0_0, %c0_1] : memref<1x256x128xbf16, #tpu.memory_space<vmem>>, vector<1x256x128xbf16>
    %1 = vector.shape_cast %0 : vector<1x256x128xbf16> to vector<256x128xbf16>
    %c0_2 = arith.constant 0 : index
    %c0_3 = arith.constant 0 : index
    %c0_4 = arith.constant 0 : index
    %2 = vector.load %arg3[%c0_2, %c0_3, %c0_4] : memref<1x128x128xbf16, #tpu.memory_space<vmem>>, vector<1x128x128xbf16>
    %3 = vector.shape_cast %2 : vector<1x128x128xbf16> to vector<128x128xbf16>
    %c0_5 = arith.constant 0 : index
    %c0_6 = arith.constant 0 : index
    %c0_7 = arith.constant 0 : index
    %4 = vector.load %arg4[%c0_5, %c0_6, %c0_7] : memref<1x1x128xf32, #tpu.memory_space<vmem>>, vector<1x1x128xf32>
    %5 = vector.shape_cast %4 : vector<1x1x128xf32> to vector<1x128xf32>
    %c0_8 = arith.constant 0 : index
    %c0_9 = arith.constant 0 : index
    %6 = vector.load %arg1[%c0_8, %c0_9] : memref<64x256xbf16, #tpu.memory_space<vmem>>, vector<64x256xbf16>
    %cst = arith.constant dense<0.000000e+00> : vector<64x128xf32>
    %7 = tpu.matmul %6, %1, %cst {dimension_numbers = #tpu.dot_dimension_numbers<[1], [0], [0], [1], [0, 0, 1, 1], [], []>} : vector<64x256xbf16>, vector<256x128xbf16>, vector<64x128xf32> -> vector<64x128xf32>
    %8 = vector.broadcast %5 : vector<1x128xf32> to vector<64x128xf32>
    %9 = arith.addf %7, %8 : vector<64x128xf32>
    %c0_10 = arith.constant 0 : index
    %c0_11 = arith.constant 0 : index
    %10 = vector.load %arg7[%c0_10, %c0_11] : memref<64x128xf32, #tpu.memory_space<vmem>>, vector<64x128xf32>
    tpu.vector_store %arg7[%c0_10, %c0_11], %9 {strides = array<i32>} : memref<64x128xf32, #tpu.memory_space<vmem>>, vector<64x128xf32>,
    %cst_12 = arith.constant 0.000000e+00 : f32
    %11 = vector.broadcast %cst_12 : f32 to vector<8x128xf32>
    %c0_i32 = arith.constant 0 : i32
    %c0_i32_13 = arith.constant 0 : i32
    %12 = arith.cmpi eq, %arg0, %c0_i32_13 : i32
    %c7_i32 = arith.constant 7 : i32
    %13 = arith.subi %c7_i32, %c0_i32 : i32
    %14 = arith.select %12, %c0_i32, %13 : i32
    %c8_i32 = arith.constant 8 : i32
    %15 = arith.muli %14, %c8_i32 : i32
    %16 = tpu.assume_multiple %15, 8 : i32
    %17 = arith.index_cast %16 : i32 to index
    %c0_14 = arith.constant 0 : index
    %18 = vector.load %arg7[%17, %c0_14] : memref<64x128xf32, #tpu.memory_space<vmem>>, vector<8x128xf32>
    %19 = arith.truncf %11 : vector<8x128xf32> to vector<8x128xbf16>
    %cst_15 = arith.constant dense<0.000000e+00> : vector<8x128xf32>
    %20 = tpu.matmul %19, %3, %cst_15 {dimension_numbers = #tpu.dot_dimension_numbers<[1], [0], [0], [1], [0, 0, 1, 1], [], []>} : vector<8x128xbf16>, vector<128x128xbf16>, vector<8x128xf32> -> vector<8x128xf32>
    %21 = arith.addf %18, %20 : vector<8x128xf32>
    %22 = math.tanh %21 : vector<8x128xf32>
    %23 = arith.truncf %22 : vector<8x128xf32> to vector<8x128xbf16>
    %24 = arith.index_cast %16 : i32 to index
    %c0_16 = arith.constant 0 : index
    %25 = vector.load %arg5[%24, %c0_16] : memref<64x128xbf16, #tpu.memory_space<vmem>>, vector<8x128xbf16>
    tpu.vector_store %arg5[%24, %c0_16], %23 {strides = array<i32>} : memref<64x128xbf16, #tpu.memory_space<vmem>>, vector<8x128xbf16>,
    %c1_i32 = arith.constant 1 : i32
    %c0_i32_17 = arith.constant 0 : i32
    %26 = arith.cmpi eq, %arg0, %c0_i32_17 : i32
    %c7_i32_18 = arith.constant 7 : i32
    %27 = arith.subi %c7_i32_18, %c1_i32 : i32
    %28 = arith.select %26, %c1_i32, %27 : i32
    %c8_i32_19 = arith.constant 8 : i32
    %29 = arith.muli %28, %c8_i32_19 : i32
    %30 = tpu.assume_multiple %29, 8 : i32
    %31 = arith.index_cast %30 : i32 to index
    %c0_20 = arith.constant 0 : index
    %32 = vector.load %arg7[%31, %c0_20] : memref<64x128xf32, #tpu.memory_space<vmem>>, vector<8x128xf32>
    %33 = arith.truncf %22 : vector<8x128xf32> to vector<8x128xbf16>
    %cst_21 = arith.constant dense<0.000000e+00> : vector<8x128xf32>
    %34 = tpu.matmul %33, %3, %cst_21 {dimension_numbers = #tpu.dot_dimension_numbers<[1], [0], [0], [1], [0, 0, 1, 1], [], []>} : vector<8x128xbf16>, vector<128x128xbf16>, vector<8x128xf32> -> vector<8x128xf32>
    %35 = arith.addf %32, %34 : vector<8x128xf32>
    %36 = math.tanh %35 : vector<8x128xf32>
    %37 = arith.truncf %36 : vector<8x128xf32> to vector<8x128xbf16>
    %38 = arith.index_cast %30 : i32 to index
    %c0_22 = arith.constant 0 : index
    %39 = vector.load %arg5[%38, %c0_22] : memref<64x128xbf16, #tpu.memory_space<vmem>>, vector<8x128xbf16>
    tpu.vector_store %arg5[%38, %c0_22], %37 {strides = array<i32>} : memref<64x128xbf16, #tpu.memory_space<vmem>>, vector<8x128xbf16>,
    %c2_i32 = arith.constant 2 : i32
    %c0_i32_23 = arith.constant 0 : i32
    %40 = arith.cmpi eq, %arg0, %c0_i32_23 : i32
    %c7_i32_24 = arith.constant 7 : i32
    %41 = arith.subi %c7_i32_24, %c2_i32 : i32
    %42 = arith.select %40, %c2_i32, %41 : i32
    %c8_i32_25 = arith.constant 8 : i32
    %43 = arith.muli %42, %c8_i32_25 : i32
    %44 = tpu.assume_multiple %43, 8 : i32
    %45 = arith.index_cast %44 : i32 to index
    %c0_26 = arith.constant 0 : index
    %46 = vector.load %arg7[%45, %c0_26] : memref<64x128xf32, #tpu.memory_space<vmem>>, vector<8x128xf32>
    %47 = arith.truncf %36 : vector<8x128xf32> to vector<8x128xbf16>
    %cst_27 = arith.constant dense<0.000000e+00> : vector<8x128xf32>
    %48 = tpu.matmul %47, %3, %cst_27 {dimension_numbers = #tpu.dot_dimension_numbers<[1], [0], [0], [1], [0, 0, 1, 1], [], []>} : vector<8x128xbf16>, vector<128x128xbf16>, vector<8x128xf32> -> vector<8x128xf32>
    %49 = arith.addf %46, %48 : vector<8x128xf32>
    %50 = math.tanh %49 : vector<8x128xf32>
    %51 = arith.truncf %50 : vector<8x128xf32> to vector<8x128xbf16>
    %52 = arith.index_cast %44 : i32 to index
    %c0_28 = arith.constant 0 : index
    %53 = vector.load %arg5[%52, %c0_28] : memref<64x128xbf16, #tpu.memory_space<vmem>>, vector<8x128xbf16>
    tpu.vector_store %arg5[%52, %c0_28], %51 {strides = array<i32>} : memref<64x128xbf16, #tpu.memory_space<vmem>>, vector<8x128xbf16>,
    %c3_i32 = arith.constant 3 : i32
    %c0_i32_29 = arith.constant 0 : i32
    %54 = arith.cmpi eq, %arg0, %c0_i32_29 : i32
    %c7_i32_30 = arith.constant 7 : i32
    %55 = arith.subi %c7_i32_30, %c3_i32 : i32
    %56 = arith.select %54, %c3_i32, %55 : i32
    %c8_i32_31 = arith.constant 8 : i32
    %57 = arith.muli %56, %c8_i32_31 : i32
    %58 = tpu.assume_multiple %57, 8 : i32
    %59 = arith.index_cast %58 : i32 to index
    %c0_32 = arith.constant 0 : index
    %60 = vector.load %arg7[%59, %c0_32] : memref<64x128xf32, #tpu.memory_space<vmem>>, vector<8x128xf32>
    %61 = arith.truncf %50 : vector<8x128xf32> to vector<8x128xbf16>
    %cst_33 = arith.constant dense<0.000000e+00> : vector<8x128xf32>
    %62 = tpu.matmul %61, %3, %cst_33 {dimension_numbers = #tpu.dot_dimension_numbers<[1], [0], [0], [1], [0, 0, 1, 1], [], []>} : vector<8x128xbf16>, vector<128x128xbf16>, vector<8x128xf32> -> vector<8x128xf32>
    %63 = arith.addf %60, %62 : vector<8x128xf32>
    %64 = math.tanh %63 : vector<8x128xf32>
    %65 = arith.truncf %64 : vector<8x128xf32> to vector<8x128xbf16>
    %66 = arith.index_cast %58 : i32 to index
    %c0_34 = arith.constant 0 : index
    %67 = vector.load %arg5[%66, %c0_34] : memref<64x128xbf16, #tpu.memory_space<vmem>>, vector<8x128xbf16>
    tpu.vector_store %arg5[%66, %c0_34], %65 {strides = array<i32>} : memref<64x128xbf16, #tpu.memory_space<vmem>>, vector<8x128xbf16>,
    %c4_i32 = arith.constant 4 : i32
    %c0_i32_35 = arith.constant 0 : i32
    %68 = arith.cmpi eq, %arg0, %c0_i32_35 : i32
    %c7_i32_36 = arith.constant 7 : i32
    %69 = arith.subi %c7_i32_36, %c4_i32 : i32
    %70 = arith.select %68, %c4_i32, %69 : i32
    %c8_i32_37 = arith.constant 8 : i32
    %71 = arith.muli %70, %c8_i32_37 : i32
    %72 = tpu.assume_multiple %71, 8 : i32
    %73 = arith.index_cast %72 : i32 to index
    %c0_38 = arith.constant 0 : index
    %74 = vector.load %arg7[%73, %c0_38] : memref<64x128xf32, #tpu.memory_space<vmem>>, vector<8x128xf32>
    %75 = arith.truncf %64 : vector<8x128xf32> to vector<8x128xbf16>
    %cst_39 = arith.constant dense<0.000000e+00> : vector<8x128xf32>
    %76 = tpu.matmul %75, %3, %cst_39 {dimension_numbers = #tpu.dot_dimension_numbers<[1], [0], [0], [1], [0, 0, 1, 1], [], []>} : vector<8x128xbf16>, vector<128x128xbf16>, vector<8x128xf32> -> vector<8x128xf32>
    %77 = arith.addf %74, %76 : vector<8x128xf32>
    %78 = math.tanh %77 : vector<8x128xf32>
    %79 = arith.truncf %78 : vector<8x128xf32> to vector<8x128xbf16>
    %80 = arith.index_cast %72 : i32 to index
    %c0_40 = arith.constant 0 : index
    %81 = vector.load %arg5[%80, %c0_40] : memref<64x128xbf16, #tpu.memory_space<vmem>>, vector<8x128xbf16>
    tpu.vector_store %arg5[%80, %c0_40], %79 {strides = array<i32>} : memref<64x128xbf16, #tpu.memory_space<vmem>>, vector<8x128xbf16>,
    %c5_i32 = arith.constant 5 : i32
    %c0_i32_41 = arith.constant 0 : i32
    %82 = arith.cmpi eq, %arg0, %c0_i32_41 : i32
    %c7_i32_42 = arith.constant 7 : i32
    %83 = arith.subi %c7_i32_42, %c5_i32 : i32
    %84 = arith.select %82, %c5_i32, %83 : i32
    %c8_i32_43 = arith.constant 8 : i32
    %85 = arith.muli %84, %c8_i32_43 : i32
    %86 = tpu.assume_multiple %85, 8 : i32
    %87 = arith.index_cast %86 : i32 to index
    %c0_44 = arith.constant 0 : index
    %88 = vector.load %arg7[%87, %c0_44] : memref<64x128xf32, #tpu.memory_space<vmem>>, vector<8x128xf32>
    %89 = arith.truncf %78 : vector<8x128xf32> to vector<8x128xbf16>
    %cst_45 = arith.constant dense<0.000000e+00> : vector<8x128xf32>
    %90 = tpu.matmul %89, %3, %cst_45 {dimension_numbers = #tpu.dot_dimension_numbers<[1], [0], [0], [1], [0, 0, 1, 1], [], []>} : vector<8x128xbf16>, vector<128x128xbf16>, vector<8x128xf32> -> vector<8x128xf32>
    %91 = arith.addf %88, %90 : vector<8x128xf32>
    %92 = math.tanh %91 : vector<8x128xf32>
    %93 = arith.truncf %92 : vector<8x128xf32> to vector<8x128xbf16>
    %94 = arith.index_cast %86 : i32 to index
    %c0_46 = arith.constant 0 : index
    %95 = vector.load %arg5[%94, %c0_46] : memref<64x128xbf16, #tpu.memory_space<vmem>>, vector<8x128xbf16>
    tpu.vector_store %arg5[%94, %c0_46], %93 {strides = array<i32>} : memref<64x128xbf16, #tpu.memory_space<vmem>>, vector<8x128xbf16>,
    %c6_i32 = arith.constant 6 : i32
    %c0_i32_47 = arith.constant 0 : i32
    %96 = arith.cmpi eq, %arg0, %c0_i32_47 : i32
    %c7_i32_48 = arith.constant 7 : i32
    %97 = arith.subi %c7_i32_48, %c6_i32 : i32
    %98 = arith.select %96, %c6_i32, %97 : i32
    %c8_i32_49 = arith.constant 8 : i32
    %99 = arith.muli %98, %c8_i32_49 : i32
    %100 = tpu.assume_multiple %99, 8 : i32
    %101 = arith.index_cast %100 : i32 to index
    %c0_50 = arith.constant 0 : index
    %102 = vector.load %arg7[%101, %c0_50] : memref<64x128xf32, #tpu.memory_space<vmem>>, vector<8x128xf32>
    %103 = arith.truncf %92 : vector<8x128xf32> to vector<8x128xbf16>
    %cst_51 = arith.constant dense<0.000000e+00> : vector<8x128xf32>
    %104 = tpu.matmul %103, %3, %cst_51 {dimension_numbers = #tpu.dot_dimension_numbers<[1], [0], [0], [1], [0, 0, 1, 1], [], []>} : vector<8x128xbf16>, vector<128x128xbf16>, vector<8x128xf32> -> vector<8x128xf32>
    %105 = arith.addf %102, %104 : vector<8x128xf32>
    %106 = math.tanh %105 : vector<8x128xf32>
    %107 = arith.truncf %106 : vector<8x128xf32> to vector<8x128xbf16>
    %108 = arith.index_cast %100 : i32 to index
    %c0_52 = arith.constant 0 : index
    %109 = vector.load %arg5[%108, %c0_52] : memref<64x128xbf16, #tpu.memory_space<vmem>>, vector<8x128xbf16>
    tpu.vector_store %arg5[%108, %c0_52], %107 {strides = array<i32>} : memref<64x128xbf16, #tpu.memory_space<vmem>>, vector<8x128xbf16>,
    %c7_i32_53 = arith.constant 7 : i32
    %c0_i32_54 = arith.constant 0 : i32
    %110 = arith.cmpi eq, %arg0, %c0_i32_54 : i32
    %c7_i32_55 = arith.constant 7 : i32
    %111 = arith.subi %c7_i32_55, %c7_i32_53 : i32
    %112 = arith.select %110, %c7_i32_53, %111 : i32
    %c8_i32_56 = arith.constant 8 : i32
    %113 = arith.muli %112, %c8_i32_56 : i32
    %114 = tpu.assume_multiple %113, 8 : i32
    %115 = arith.index_cast %114 : i32 to index
    %c0_57 = arith.constant 0 : index
    %116 = vector.load %arg7[%115, %c0_57] : memref<64x128xf32, #tpu.memory_space<vmem>>, vector<8x128xf32>
    %117 = arith.truncf %106 : vector<8x128xf32> to vector<8x128xbf16>
    %cst_58 = arith.constant dense<0.000000e+00> : vector<8x128xf32>
    %118 = tpu.matmul %117, %3, %cst_58 {dimension_numbers = #tpu.dot_dimension_numbers<[1], [0], [0], [1], [0, 0, 1, 1], [], []>} : vector<8x128xbf16>, vector<128x128xbf16>, vector<8x128xf32> -> vector<8x128xf32>
    %119 = arith.addf %116, %118 : vector<8x128xf32>
    %120 = math.tanh %119 : vector<8x128xf32>
    %121 = arith.truncf %120 : vector<8x128xf32> to vector<8x128xbf16>
    %122 = arith.index_cast %114 : i32 to index
    %c0_59 = arith.constant 0 : index
    %123 = vector.load %arg5[%122, %c0_59] : memref<64x128xbf16, #tpu.memory_space<vmem>>, vector<8x128xbf16>
    tpu.vector_store %arg5[%122, %c0_59], %121 {strides = array<i32>} : memref<64x128xbf16, #tpu.memory_space<vmem>>, vector<8x128xbf16>,
    %c8_i32_60 = arith.constant 8 : i32
    %c0_61 = arith.constant 0 : index
    %c0_62 = arith.constant 0 : index
    %c0_63 = arith.constant 0 : index
    %124 = vector.load %arg6[%c0_61, %c0_62, %c0_63] : memref<1x8x128xf32, #tpu.memory_space<vmem>>, vector<1x8x128xf32>
    %125 = vector.shape_cast %124 : vector<1x8x128xf32> to vector<8x128xf32>
    %126 = vector.shape_cast %120 : vector<8x128xf32> to vector<1x8x128xf32>
    tpu.vector_store %arg6[%c0_61, %c0_62, %c0_63], %126 {strides = array<i32>} : memref<1x8x128xf32, #tpu.memory_space<vmem>>, vector<1x8x128xf32>,
    return
  }
  func.func @transform_0(%arg0: i32) -> (i32, i32) {
    %c0_i32 = arith.constant 0 : i32
    %c0_i32_0 = arith.constant 0 : i32
    %c0_i32_1 = arith.constant 0 : i32
    return %c0_i32, %c0_i32_0 : i32, i32
  }
  func.func @transform_1(%arg0: i32) -> (i32, i32, i32) {
    %c0_i32 = arith.constant 0 : i32
    %c0_i32_0 = arith.constant 0 : i32
    %c0_i32_1 = arith.constant 0 : i32
    return %arg0, %c0_i32, %c0_i32_0 : i32, i32, i32
  }
  func.func @transform_2(%arg0: i32) -> (i32, i32, i32) {
    %c0_i32 = arith.constant 0 : i32
    %c0_i32_0 = arith.constant 0 : i32
    %c0_i32_1 = arith.constant 0 : i32
    return %arg0, %c0_i32, %c0_i32_0 : i32, i32, i32
  }
  func.func @transform_3(%arg0: i32) -> (i32, i32, i32) {
    %c0_i32 = arith.constant 0 : i32
    %c0_i32_0 = arith.constant 0 : i32
    %c0_i32_1 = arith.constant 0 : i32
    return %arg0, %c0_i32, %c0_i32_0 : i32, i32, i32
  }
  func.func @transform_4(%arg0: i32) -> (i32, i32) {
    %c0_i32 = arith.constant 0 : i32
    %c0_i32_0 = arith.constant 0 : i32
    return %c0_i32, %arg0 : i32, i32
  }
  func.func @transform_5(%arg0: i32) -> (i32, i32, i32) {
    %c0_i32 = arith.constant 0 : i32
    %c0_i32_0 = arith.constant 0 : i32
    %c0_i32_1 = arith.constant 0 : i32
    return %arg0, %c0_i32, %c0_i32_0 : i32, i32, i32
  }
}

module attributes {stable_mosaic.version = 11 : i64} {
  func.func @_greedy_decoder_kernel(%arg0: memref<2x8x128xf32, #tpu.memory_space<vmem>>, %arg1: memref<128x128xf32, #tpu.memory_space<vmem>>, %arg2: memref<1x128xf32, #tpu.memory_space<vmem>>, %arg3: memref<8x128xbf16, #tpu.memory_space<vmem>>, %arg4: memref<2x128x128xbf16, #tpu.memory_space<vmem>>, %arg5: memref<2x128x128xbf16, #tpu.memory_space<vmem>>, %arg6: memref<2x1x128xf32, #tpu.memory_space<vmem>>, %arg7: memref<128x128xbf16, #tpu.memory_space<vmem>>, %arg8: memref<1x128xf32, #tpu.memory_space<vmem>>, %arg9: memref<128x128xbf16, #tpu.memory_space<vmem>>, %arg10: memref<6x8x128xf32, #tpu.memory_space<vmem>>) attributes {dimension_semantics = [], scalar_prefetch = 0 : i64, scratch_operands = 0 : i64, tpu.core_type = #tpu.core_type<tc>} {
    %c0 = arith.constant 0 : index
    %c0_0 = arith.constant 0 : index
    %0 = vector.load %arg1[%c0, %c0_0] : memref<128x128xf32, #tpu.memory_space<vmem>>, vector<128x128xf32>
    %c0_1 = arith.constant 0 : index
    %c0_2 = arith.constant 0 : index
    %1 = vector.load %arg2[%c0_1, %c0_2] : memref<1x128xf32, #tpu.memory_space<vmem>>, vector<1x128xf32>
    %c0_3 = arith.constant 0 : index
    %c0_4 = arith.constant 0 : index
    %2 = vector.load %arg7[%c0_3, %c0_4] : memref<128x128xbf16, #tpu.memory_space<vmem>>, vector<128x128xbf16>
    %c0_5 = arith.constant 0 : index
    %c0_6 = arith.constant 0 : index
    %3 = vector.load %arg8[%c0_5, %c0_6] : memref<1x128xf32, #tpu.memory_space<vmem>>, vector<1x128xf32>
    %c0_7 = arith.constant 0 : index
    %c0_8 = arith.constant 0 : index
    %4 = vector.load %arg9[%c0_7, %c0_8] : memref<128x128xbf16, #tpu.memory_space<vmem>>, vector<128x128xbf16>
    %c0_9 = arith.constant 0 : index
    %c0_10 = arith.constant 0 : index
    %c0_11 = arith.constant 0 : index
    %5 = vector.load %arg4[%c0_9, %c0_10, %c0_11] : memref<2x128x128xbf16, #tpu.memory_space<vmem>>, vector<1x128x128xbf16>
    %6 = vector.shape_cast %5 : vector<1x128x128xbf16> to vector<128x128xbf16>
    %c1 = arith.constant 1 : index
    %c0_12 = arith.constant 0 : index
    %c0_13 = arith.constant 0 : index
    %7 = vector.load %arg4[%c1, %c0_12, %c0_13] : memref<2x128x128xbf16, #tpu.memory_space<vmem>>, vector<1x128x128xbf16>
    %8 = vector.shape_cast %7 : vector<1x128x128xbf16> to vector<128x128xbf16>
    %c0_14 = arith.constant 0 : index
    %c0_15 = arith.constant 0 : index
    %c0_16 = arith.constant 0 : index
    %9 = vector.load %arg5[%c0_14, %c0_15, %c0_16] : memref<2x128x128xbf16, #tpu.memory_space<vmem>>, vector<1x128x128xbf16>
    %10 = vector.shape_cast %9 : vector<1x128x128xbf16> to vector<128x128xbf16>
    %c1_17 = arith.constant 1 : index
    %c0_18 = arith.constant 0 : index
    %c0_19 = arith.constant 0 : index
    %11 = vector.load %arg5[%c1_17, %c0_18, %c0_19] : memref<2x128x128xbf16, #tpu.memory_space<vmem>>, vector<1x128x128xbf16>
    %12 = vector.shape_cast %11 : vector<1x128x128xbf16> to vector<128x128xbf16>
    %c0_20 = arith.constant 0 : index
    %c0_21 = arith.constant 0 : index
    %c0_22 = arith.constant 0 : index
    %13 = vector.load %arg6[%c0_20, %c0_21, %c0_22] : memref<2x1x128xf32, #tpu.memory_space<vmem>>, vector<1x1x128xf32>
    %14 = vector.shape_cast %13 : vector<1x1x128xf32> to vector<1x128xf32>
    %c1_23 = arith.constant 1 : index
    %c0_24 = arith.constant 0 : index
    %c0_25 = arith.constant 0 : index
    %15 = vector.load %arg6[%c1_23, %c0_24, %c0_25] : memref<2x1x128xf32, #tpu.memory_space<vmem>>, vector<1x1x128xf32>
    %16 = vector.shape_cast %15 : vector<1x1x128xf32> to vector<1x128xf32>
    %c0_26 = arith.constant 0 : index
    %c0_27 = arith.constant 0 : index
    %c0_28 = arith.constant 0 : index
    %17 = vector.load %arg0[%c0_26, %c0_27, %c0_28] : memref<2x8x128xf32, #tpu.memory_space<vmem>>, vector<1x8x128xf32>
    %18 = vector.shape_cast %17 : vector<1x8x128xf32> to vector<8x128xf32>
    %cst = arith.constant dense<0.000000e+00> : vector<8x128xf32>
    %19 = tpu.matmul %18, %0, %cst {dimension_numbers = #tpu.dot_dimension_numbers<[1], [0], [0], [1], [0, 0, 1, 1], [], []>} : vector<8x128xf32>, vector<128x128xf32>, vector<8x128xf32> -> vector<8x128xf32>
    %20 = vector.broadcast %1 : vector<1x128xf32> to vector<8x128xf32>
    %21 = arith.addf %19, %20 : vector<8x128xf32>
    %c1_29 = arith.constant 1 : index
    %c0_30 = arith.constant 0 : index
    %c0_31 = arith.constant 0 : index
    %22 = vector.load %arg0[%c1_29, %c0_30, %c0_31] : memref<2x8x128xf32, #tpu.memory_space<vmem>>, vector<1x8x128xf32>
    %23 = vector.shape_cast %22 : vector<1x8x128xf32> to vector<8x128xf32>
    %cst_32 = arith.constant dense<0.000000e+00> : vector<8x128xf32>
    %24 = tpu.matmul %23, %0, %cst_32 {dimension_numbers = #tpu.dot_dimension_numbers<[1], [0], [0], [1], [0, 0, 1, 1], [], []>} : vector<8x128xf32>, vector<128x128xf32>, vector<8x128xf32> -> vector<8x128xf32>
    %25 = vector.broadcast %1 : vector<1x128xf32> to vector<8x128xf32>
    %26 = arith.addf %24, %25 : vector<8x128xf32>
    %27 = tpu.iota {dimensions = array<i32: 1>} : vector<8x128xi32>
    %c24_i32 = arith.constant 24 : i32
    %28 = vector.broadcast %c24_i32 : i32 to vector<8x128xi32>
    %29 = arith.cmpi slt, %27, %28 : vector<8x128xi32>
    %cst_33 = arith.constant 0.000000e+00 : f32
    %cst_34 = arith.constant -1.000000e+30 : f32
    %30 = vector.broadcast %cst_33 : f32 to vector<8x128xf32>
    %31 = vector.broadcast %cst_34 : f32 to vector<8x128xf32>
    %32 = arith.select %29, %30, %31 : vector<8x128xi1>, vector<8x128xf32>
    %c0_35 = arith.constant 0 : index
    %c0_36 = arith.constant 0 : index
    %33 = vector.load %arg3[%c0_35, %c0_36] : memref<8x128xbf16, #tpu.memory_space<vmem>>, vector<8x128xbf16>
    %c0_i32 = arith.constant 0 : i32
    %cst_37 = arith.constant dense<0.000000e+00> : vector<8x128xf32>
    %34 = tpu.matmul %33, %6, %cst_37 {dimension_numbers = #tpu.dot_dimension_numbers<[1], [0], [0], [1], [0, 0, 1, 1], [], []>} : vector<8x128xbf16>, vector<128x128xbf16>, vector<8x128xf32> -> vector<8x128xf32>
    %35 = arith.truncf %21 : vector<8x128xf32> to vector<8x128xbf16>
    %cst_38 = arith.constant dense<0.000000e+00> : vector<8x128xf32>
    %36 = tpu.matmul %35, %10, %cst_38 {dimension_numbers = #tpu.dot_dimension_numbers<[1], [0], [0], [1], [0, 0, 1, 1], [], []>} : vector<8x128xbf16>, vector<128x128xbf16>, vector<8x128xf32> -> vector<8x128xf32>
    %37 = arith.addf %34, %36 : vector<8x128xf32>
    %38 = vector.broadcast %14 : vector<1x128xf32> to vector<8x128xf32>
    %39 = arith.addf %37, %38 : vector<8x128xf32>
    %40 = math.tanh %39 : vector<8x128xf32>
    %41 = arith.truncf %40 : vector<8x128xf32> to vector<8x128xbf16>
    %cst_39 = arith.constant dense<0.000000e+00> : vector<8x128xf32>
    %42 = tpu.matmul %41, %8, %cst_39 {dimension_numbers = #tpu.dot_dimension_numbers<[1], [0], [0], [1], [0, 0, 1, 1], [], []>} : vector<8x128xbf16>, vector<128x128xbf16>, vector<8x128xf32> -> vector<8x128xf32>
    %43 = arith.truncf %26 : vector<8x128xf32> to vector<8x128xbf16>
    %cst_40 = arith.constant dense<0.000000e+00> : vector<8x128xf32>
    %44 = tpu.matmul %43, %12, %cst_40 {dimension_numbers = #tpu.dot_dimension_numbers<[1], [0], [0], [1], [0, 0, 1, 1], [], []>} : vector<8x128xbf16>, vector<128x128xbf16>, vector<8x128xf32> -> vector<8x128xf32>
    %45 = arith.addf %42, %44 : vector<8x128xf32>
    %46 = vector.broadcast %16 : vector<1x128xf32> to vector<8x128xf32>
    %47 = arith.addf %45, %46 : vector<8x128xf32>
    %48 = math.tanh %47 : vector<8x128xf32>
    %49 = arith.truncf %48 : vector<8x128xf32> to vector<8x128xbf16>
    %cst_41 = arith.constant dense<0.000000e+00> : vector<8x128xf32>
    %50 = tpu.matmul %49, %2, %cst_41 {dimension_numbers = #tpu.dot_dimension_numbers<[1], [0], [0], [1], [0, 0, 1, 1], [], []>} : vector<8x128xbf16>, vector<128x128xbf16>, vector<8x128xf32> -> vector<8x128xf32>
    %51 = vector.broadcast %3 : vector<1x128xf32> to vector<8x128xf32>
    %52 = arith.addf %50, %51 : vector<8x128xf32>
    %53 = arith.index_cast %c0_i32 : i32 to index
    %c0_42 = arith.constant 0 : index
    %c0_43 = arith.constant 0 : index
    %54 = vector.load %arg10[%53, %c0_42, %c0_43] : memref<6x8x128xf32, #tpu.memory_space<vmem>>, vector<1x8x128xf32>
    %55 = vector.shape_cast %54 : vector<1x8x128xf32> to vector<8x128xf32>
    %56 = vector.shape_cast %52 : vector<8x128xf32> to vector<1x8x128xf32>
    tpu.vector_store %arg10[%53, %c0_42, %c0_43], %56 {strides = array<i32>} : memref<6x8x128xf32, #tpu.memory_space<vmem>>, vector<1x8x128xf32>,
    %57 = arith.addf %52, %32 : vector<8x128xf32>
    %cst_44 = arith.constant dense<0xFF800000> : vector<8xf32>
    %58 = vector.multi_reduction <maximumf>, %57, %cst_44 [1] : vector<8x128xf32> to vector<8xf32>
    %59 = vector.shape_cast %58 : vector<8xf32> to vector<8x1xf32>
    %60 = vector.broadcast %59 : vector<8x1xf32> to vector<8x128xf32>
    %61 = arith.cmpf oeq, %57, %60 : vector<8x128xf32>
    %c128_i32 = arith.constant 128 : i32
    %62 = vector.broadcast %c128_i32 : i32 to vector<8x128xi32>
    %63 = arith.select %61, %27, %62 : vector<8x128xi1>, vector<8x128xi32>
    %cst_45 = arith.constant dense<2147483647> : vector<8xi32>
    %64 = vector.multi_reduction <minsi>, %63, %cst_45 [1] : vector<8x128xi32> to vector<8xi32>
    %65 = vector.shape_cast %64 : vector<8xi32> to vector<8x1xi32>
    %66 = vector.broadcast %65 : vector<8x1xi32> to vector<8x128xi32>
    %67 = arith.cmpi eq, %27, %66 : vector<8x128xi32>
    %68 = arith.extui %67 : vector<8x128xi1> to vector<8x128xi32>
    %69 = arith.sitofp %68 : vector<8x128xi32> to vector<8x128xf32>
    %70 = arith.truncf %69 : vector<8x128xf32> to vector<8x128xbf16>
    %cst_46 = arith.constant dense<0.000000e+00> : vector<8x128xf32>
    %71 = tpu.matmul %70, %4, %cst_46 {dimension_numbers = #tpu.dot_dimension_numbers<[1], [0], [0], [1], [0, 0, 1, 1], [], []>} : vector<8x128xbf16>, vector<128x128xbf16>, vector<8x128xf32> -> vector<8x128xf32>
    %72 = arith.truncf %71 : vector<8x128xf32> to vector<8x128xbf16>
    %c1_i32 = arith.constant 1 : i32
    %cst_47 = arith.constant dense<0.000000e+00> : vector<8x128xf32>
    %73 = tpu.matmul %72, %6, %cst_47 {dimension_numbers = #tpu.dot_dimension_numbers<[1], [0], [0], [1], [0, 0, 1, 1], [], []>} : vector<8x128xbf16>, vector<128x128xbf16>, vector<8x128xf32> -> vector<8x128xf32>
    %74 = arith.truncf %40 : vector<8x128xf32> to vector<8x128xbf16>
    %cst_48 = arith.constant dense<0.000000e+00> : vector<8x128xf32>
    %75 = tpu.matmul %74, %10, %cst_48 {dimension_numbers = #tpu.dot_dimension_numbers<[1], [0], [0], [1], [0, 0, 1, 1], [], []>} : vector<8x128xbf16>, vector<128x128xbf16>, vector<8x128xf32> -> vector<8x128xf32>
    %76 = arith.addf %73, %75 : vector<8x128xf32>
    %77 = vector.broadcast %14 : vector<1x128xf32> to vector<8x128xf32>
    %78 = arith.addf %76, %77 : vector<8x128xf32>
    %79 = math.tanh %78 : vector<8x128xf32>
    %80 = arith.truncf %79 : vector<8x128xf32> to vector<8x128xbf16>
    %cst_49 = arith.constant dense<0.000000e+00> : vector<8x128xf32>
    %81 = tpu.matmul %80, %8, %cst_49 {dimension_numbers = #tpu.dot_dimension_numbers<[1], [0], [0], [1], [0, 0, 1, 1], [], []>} : vector<8x128xbf16>, vector<128x128xbf16>, vector<8x128xf32> -> vector<8x128xf32>
    %82 = arith.truncf %48 : vector<8x128xf32> to vector<8x128xbf16>
    %cst_50 = arith.constant dense<0.000000e+00> : vector<8x128xf32>
    %83 = tpu.matmul %82, %12, %cst_50 {dimension_numbers = #tpu.dot_dimension_numbers<[1], [0], [0], [1], [0, 0, 1, 1], [], []>} : vector<8x128xbf16>, vector<128x128xbf16>, vector<8x128xf32> -> vector<8x128xf32>
    %84 = arith.addf %81, %83 : vector<8x128xf32>
    %85 = vector.broadcast %16 : vector<1x128xf32> to vector<8x128xf32>
    %86 = arith.addf %84, %85 : vector<8x128xf32>
    %87 = math.tanh %86 : vector<8x128xf32>
    %88 = arith.truncf %87 : vector<8x128xf32> to vector<8x128xbf16>
    %cst_51 = arith.constant dense<0.000000e+00> : vector<8x128xf32>
    %89 = tpu.matmul %88, %2, %cst_51 {dimension_numbers = #tpu.dot_dimension_numbers<[1], [0], [0], [1], [0, 0, 1, 1], [], []>} : vector<8x128xbf16>, vector<128x128xbf16>, vector<8x128xf32> -> vector<8x128xf32>
    %90 = vector.broadcast %3 : vector<1x128xf32> to vector<8x128xf32>
    %91 = arith.addf %89, %90 : vector<8x128xf32>
    %92 = arith.index_cast %c1_i32 : i32 to index
    %c0_52 = arith.constant 0 : index
    %c0_53 = arith.constant 0 : index
    %93 = vector.load %arg10[%92, %c0_52, %c0_53] : memref<6x8x128xf32, #tpu.memory_space<vmem>>, vector<1x8x128xf32>
    %94 = vector.shape_cast %93 : vector<1x8x128xf32> to vector<8x128xf32>
    %95 = vector.shape_cast %91 : vector<8x128xf32> to vector<1x8x128xf32>
    tpu.vector_store %arg10[%92, %c0_52, %c0_53], %95 {strides = array<i32>} : memref<6x8x128xf32, #tpu.memory_space<vmem>>, vector<1x8x128xf32>,
    %96 = arith.addf %91, %32 : vector<8x128xf32>
    %cst_54 = arith.constant dense<0xFF800000> : vector<8xf32>
    %97 = vector.multi_reduction <maximumf>, %96, %cst_54 [1] : vector<8x128xf32> to vector<8xf32>
    %98 = vector.shape_cast %97 : vector<8xf32> to vector<8x1xf32>
    %99 = vector.broadcast %98 : vector<8x1xf32> to vector<8x128xf32>
    %100 = arith.cmpf oeq, %96, %99 : vector<8x128xf32>
    %c128_i32_55 = arith.constant 128 : i32
    %101 = vector.broadcast %c128_i32_55 : i32 to vector<8x128xi32>
    %102 = arith.select %100, %27, %101 : vector<8x128xi1>, vector<8x128xi32>
    %cst_56 = arith.constant dense<2147483647> : vector<8xi32>
    %103 = vector.multi_reduction <minsi>, %102, %cst_56 [1] : vector<8x128xi32> to vector<8xi32>
    %104 = vector.shape_cast %103 : vector<8xi32> to vector<8x1xi32>
    %105 = vector.broadcast %104 : vector<8x1xi32> to vector<8x128xi32>
    %106 = arith.cmpi eq, %27, %105 : vector<8x128xi32>
    %107 = arith.extui %106 : vector<8x128xi1> to vector<8x128xi32>
    %108 = arith.sitofp %107 : vector<8x128xi32> to vector<8x128xf32>
    %109 = arith.truncf %108 : vector<8x128xf32> to vector<8x128xbf16>
    %cst_57 = arith.constant dense<0.000000e+00> : vector<8x128xf32>
    %110 = tpu.matmul %109, %4, %cst_57 {dimension_numbers = #tpu.dot_dimension_numbers<[1], [0], [0], [1], [0, 0, 1, 1], [], []>} : vector<8x128xbf16>, vector<128x128xbf16>, vector<8x128xf32> -> vector<8x128xf32>
    %111 = arith.truncf %110 : vector<8x128xf32> to vector<8x128xbf16>
    %c2_i32 = arith.constant 2 : i32
    %cst_58 = arith.constant dense<0.000000e+00> : vector<8x128xf32>
    %112 = tpu.matmul %111, %6, %cst_58 {dimension_numbers = #tpu.dot_dimension_numbers<[1], [0], [0], [1], [0, 0, 1, 1], [], []>} : vector<8x128xbf16>, vector<128x128xbf16>, vector<8x128xf32> -> vector<8x128xf32>
    %113 = arith.truncf %79 : vector<8x128xf32> to vector<8x128xbf16>
    %cst_59 = arith.constant dense<0.000000e+00> : vector<8x128xf32>
    %114 = tpu.matmul %113, %10, %cst_59 {dimension_numbers = #tpu.dot_dimension_numbers<[1], [0], [0], [1], [0, 0, 1, 1], [], []>} : vector<8x128xbf16>, vector<128x128xbf16>, vector<8x128xf32> -> vector<8x128xf32>
    %115 = arith.addf %112, %114 : vector<8x128xf32>
    %116 = vector.broadcast %14 : vector<1x128xf32> to vector<8x128xf32>
    %117 = arith.addf %115, %116 : vector<8x128xf32>
    %118 = math.tanh %117 : vector<8x128xf32>
    %119 = arith.truncf %118 : vector<8x128xf32> to vector<8x128xbf16>
    %cst_60 = arith.constant dense<0.000000e+00> : vector<8x128xf32>
    %120 = tpu.matmul %119, %8, %cst_60 {dimension_numbers = #tpu.dot_dimension_numbers<[1], [0], [0], [1], [0, 0, 1, 1], [], []>} : vector<8x128xbf16>, vector<128x128xbf16>, vector<8x128xf32> -> vector<8x128xf32>
    %121 = arith.truncf %87 : vector<8x128xf32> to vector<8x128xbf16>
    %cst_61 = arith.constant dense<0.000000e+00> : vector<8x128xf32>
    %122 = tpu.matmul %121, %12, %cst_61 {dimension_numbers = #tpu.dot_dimension_numbers<[1], [0], [0], [1], [0, 0, 1, 1], [], []>} : vector<8x128xbf16>, vector<128x128xbf16>, vector<8x128xf32> -> vector<8x128xf32>
    %123 = arith.addf %120, %122 : vector<8x128xf32>
    %124 = vector.broadcast %16 : vector<1x128xf32> to vector<8x128xf32>
    %125 = arith.addf %123, %124 : vector<8x128xf32>
    %126 = math.tanh %125 : vector<8x128xf32>
    %127 = arith.truncf %126 : vector<8x128xf32> to vector<8x128xbf16>
    %cst_62 = arith.constant dense<0.000000e+00> : vector<8x128xf32>
    %128 = tpu.matmul %127, %2, %cst_62 {dimension_numbers = #tpu.dot_dimension_numbers<[1], [0], [0], [1], [0, 0, 1, 1], [], []>} : vector<8x128xbf16>, vector<128x128xbf16>, vector<8x128xf32> -> vector<8x128xf32>
    %129 = vector.broadcast %3 : vector<1x128xf32> to vector<8x128xf32>
    %130 = arith.addf %128, %129 : vector<8x128xf32>
    %131 = arith.index_cast %c2_i32 : i32 to index
    %c0_63 = arith.constant 0 : index
    %c0_64 = arith.constant 0 : index
    %132 = vector.load %arg10[%131, %c0_63, %c0_64] : memref<6x8x128xf32, #tpu.memory_space<vmem>>, vector<1x8x128xf32>
    %133 = vector.shape_cast %132 : vector<1x8x128xf32> to vector<8x128xf32>
    %134 = vector.shape_cast %130 : vector<8x128xf32> to vector<1x8x128xf32>
    tpu.vector_store %arg10[%131, %c0_63, %c0_64], %134 {strides = array<i32>} : memref<6x8x128xf32, #tpu.memory_space<vmem>>, vector<1x8x128xf32>,
    %135 = arith.addf %130, %32 : vector<8x128xf32>
    %cst_65 = arith.constant dense<0xFF800000> : vector<8xf32>
    %136 = vector.multi_reduction <maximumf>, %135, %cst_65 [1] : vector<8x128xf32> to vector<8xf32>
    %137 = vector.shape_cast %136 : vector<8xf32> to vector<8x1xf32>
    %138 = vector.broadcast %137 : vector<8x1xf32> to vector<8x128xf32>
    %139 = arith.cmpf oeq, %135, %138 : vector<8x128xf32>
    %c128_i32_66 = arith.constant 128 : i32
    %140 = vector.broadcast %c128_i32_66 : i32 to vector<8x128xi32>
    %141 = arith.select %139, %27, %140 : vector<8x128xi1>, vector<8x128xi32>
    %cst_67 = arith.constant dense<2147483647> : vector<8xi32>
    %142 = vector.multi_reduction <minsi>, %141, %cst_67 [1] : vector<8x128xi32> to vector<8xi32>
    %143 = vector.shape_cast %142 : vector<8xi32> to vector<8x1xi32>
    %144 = vector.broadcast %143 : vector<8x1xi32> to vector<8x128xi32>
    %145 = arith.cmpi eq, %27, %144 : vector<8x128xi32>
    %146 = arith.extui %145 : vector<8x128xi1> to vector<8x128xi32>
    %147 = arith.sitofp %146 : vector<8x128xi32> to vector<8x128xf32>
    %148 = arith.truncf %147 : vector<8x128xf32> to vector<8x128xbf16>
    %cst_68 = arith.constant dense<0.000000e+00> : vector<8x128xf32>
    %149 = tpu.matmul %148, %4, %cst_68 {dimension_numbers = #tpu.dot_dimension_numbers<[1], [0], [0], [1], [0, 0, 1, 1], [], []>} : vector<8x128xbf16>, vector<128x128xbf16>, vector<8x128xf32> -> vector<8x128xf32>
    %150 = arith.truncf %149 : vector<8x128xf32> to vector<8x128xbf16>
    %c3_i32 = arith.constant 3 : i32
    %cst_69 = arith.constant dense<0.000000e+00> : vector<8x128xf32>
    %151 = tpu.matmul %150, %6, %cst_69 {dimension_numbers = #tpu.dot_dimension_numbers<[1], [0], [0], [1], [0, 0, 1, 1], [], []>} : vector<8x128xbf16>, vector<128x128xbf16>, vector<8x128xf32> -> vector<8x128xf32>
    %152 = arith.truncf %118 : vector<8x128xf32> to vector<8x128xbf16>
    %cst_70 = arith.constant dense<0.000000e+00> : vector<8x128xf32>
    %153 = tpu.matmul %152, %10, %cst_70 {dimension_numbers = #tpu.dot_dimension_numbers<[1], [0], [0], [1], [0, 0, 1, 1], [], []>} : vector<8x128xbf16>, vector<128x128xbf16>, vector<8x128xf32> -> vector<8x128xf32>
    %154 = arith.addf %151, %153 : vector<8x128xf32>
    %155 = vector.broadcast %14 : vector<1x128xf32> to vector<8x128xf32>
    %156 = arith.addf %154, %155 : vector<8x128xf32>
    %157 = math.tanh %156 : vector<8x128xf32>
    %158 = arith.truncf %157 : vector<8x128xf32> to vector<8x128xbf16>
    %cst_71 = arith.constant dense<0.000000e+00> : vector<8x128xf32>
    %159 = tpu.matmul %158, %8, %cst_71 {dimension_numbers = #tpu.dot_dimension_numbers<[1], [0], [0], [1], [0, 0, 1, 1], [], []>} : vector<8x128xbf16>, vector<128x128xbf16>, vector<8x128xf32> -> vector<8x128xf32>
    %160 = arith.truncf %126 : vector<8x128xf32> to vector<8x128xbf16>
    %cst_72 = arith.constant dense<0.000000e+00> : vector<8x128xf32>
    %161 = tpu.matmul %160, %12, %cst_72 {dimension_numbers = #tpu.dot_dimension_numbers<[1], [0], [0], [1], [0, 0, 1, 1], [], []>} : vector<8x128xbf16>, vector<128x128xbf16>, vector<8x128xf32> -> vector<8x128xf32>
    %162 = arith.addf %159, %161 : vector<8x128xf32>
    %163 = vector.broadcast %16 : vector<1x128xf32> to vector<8x128xf32>
    %164 = arith.addf %162, %163 : vector<8x128xf32>
    %165 = math.tanh %164 : vector<8x128xf32>
    %166 = arith.truncf %165 : vector<8x128xf32> to vector<8x128xbf16>
    %cst_73 = arith.constant dense<0.000000e+00> : vector<8x128xf32>
    %167 = tpu.matmul %166, %2, %cst_73 {dimension_numbers = #tpu.dot_dimension_numbers<[1], [0], [0], [1], [0, 0, 1, 1], [], []>} : vector<8x128xbf16>, vector<128x128xbf16>, vector<8x128xf32> -> vector<8x128xf32>
    %168 = vector.broadcast %3 : vector<1x128xf32> to vector<8x128xf32>
    %169 = arith.addf %167, %168 : vector<8x128xf32>
    %170 = arith.index_cast %c3_i32 : i32 to index
    %c0_74 = arith.constant 0 : index
    %c0_75 = arith.constant 0 : index
    %171 = vector.load %arg10[%170, %c0_74, %c0_75] : memref<6x8x128xf32, #tpu.memory_space<vmem>>, vector<1x8x128xf32>
    %172 = vector.shape_cast %171 : vector<1x8x128xf32> to vector<8x128xf32>
    %173 = vector.shape_cast %169 : vector<8x128xf32> to vector<1x8x128xf32>
    tpu.vector_store %arg10[%170, %c0_74, %c0_75], %173 {strides = array<i32>} : memref<6x8x128xf32, #tpu.memory_space<vmem>>, vector<1x8x128xf32>,
    %174 = arith.addf %169, %32 : vector<8x128xf32>
    %cst_76 = arith.constant dense<0xFF800000> : vector<8xf32>
    %175 = vector.multi_reduction <maximumf>, %174, %cst_76 [1] : vector<8x128xf32> to vector<8xf32>
    %176 = vector.shape_cast %175 : vector<8xf32> to vector<8x1xf32>
    %177 = vector.broadcast %176 : vector<8x1xf32> to vector<8x128xf32>
    %178 = arith.cmpf oeq, %174, %177 : vector<8x128xf32>
    %c128_i32_77 = arith.constant 128 : i32
    %179 = vector.broadcast %c128_i32_77 : i32 to vector<8x128xi32>
    %180 = arith.select %178, %27, %179 : vector<8x128xi1>, vector<8x128xi32>
    %cst_78 = arith.constant dense<2147483647> : vector<8xi32>
    %181 = vector.multi_reduction <minsi>, %180, %cst_78 [1] : vector<8x128xi32> to vector<8xi32>
    %182 = vector.shape_cast %181 : vector<8xi32> to vector<8x1xi32>
    %183 = vector.broadcast %182 : vector<8x1xi32> to vector<8x128xi32>
    %184 = arith.cmpi eq, %27, %183 : vector<8x128xi32>
    %185 = arith.extui %184 : vector<8x128xi1> to vector<8x128xi32>
    %186 = arith.sitofp %185 : vector<8x128xi32> to vector<8x128xf32>
    %187 = arith.truncf %186 : vector<8x128xf32> to vector<8x128xbf16>
    %cst_79 = arith.constant dense<0.000000e+00> : vector<8x128xf32>
    %188 = tpu.matmul %187, %4, %cst_79 {dimension_numbers = #tpu.dot_dimension_numbers<[1], [0], [0], [1], [0, 0, 1, 1], [], []>} : vector<8x128xbf16>, vector<128x128xbf16>, vector<8x128xf32> -> vector<8x128xf32>
    %189 = arith.truncf %188 : vector<8x128xf32> to vector<8x128xbf16>
    %c4_i32 = arith.constant 4 : i32
    %cst_80 = arith.constant dense<0.000000e+00> : vector<8x128xf32>
    %190 = tpu.matmul %189, %6, %cst_80 {dimension_numbers = #tpu.dot_dimension_numbers<[1], [0], [0], [1], [0, 0, 1, 1], [], []>} : vector<8x128xbf16>, vector<128x128xbf16>, vector<8x128xf32> -> vector<8x128xf32>
    %191 = arith.truncf %157 : vector<8x128xf32> to vector<8x128xbf16>
    %cst_81 = arith.constant dense<0.000000e+00> : vector<8x128xf32>
    %192 = tpu.matmul %191, %10, %cst_81 {dimension_numbers = #tpu.dot_dimension_numbers<[1], [0], [0], [1], [0, 0, 1, 1], [], []>} : vector<8x128xbf16>, vector<128x128xbf16>, vector<8x128xf32> -> vector<8x128xf32>
    %193 = arith.addf %190, %192 : vector<8x128xf32>
    %194 = vector.broadcast %14 : vector<1x128xf32> to vector<8x128xf32>
    %195 = arith.addf %193, %194 : vector<8x128xf32>
    %196 = math.tanh %195 : vector<8x128xf32>
    %197 = arith.truncf %196 : vector<8x128xf32> to vector<8x128xbf16>
    %cst_82 = arith.constant dense<0.000000e+00> : vector<8x128xf32>
    %198 = tpu.matmul %197, %8, %cst_82 {dimension_numbers = #tpu.dot_dimension_numbers<[1], [0], [0], [1], [0, 0, 1, 1], [], []>} : vector<8x128xbf16>, vector<128x128xbf16>, vector<8x128xf32> -> vector<8x128xf32>
    %199 = arith.truncf %165 : vector<8x128xf32> to vector<8x128xbf16>
    %cst_83 = arith.constant dense<0.000000e+00> : vector<8x128xf32>
    %200 = tpu.matmul %199, %12, %cst_83 {dimension_numbers = #tpu.dot_dimension_numbers<[1], [0], [0], [1], [0, 0, 1, 1], [], []>} : vector<8x128xbf16>, vector<128x128xbf16>, vector<8x128xf32> -> vector<8x128xf32>
    %201 = arith.addf %198, %200 : vector<8x128xf32>
    %202 = vector.broadcast %16 : vector<1x128xf32> to vector<8x128xf32>
    %203 = arith.addf %201, %202 : vector<8x128xf32>
    %204 = math.tanh %203 : vector<8x128xf32>
    %205 = arith.truncf %204 : vector<8x128xf32> to vector<8x128xbf16>
    %cst_84 = arith.constant dense<0.000000e+00> : vector<8x128xf32>
    %206 = tpu.matmul %205, %2, %cst_84 {dimension_numbers = #tpu.dot_dimension_numbers<[1], [0], [0], [1], [0, 0, 1, 1], [], []>} : vector<8x128xbf16>, vector<128x128xbf16>, vector<8x128xf32> -> vector<8x128xf32>
    %207 = vector.broadcast %3 : vector<1x128xf32> to vector<8x128xf32>
    %208 = arith.addf %206, %207 : vector<8x128xf32>
    %209 = arith.index_cast %c4_i32 : i32 to index
    %c0_85 = arith.constant 0 : index
    %c0_86 = arith.constant 0 : index
    %210 = vector.load %arg10[%209, %c0_85, %c0_86] : memref<6x8x128xf32, #tpu.memory_space<vmem>>, vector<1x8x128xf32>
    %211 = vector.shape_cast %210 : vector<1x8x128xf32> to vector<8x128xf32>
    %212 = vector.shape_cast %208 : vector<8x128xf32> to vector<1x8x128xf32>
    tpu.vector_store %arg10[%209, %c0_85, %c0_86], %212 {strides = array<i32>} : memref<6x8x128xf32, #tpu.memory_space<vmem>>, vector<1x8x128xf32>,
    %213 = arith.addf %208, %32 : vector<8x128xf32>
    %cst_87 = arith.constant dense<0xFF800000> : vector<8xf32>
    %214 = vector.multi_reduction <maximumf>, %213, %cst_87 [1] : vector<8x128xf32> to vector<8xf32>
    %215 = vector.shape_cast %214 : vector<8xf32> to vector<8x1xf32>
    %216 = vector.broadcast %215 : vector<8x1xf32> to vector<8x128xf32>
    %217 = arith.cmpf oeq, %213, %216 : vector<8x128xf32>
    %c128_i32_88 = arith.constant 128 : i32
    %218 = vector.broadcast %c128_i32_88 : i32 to vector<8x128xi32>
    %219 = arith.select %217, %27, %218 : vector<8x128xi1>, vector<8x128xi32>
    %cst_89 = arith.constant dense<2147483647> : vector<8xi32>
    %220 = vector.multi_reduction <minsi>, %219, %cst_89 [1] : vector<8x128xi32> to vector<8xi32>
    %221 = vector.shape_cast %220 : vector<8xi32> to vector<8x1xi32>
    %222 = vector.broadcast %221 : vector<8x1xi32> to vector<8x128xi32>
    %223 = arith.cmpi eq, %27, %222 : vector<8x128xi32>
    %224 = arith.extui %223 : vector<8x128xi1> to vector<8x128xi32>
    %225 = arith.sitofp %224 : vector<8x128xi32> to vector<8x128xf32>
    %226 = arith.truncf %225 : vector<8x128xf32> to vector<8x128xbf16>
    %cst_90 = arith.constant dense<0.000000e+00> : vector<8x128xf32>
    %227 = tpu.matmul %226, %4, %cst_90 {dimension_numbers = #tpu.dot_dimension_numbers<[1], [0], [0], [1], [0, 0, 1, 1], [], []>} : vector<8x128xbf16>, vector<128x128xbf16>, vector<8x128xf32> -> vector<8x128xf32>
    %228 = arith.truncf %227 : vector<8x128xf32> to vector<8x128xbf16>
    %c5_i32 = arith.constant 5 : i32
    %cst_91 = arith.constant dense<0.000000e+00> : vector<8x128xf32>
    %229 = tpu.matmul %228, %6, %cst_91 {dimension_numbers = #tpu.dot_dimension_numbers<[1], [0], [0], [1], [0, 0, 1, 1], [], []>} : vector<8x128xbf16>, vector<128x128xbf16>, vector<8x128xf32> -> vector<8x128xf32>
    %230 = arith.truncf %196 : vector<8x128xf32> to vector<8x128xbf16>
    %cst_92 = arith.constant dense<0.000000e+00> : vector<8x128xf32>
    %231 = tpu.matmul %230, %10, %cst_92 {dimension_numbers = #tpu.dot_dimension_numbers<[1], [0], [0], [1], [0, 0, 1, 1], [], []>} : vector<8x128xbf16>, vector<128x128xbf16>, vector<8x128xf32> -> vector<8x128xf32>
    %232 = arith.addf %229, %231 : vector<8x128xf32>
    %233 = vector.broadcast %14 : vector<1x128xf32> to vector<8x128xf32>
    %234 = arith.addf %232, %233 : vector<8x128xf32>
    %235 = math.tanh %234 : vector<8x128xf32>
    %236 = arith.truncf %235 : vector<8x128xf32> to vector<8x128xbf16>
    %cst_93 = arith.constant dense<0.000000e+00> : vector<8x128xf32>
    %237 = tpu.matmul %236, %8, %cst_93 {dimension_numbers = #tpu.dot_dimension_numbers<[1], [0], [0], [1], [0, 0, 1, 1], [], []>} : vector<8x128xbf16>, vector<128x128xbf16>, vector<8x128xf32> -> vector<8x128xf32>
    %238 = arith.truncf %204 : vector<8x128xf32> to vector<8x128xbf16>
    %cst_94 = arith.constant dense<0.000000e+00> : vector<8x128xf32>
    %239 = tpu.matmul %238, %12, %cst_94 {dimension_numbers = #tpu.dot_dimension_numbers<[1], [0], [0], [1], [0, 0, 1, 1], [], []>} : vector<8x128xbf16>, vector<128x128xbf16>, vector<8x128xf32> -> vector<8x128xf32>
    %240 = arith.addf %237, %239 : vector<8x128xf32>
    %241 = vector.broadcast %16 : vector<1x128xf32> to vector<8x128xf32>
    %242 = arith.addf %240, %241 : vector<8x128xf32>
    %243 = math.tanh %242 : vector<8x128xf32>
    %244 = arith.truncf %243 : vector<8x128xf32> to vector<8x128xbf16>
    %cst_95 = arith.constant dense<0.000000e+00> : vector<8x128xf32>
    %245 = tpu.matmul %244, %2, %cst_95 {dimension_numbers = #tpu.dot_dimension_numbers<[1], [0], [0], [1], [0, 0, 1, 1], [], []>} : vector<8x128xbf16>, vector<128x128xbf16>, vector<8x128xf32> -> vector<8x128xf32>
    %246 = vector.broadcast %3 : vector<1x128xf32> to vector<8x128xf32>
    %247 = arith.addf %245, %246 : vector<8x128xf32>
    %248 = arith.index_cast %c5_i32 : i32 to index
    %c0_96 = arith.constant 0 : index
    %c0_97 = arith.constant 0 : index
    %249 = vector.load %arg10[%248, %c0_96, %c0_97] : memref<6x8x128xf32, #tpu.memory_space<vmem>>, vector<1x8x128xf32>
    %250 = vector.shape_cast %249 : vector<1x8x128xf32> to vector<8x128xf32>
    %251 = vector.shape_cast %247 : vector<8x128xf32> to vector<1x8x128xf32>
    tpu.vector_store %arg10[%248, %c0_96, %c0_97], %251 {strides = array<i32>} : memref<6x8x128xf32, #tpu.memory_space<vmem>>, vector<1x8x128xf32>,
    %252 = arith.addf %247, %32 : vector<8x128xf32>
    %cst_98 = arith.constant dense<0xFF800000> : vector<8xf32>
    %253 = vector.multi_reduction <maximumf>, %252, %cst_98 [1] : vector<8x128xf32> to vector<8xf32>
    %254 = vector.shape_cast %253 : vector<8xf32> to vector<8x1xf32>
    %255 = vector.broadcast %254 : vector<8x1xf32> to vector<8x128xf32>
    %256 = arith.cmpf oeq, %252, %255 : vector<8x128xf32>
    %c128_i32_99 = arith.constant 128 : i32
    %257 = vector.broadcast %c128_i32_99 : i32 to vector<8x128xi32>
    %258 = arith.select %256, %27, %257 : vector<8x128xi1>, vector<8x128xi32>
    %cst_100 = arith.constant dense<2147483647> : vector<8xi32>
    %259 = vector.multi_reduction <minsi>, %258, %cst_100 [1] : vector<8x128xi32> to vector<8xi32>
    %260 = vector.shape_cast %259 : vector<8xi32> to vector<8x1xi32>
    %261 = vector.broadcast %260 : vector<8x1xi32> to vector<8x128xi32>
    %262 = arith.cmpi eq, %27, %261 : vector<8x128xi32>
    %263 = arith.extui %262 : vector<8x128xi1> to vector<8x128xi32>
    %264 = arith.sitofp %263 : vector<8x128xi32> to vector<8x128xf32>
    %265 = arith.truncf %264 : vector<8x128xf32> to vector<8x128xbf16>
    %cst_101 = arith.constant dense<0.000000e+00> : vector<8x128xf32>
    %266 = tpu.matmul %265, %4, %cst_101 {dimension_numbers = #tpu.dot_dimension_numbers<[1], [0], [0], [1], [0, 0, 1, 1], [], []>} : vector<8x128xbf16>, vector<128x128xbf16>, vector<8x128xf32> -> vector<8x128xf32>
    %267 = arith.truncf %266 : vector<8x128xf32> to vector<8x128xbf16>
    %c6_i32 = arith.constant 6 : i32
    return
  }
}

</mosaic_0001>

<bundles_post_ra>
// kernel: forward.3
= control target key start
LH: loop header
LB: loop body
LE: loop exit
PB: predicated region body
PF: predicated region fallthrough
CT: control target
= control target key end

     0   :  { %s1577_s18 = smov 0   ;;  %s1579_s19 = smov 0   ;;  %s1869_s0 = inlined_call_operand.vmem [shape: bf16[64,128], index: 0, kind: input, shape index: {}]   ;;  %s1870_s1 = inlined_call_operand.vmem [shape: bf16[2,128,128], index: 1, kind: input, shape index: {}]   ;;  %s1871_s2 = inlined_call_operand.vmem [shape: bf16[2,128,128], index: 2, kind: input, shape index: {}]   ;;  %s1872_s3 = inlined_call_operand.vmem [shape: f32[2,1,128], index: 3, kind: input, shape index: {}]   ;;  %s1873_s4 = inlined_call_operand.vmem [shape: bf16[64,256], index: 4, kind: output, shape index: {0}]   ;;  %s1874_s5 = inlined_call_operand.vmem [shape: f32[2,8,128], index: 5, kind: output, shape index: {1}]  }
   0x1   :  { %s1581_s20 = smov 0  }
   0x2 LB: > { %s1590_s21 = sadd.s32 4294967295, %s1542_s20   ;;  %s1592_s22 = sadd.s32 1, %s1542_s20   ;;  %s1542_s20 = sphi %s1581_s20, %s1878_s20   ;;  %s1538_s19 = sphi %s1579_s19, %s1877_s19   ;;  %s1534_s18 = sphi %s1577_s18, %s1876_s18  }
   0x3   : > { %s119_s23 = ssub.s32 %s1542_s20, %s1592_s22  ;;  %s122_s24 = sadd.s32 1, %s1538_s19 }
   0x4   : > { %p120_p0 = scmp.eq.s32.totalorder %s119_s23, 0  ;;  %p132_p1 = scmp.ne.s32.totalorder %s1538_s19, %s1534_s18 }
   0x5   : > { %p133_p2 = scmp.eq.s32.totalorder %s1590_s21, 1  ;;  %p1139_p3 = scmp.ge.s32.totalorder %s1542_s20, 1 }
   0x6   : > { %s1600_s25 = scalar_select %p120_p0, %s1538_s19, %s122_s24  }
   0x7   : > { %p1602_p4 = por %p133_p2, %p132_p1  ;;  %p208_p5 = scmp.lt.s32.totalorder %s1542_s20, 3 }
   0x9   : > { %p209_p6 = pnand %p1139_p3, %p208_p5 }
   0xa   : > { %p247_p7 = scmp.lt.s32.totalorder (!%p209_p6), %s1590_s21, 1  ;;  %p457_p8 = scmp.eq.s32.totalorder (!%p209_p6), %s1590_s21, 0 }
   0xb   : > { %212 = sbr.rel (%p209_p6) target bundleno = 1778 (0x6f2), region = 36  ;;  %s238_s6 = sand.u32 (!%p209_p6), 1, %s1534_s18  }
   0xc   : > { %s1140_s7 = sshll.u32 (!%p209_p6), %s238_s6, 5 }
   0xd   : > { %s1729_s10 = scalar_lea.vmem (!%p209_p6), [#allocation3], %s1140_s7 }
  0x10   : > { %v1544_v0 = vmov 0.0   ;;  %v1496_v1 = vld [vmem:[%s1869_s0] sm:$0xff]   ;;  %s1612_s29 = scalar_select %p247_p7, %s1590_s21, 1  ;;  %vm1545_vm0 = vmmov 0   ;;  %v1497_v17 = vld [vmem:[%s1869_s0 + $0x8] sm:$0xff]   ;;  %v1500_v18 = vld [vmem:[%s1869_s0 + $0x10] sm:$0xff]  }
  0x11   : > { %1297 = vmatprep.subr.bf16.mxu1 %v1544_v0  ;;  %1313 = vmatprep.mubr.msk.bf16.mxu1 %vm1545_vm0, %v1544_v0  ;;  %v1501_v20 = vld [vmem:[%s1869_s0 + $0x18] sm:$0xff]   ;;  %v1546_v21 = vmov 0   ;;  %s458_s27 = scalar_select %p457_p8, 0, 7 }
  0x12   : > { %1289 = vmatprep.mubr.bf16.mxu0 %v1496_v1  ;;  %s1187_s30 = sshll.u32 %s1612_s29, 6  ;;  %s259_s24 = scalar_lea.vmem %s1872_s3, %s1612_s29 }
  0x13   : > { %s1620_s8 = scalar_lea.vmem %s1870_s1, %s1187_s30  ;;  %s1627_s11 = scalar_lea.vmem %s1871_s2, %s1187_s30  ;;  %v1146_v22 = vld [vmem:[%s259_s24] ss:$0 sm:$0xff] }
  0x14   : > { %v1484_v2 = vld [vmem:[%s1620_s8 + $0x38] sm:$0xff]   ;;  %v1485_v3 = vld [vmem:[%s1620_s8 + $0x30] sm:$0xff]   ;;  %v1486_v4 = vld [vmem:[%s1620_s8 + $0x28] sm:$0xff]   ;;  %s1159_s28 = sshll.u32 %s458_s27, 3 }
  0x15   : > { %1273 = vmatprep.subr.bf16.mxu0 %v1484_v2  ;;  %v1631_v5 = vld [vmem:[%s1627_s11 + $0x38] sm:$0xff]   ;;  %v1635_v6 = vld [vmem:[%s1627_s11 + $0x30] sm:$0xff]   ;;  %v1487_v7 = vld [vmem:[%s1620_s8 + $0x20] sm:$0xff]   ;;  %s460_s30 = scalar_lea.vmem [#allocation2], %s1159_s28 }
  0x16   : > { %1274 = vmatpush3.bf16.msra.mxu0 %v1484_v2  ;;  %1298 = vmatpush3.bf16.msra.mxu1 %v1631_v5  ;;  %v1641_v8 = vld [vmem:[%s1627_s11 + $0x28] sm:$0xff]   ;;  %v1488_v9 = vld [vmem:[%s1620_s8 + $0x18] sm:$0xff]   ;;  %v1647_v10 = vld [vmem:[%s1627_s11 + $0x20] sm:$0xff]   ;;  %s558_s18 = scalar_select %p457_p8, 1, 6 }
  0x17   : > { %1275 = vmatprep.subr.bf16.mxu0 %v1485_v3  ;;  %1299 = vmatprep.subr.bf16.mxu1 %v1544_v0  ;;  %v1490_v11 = vld [vmem:[%s1620_s8 + $0x10] sm:$0xff]   ;;  %v1653_v12 = vld [vmem:[%s1627_s11 + $0x18] sm:$0xff]   ;;  %v1492_v13 = vld [vmem:[%s1620_s8 + $0x8] sm:$0xff]   ;;  %s610_s17 = scalar_select %p457_p8, 2, 5 }
  0x18   : > { %v1659_v14 = vld [vmem:[%s1627_s11 + $0x10] sm:$0xff]   ;;  %v1494_v15 = vld [vmem:[%s1620_s8] sm:$0xff]   ;;  %v1665_v16 = vld [vmem:[%s1627_s11 + $0x8] sm:$0xff]   ;;  %s553_s8 = sshra.s32 %s1159_s28, 3  ;;  %s1169_s12 = sshll.u32 %s558_s18, 3 }
  0x19   : > { %v1676_v19 = vld [vmem:[%s1627_s11] sm:$0xff]   ;;  %s1168_s9 = sshll.u32 %s553_s8, 2  ;;  %s560_s13 = scalar_lea.vmem [#allocation2], %s1169_s12 }
  0x1a   : > { %1276 = vmatpush3.bf16.msra.mxu0 %v1485_v3  ;;  %1300 = vmatpush3.bf16.msra.mxu1 %v1635_v6  ;;  %s556_s11 = scalar_lea.vmem %s1729_s10, %s1168_s9 [#allocation3]  ;;  %s605_s14 = sshra.s32 %s1169_s12, 3 }
  0x1b   : > { %1277 = vmatprep.subr.bf16.mxu0 %v1486_v4  ;;  %1301 = vmatprep.subr.bf16.mxu1 %v1544_v0  ;;  %s1170_s15 = sshll.u32 %s605_s14, 2  ;;  %s1171_s20 = sshll.u32 %s610_s17, 3 }
  0x1c   : > { %s608_s16 = scalar_lea.vmem %s1729_s10, %s1170_s15 [#allocation3]  ;;  %s612_s23 = scalar_lea.vmem [#allocation2], %s1171_s20 }
  0x1d   : > { %s657_s24 = sshra.s32 %s1171_s20, 3 }
  0x1e   : > { %1278 = vmatpush3.bf16.msra.mxu0 %v1486_v4  ;;  %1302 = vmatpush3.bf16.msra.mxu1 %v1641_v8  ;;  %s1172_s27 = sshll.u32 %s657_s24, 2 }
  0x1f   : > { %1279 = vmatprep.subr.bf16.mxu0 %v1487_v7  ;;  %1303 = vmatprep.subr.bf16.mxu1 %v1544_v0  ;;  %s660_s28 = scalar_lea.vmem %s1729_s10, %s1172_s27 [#allocation3] }
  0x20   : > { %s714_s18 = scalar_select %p457_p8, 4, 3 }
  0x21   : > { %s766_s17 = scalar_select %p457_p8, 5, 2 }
  0x22   : > { %1280 = vmatpush3.bf16.msra.mxu0 %v1487_v7  ;;  %1304 = vmatpush3.bf16.msra.mxu1 %v1647_v10  ;;  %s1175_s12 = sshll.u32 %s714_s18, 3 }
  0x23   : > { %1281 = vmatprep.subr.bf16.mxu0 %v1488_v9  ;;  %1305 = vmatprep.subr.bf16.mxu1 %v1544_v0  ;;  %s761_s14 = sshra.s32 %s1175_s12, 3  ;;  %s1177_s20 = sshll.u32 %s766_s17, 3 }
  0x24   : > { %s1176_s15 = sshll.u32 %s761_s14, 2  ;;  %s813_s24 = sshra.s32 %s1177_s20, 3 }
  0x25   : > { %s1178_s27 = sshll.u32 %s813_s24, 2 }
  0x26   : > { %1282 = vmatpush3.bf16.msra.mxu0 %v1488_v9  ;;  %1306 = vmatpush3.bf16.msra.mxu1 %v1653_v12  ;;  %s870_s18 = scalar_select %p457_p8, 7, 0 }
  0x27   : > { %1283 = vmatprep.subr.bf16.mxu0 %v1490_v11  ;;  %1307 = vmatprep.subr.bf16.mxu1 %v1544_v0 }
  0x2a   : > { %1284 = vmatpush3.bf16.msra.mxu0 %v1490_v11  ;;  %1308 = vmatpush3.bf16.msra.mxu1 %v1659_v14 }
  0x2b   : > { %1285 = vmatprep.subr.bf16.mxu0 %v1492_v13  ;;  %1309 = vmatprep.subr.bf16.mxu1 %v1544_v0 }
  0x2e   : > { %1286 = vmatpush3.bf16.msra.mxu0 %v1492_v13  ;;  %1310 = vmatpush3.bf16.msra.mxu1 %v1665_v16 }
  0x2f   : > { %1287 = vmatprep.subr.bf16.mxu0 %v1494_v15  ;;  %1311 = vmatprep.subr.bf16.mxu1 %v1544_v0 }
  0x32   : > { %1288 = vmatpush3.bf16.msra.mxu0 %v1494_v15  ;;  %1312 = vmatpush3.bf16.msra.mxu1 %v1676_v19 }
  0x33   : > { %1317 = vmatprep.subr.bf16.mxu0 %v1544_v0  ;;  %1337 = vmatprep.subr.bf16.mxu1 %v1544_v0 }
  0x35   : > { %1290 = vmatmul.mubr.bf16.vlgmr.msra.gmra.mxu0 %v1497_v17  ;;  %1314 = vmatmul.mubr.bf16.vlgmr.msra.gmra.mxu1 %v1546_v21 }
  0x36   : > { %1293 = vmatprep.mubr.bf16.mxu0 %v1500_v18  ;;  %1318 = vmatpush3.bf16.msra.mxu0 %v1631_v5 }
  0x37   : > { %1319 = vmatprep.subr.bf16.mxu0 %v1544_v0  ;;  %1338 = vmatpush3.bf16.msra.mxu1 %v1631_v5 }
  0x38   : > { %1353 = vmatprep.mubr.msk.bf16.mxu1 %vm1545_vm0, %v1544_v0  ;;  %1339 = vmatprep.subr.bf16.mxu1 %v1544_v0 }
  0x3a   : > { %1320 = vmatpush3.bf16.msra.mxu0 %v1635_v6 }
  0x3b   : > { %1321 = vmatprep.subr.bf16.mxu0 %v1544_v0  ;;  %1340 = vmatpush3.bf16.msra.mxu1 %v1635_v6 }
  0x3c   : > { %1341 = vmatprep.subr.bf16.mxu1 %v1544_v0 }
  0x3d   : > { %1294 = vmatmul.mubr.bf16.gmra.mxu0 %v1501_v20 }
  0x3e   : > { %1333 = vmatprep.mubr.msk.bf16.mxu0 %vm1545_vm0, %v1544_v0  ;;  %1322 = vmatpush3.bf16.msra.mxu0 %v1641_v8 }
  0x3f   : > { %1323 = vmatprep.subr.bf16.mxu0 %v1544_v0  ;;  %1342 = vmatpush3.bf16.msra.mxu1 %v1641_v8 }
  0x40   : > { %1343 = vmatprep.subr.bf16.mxu1 %v1544_v0 }
  0x42   : > { %1324 = vmatpush3.bf16.msra.mxu0 %v1647_v10 }
  0x43   : > { %1325 = vmatprep.subr.bf16.mxu0 %v1544_v0  ;;  %1344 = vmatpush3.bf16.msra.mxu1 %v1647_v10 }
  0x44   : > { %1345 = vmatprep.subr.bf16.mxu1 %v1544_v0 }
  0x46   : > { %1326 = vmatpush3.bf16.msra.mxu0 %v1653_v12 }
  0x47   : > { %1327 = vmatprep.subr.bf16.mxu0 %v1544_v0  ;;  %1346 = vmatpush3.bf16.msra.mxu1 %v1653_v12 }
  0x48   : > { %1347 = vmatprep.subr.bf16.mxu1 %v1544_v0 }
  0x4a   : > { %1328 = vmatpush3.bf16.msra.mxu0 %v1659_v14 }
  0x4b   : > { %1329 = vmatprep.subr.bf16.mxu0 %v1544_v0  ;;  %1348 = vmatpush3.bf16.msra.mxu1 %v1659_v14 }
  0x4c   : > { %1349 = vmatprep.subr.bf16.mxu1 %v1544_v0 }
  0x4e   : > { %1330 = vmatpush3.bf16.msra.mxu0 %v1665_v16 }
  0x4f   : > { %1331 = vmatprep.subr.bf16.mxu0 %v1544_v0  ;;  %1350 = vmatpush3.bf16.msra.mxu1 %v1665_v16 }
  0x50   : > { %1351 = vmatprep.subr.bf16.mxu1 %v1544_v0 }
  0x52   : > { %1332 = vmatpush3.bf16.msra.mxu0 %v1676_v19 }
  0x53   : > { %1357 = vmatprep.subr.bf16.mxu0 %v1544_v0  ;;  %1352 = vmatpush3.bf16.msra.mxu1 %v1676_v19 }
  0x54   : > { %1377 = vmatprep.subr.bf16.mxu1 %v1544_v0 }
  0xf5   : > { %v1291_v23 = vpop.f32.mrf.mxu0  ;;  %v544_v28 = vpop.f32.mrf.mxu1 }
  0xf6   : > { %v427_v24 = vadd.f32 %v1291_v23, %v1146_v22 }
  0xf7   : > { %v418_v25 = vpop.f32.mrf.mxu0  ;;  %v1315_v31 = vpop.f32.mrf.mxu1 }
  0xf8   : > { %451 = vst [vmem:[#allocation2 + $0x10] sm:$0xff] %v427_v24  ;;  %v419_v26 = vadd.f32 %v1146_v22, %v418_v25 }
  0xf9   : > { %v1292_v27 = vpop.f32.mrf.mxu0  ;;  %v547_v34 = vpop.f32.mrf.mxu1 }
  0xfa   : > { %449 = vst [vmem:[#allocation2] sm:$0xff] %v419_v26  ;;  %v430_v29 = vadd.f32 %v1292_v27, %v1146_v22 }
  0xfb   : > { %v421_v30 = vpop.f32.mrf.mxu0  ;;  %v1316_v37 = vpop.f32.mrf.mxu1 }
  0xfc   : > { %452 = vst [vmem:[#allocation2 + $0x18] sm:$0xff] %v430_v29  ;;  %v422_v32 = vadd.f32 %v1146_v22, %v421_v30 }
  0xfd   : > { %v1295_v33 = vpop.f32.mrf.mxu0 }
  0xfe   : > { %450 = vst [vmem:[#allocation2 + $0x8] sm:$0xff] %v422_v32  ;;  %v443_v35 = vadd.f32 %v1295_v33, %v1146_v22 }
  0xff   : > { %v434_v36 = vpop.f32.mrf.mxu0 }
 0x100   : > { %455 = vst [vmem:[#allocation2 + $0x30] sm:$0xff] %v443_v35  ;;  %v435_v38 = vadd.f32 %v1146_v22, %v434_v36 }
 0x101   : > { %v1296_v39 = vpop.f32.mrf.mxu0 }
 0x102   : > { %453 = vst [vmem:[#allocation2 + $0x20] sm:$0xff] %v435_v38  ;;  %v446_v40 = vadd.f32 %v1296_v39, %v1146_v22 }
 0x103   : > { %v437_v41 = vpop.f32.mrf.mxu0 }
 0x104   : > { %456 = vst [vmem:[#allocation2 + $0x38] sm:$0xff] %v446_v40  ;;  %v438_v42 = vadd.f32 %v1146_v22, %v437_v41 }
 0x106   : > { %454 = vst [vmem:[#allocation2 + $0x28] sm:$0xff] %v438_v42 }
 0x10d   : > { %v461_v43 = vld [vmem:[%s460_s30] sm:$0xff]  ;;  %s662_s30 = scalar_select %p457_p8, 3, 4 }
 0x10e   : > { %v550_v44 = vadd.f32 %v544_v28, %v461_v43  ;;  %v561_v47 = vld [vmem:[%s560_s13] sm:$0xff]  ;;  %s716_s13 = scalar_lea.vmem [#allocation2], %s1175_s12  ;;  %s1181_s12 = sshll.u32 %s870_s18, 3 }
 0x10f   : > { %v613_v55 = vld [vmem:[%s612_s23] sm:$0xff]  ;;  %s1173_s6 = sshll.u32 %s662_s30, 3  ;;  %s768_s23 = scalar_lea.vmem [#allocation2], %s1177_s20 }
 0x110   : > { %1504 = vtanh.f32 %v550_v44  ;;  %s664_s7 = scalar_lea.vmem [#allocation2], %s1173_s6  ;;  %s709_s8 = sshra.s32 %s1173_s6, 3  ;;  %v717_v13 = vld [vmem:[%s716_s13] sm:$0xff] }
 0x111   : > { %v665_v63 = vld [vmem:[%s664_s7] sm:$0xff]  ;;  %s1174_s9 = sshll.u32 %s709_s8, 2  ;;  %s872_s13 = scalar_lea.vmem [#allocation2], %s1181_s12 }
 0x112   : > { %s818_s30 = scalar_select %p457_p8, 6, 1  ;;  %v873_v31 = vld [vmem:[%s872_s13] sm:$0xff] }
 0x113   : > { %s917_s14 = sshra.s32 %s1181_s12, 3 }
 0x114   : > { %s1179_s6 = sshll.u32 %s818_s30, 3 }
 0x115   : > { %s820_s7 = scalar_lea.vmem [#allocation2], %s1179_s6  ;;  %s865_s8 = sshra.s32 %s1179_s6, 3 }
 0x11d   : > { %v1505_v45 = vpop.eup %1504 }
 0x11e   : > { %v552_v46 = vpack.c.bf16 %v1505_v45, %v1505_v45 }
 0x120   : > { %557 = vst [vmem:[%s556_s11] sm:$0xf] %v552_v46  ;;  %1334 = vmatmul.mubr.bf16.vlgmr.msra.gmra.mxu0 %v552_v46  ;;  %s712_s11 = scalar_lea.vmem %s1729_s10, %s1174_s9 [#allocation3]  ;;  %s1180_s9 = sshll.u32 %s865_s8, 2 }
 0x121   : > { %1358 = vmatpush3.bf16.msra.mxu0 %v1631_v5  ;;  %1373 = vmatprep.mubr.msk.bf16.mxu0 %vm1545_vm0, %v1544_v0 }
 0x122   : > { %1359 = vmatprep.subr.bf16.mxu0 %v1544_v0 }
 0x125   : > { %1360 = vmatpush3.bf16.msra.mxu0 %v1635_v6 }
 0x126   : > { %1361 = vmatprep.subr.bf16.mxu0 %v1544_v0 }
 0x129   : > { %1362 = vmatpush3.bf16.msra.mxu0 %v1641_v8 }
 0x12a   : > { %1363 = vmatprep.subr.bf16.mxu0 %v1544_v0 }
 0x12d   : > { %1364 = vmatpush3.bf16.msra.mxu0 %v1647_v10 }
 0x12e   : > { %1365 = vmatprep.subr.bf16.mxu0 %v1544_v0 }
 0x131   : > { %1366 = vmatpush3.bf16.msra.mxu0 %v1653_v12 }
 0x132   : > { %1367 = vmatprep.subr.bf16.mxu0 %v1544_v0 }
 0x135   : > { %1368 = vmatpush3.bf16.msra.mxu0 %v1659_v14 }
 0x136   : > { %1369 = vmatprep.subr.bf16.mxu0 %v1544_v0 }
 0x139   : > { %1370 = vmatpush3.bf16.msra.mxu0 %v1665_v16 }
 0x13a   : > { %1371 = vmatprep.subr.bf16.mxu0 %v1544_v0 }
 0x13d   : > { %1372 = vmatpush3.bf16.msra.mxu0 %v1676_v19 }
 0x13e   : > { %1397 = vmatprep.subr.bf16.mxu0 %v1544_v0 }
 0x1e0   : > { %v596_v48 = vpop.f32.mrf.mxu0 }
 0x1e1   : > { %v602_v49 = vadd.f32 %v596_v48, %v561_v47 }
 0x1e2   : > { %v1335_v50 = vpop.f32.mrf.mxu0 }
 0x1e3   : > { %1506 = vtanh.f32 %v602_v49 }
 0x1e4   : > { %v599_v51 = vpop.f32.mrf.mxu0 }
 0x1e6   : > { %v1336_v52 = vpop.f32.mrf.mxu0 }
 0x1f0   : > { %v1507_v53 = vpop.eup %1506 }
 0x1f1   : > { %v604_v54 = vpack.c.bf16 %v1507_v53, %v1507_v53 }
 0x1f3   : > { %609 = vst [vmem:[%s608_s16] sm:$0xf] %v604_v54  ;;  %1354 = vmatmul.mubr.bf16.vlgmr.msra.gmra.mxu1 %v604_v54  ;;  %s764_s16 = scalar_lea.vmem %s1729_s10, %s1176_s15 [#allocation3]  ;;  %s1145_s15 = sshll.u32 %s1612_s29, 3 }
 0x1f4   : > { %1378 = vmatpush3.bf16.msra.mxu1 %v1631_v5  ;;  %1393 = vmatprep.mubr.msk.bf16.mxu1 %vm1545_vm0, %v1544_v0  ;;  %s1184_s29 = sshll.u32 (%p1602_p4), %s1590_s21, 2 }
 0x1f5   : > { %1379 = vmatprep.subr.bf16.mxu1 %v1544_v0  ;;  %s935_s30 = scalar_lea.vmem (%p1602_p4), %s1873_s4, %s1184_s29 }
 0x1f8   : > { %1380 = vmatpush3.bf16.msra.mxu1 %v1635_v6 }
 0x1f9   : > { %1381 = vmatprep.subr.bf16.mxu1 %v1544_v0 }
 0x1fc   : > { %1382 = vmatpush3.bf16.msra.mxu1 %v1641_v8 }
 0x1fd   : > { %1383 = vmatprep.subr.bf16.mxu1 %v1544_v0 }
 0x200   : > { %1384 = vmatpush3.bf16.msra.mxu1 %v1647_v10 }
 0x201   : > { %1385 = vmatprep.subr.bf16.mxu1 %v1544_v0 }
 0x204   : > { %1386 = vmatpush3.bf16.msra.mxu1 %v1653_v12 }
 0x205   : > { %1387 = vmatprep.subr.bf16.mxu1 %v1544_v0 }
 0x208   : > { %1388 = vmatpush3.bf16.msra.mxu1 %v1659_v14 }
 0x209   : > { %1389 = vmatprep.subr.bf16.mxu1 %v1544_v0 }
 0x20c   : > { %1390 = vmatpush3.bf16.msra.mxu1 %v1665_v16 }
 0x20d   : > { %1391 = vmatprep.subr.bf16.mxu1 %v1544_v0 }
 0x210   : > { %1392 = vmatpush3.bf16.msra.mxu1 %v1676_v19 }
 0x211   : > { %1417 = vmatprep.subr.bf16.mxu1 %v1544_v0 }
 0x2b3   : > { %v648_v56 = vpop.f32.mrf.mxu1 }
 0x2b4   : > { %v654_v57 = vadd.f32 %v648_v56, %v613_v55 }
 0x2b5   : > { %v1355_v58 = vpop.f32.mrf.mxu1 }
 0x2b6   : > { %1508 = vtanh.f32 %v654_v57 }
 0x2b7   : > { %v651_v59 = vpop.f32.mrf.mxu1 }
 0x2b9   : > { %v1356_v60 = vpop.f32.mrf.mxu1 }
 0x2c3   : > { %v1509_v61 = vpop.eup %1508 }
 0x2c4   : > { %v656_v62 = vpack.c.bf16 %v1509_v61, %v1509_v61 }
 0x2c6   : > { %661 = vst [vmem:[%s660_s28] sm:$0xf] %v656_v62  ;;  %1374 = vmatmul.mubr.bf16.vlgmr.msra.gmra.mxu0 %v656_v62  ;;  %s816_s28 = scalar_lea.vmem %s1729_s10, %s1178_s27 [#allocation3] }
 0x2c7   : > { %1398 = vmatpush3.bf16.msra.mxu0 %v1631_v5  ;;  %1413 = vmatprep.mubr.msk.bf16.mxu0 %vm1545_vm0, %v1544_v0 }
 0x2c8   : > { %1399 = vmatprep.subr.bf16.mxu0 %v1544_v0 }
 0x2cb   : > { %1400 = vmatpush3.bf16.msra.mxu0 %v1635_v6 }
 0x2cc   : > { %1401 = vmatprep.subr.bf16.mxu0 %v1544_v0 }
 0x2cf   : > { %1402 = vmatpush3.bf16.msra.mxu0 %v1641_v8 }
 0x2d0   : > { %1403 = vmatprep.subr.bf16.mxu0 %v1544_v0 }
 0x2d3   : > { %1404 = vmatpush3.bf16.msra.mxu0 %v1647_v10 }
 0x2d4   : > { %1405 = vmatprep.subr.bf16.mxu0 %v1544_v0 }
 0x2d7   : > { %1406 = vmatpush3.bf16.msra.mxu0 %v1653_v12 }
 0x2d8   : > { %1407 = vmatprep.subr.bf16.mxu0 %v1544_v0 }
 0x2db   : > { %1408 = vmatpush3.bf16.msra.mxu0 %v1659_v14 }
 0x2dc   : > { %1409 = vmatprep.subr.bf16.mxu0 %v1544_v0 }
 0x2df   : > { %1410 = vmatpush3.bf16.msra.mxu0 %v1665_v16 }
 0x2e0   : > { %1411 = vmatprep.subr.bf16.mxu0 %v1544_v0 }
 0x2e3   : > { %1412 = vmatpush3.bf16.msra.mxu0 %v1676_v19 }
 0x2e4   : > { %1437 = vmatprep.subr.bf16.mxu0 %v1544_v0 }
 0x386   : > { %v700_v1 = vpop.f32.mrf.mxu0 }
 0x387   : > { %v706_v2 = vadd.f32 %v700_v1, %v665_v63 }
 0x388   : > { %v1375_v3 = vpop.f32.mrf.mxu0 }
 0x389   : > { %1510 = vtanh.f32 %v706_v2 }
 0x38a   : > { %v703_v4 = vpop.f32.mrf.mxu0 }
 0x38c   : > { %v1376_v7 = vpop.f32.mrf.mxu0 }
 0x396   : > { %v1511_v9 = vpop.eup %1510 }
 0x397   : > { %v708_v11 = vpack.c.bf16 %v1511_v9, %v1511_v9 }
 0x399   : > { %713 = vst [vmem:[%s712_s11] sm:$0xf] %v708_v11  ;;  %1394 = vmatmul.mubr.bf16.vlgmr.msra.gmra.mxu1 %v708_v11  ;;  %s868_s11 = scalar_lea.vmem %s1729_s10, %s1180_s9 [#allocation3] }
 0x39a   : > { %1418 = vmatpush3.bf16.msra.mxu1 %v1631_v5  ;;  %1433 = vmatprep.mubr.msk.bf16.mxu1 %vm1545_vm0, %v1544_v0 }
 0x39b   : > { %1419 = vmatprep.subr.bf16.mxu1 %v1544_v0 }
 0x39e   : > { %1420 = vmatpush3.bf16.msra.mxu1 %v1635_v6 }
 0x39f   : > { %1421 = vmatprep.subr.bf16.mxu1 %v1544_v0 }
 0x3a2   : > { %1422 = vmatpush3.bf16.msra.mxu1 %v1641_v8 }
 0x3a3   : > { %1423 = vmatprep.subr.bf16.mxu1 %v1544_v0 }
 0x3a6   : > { %1424 = vmatpush3.bf16.msra.mxu1 %v1647_v10 }
 0x3a7   : > { %1425 = vmatprep.subr.bf16.mxu1 %v1544_v0 }
 0x3aa   : > { %1426 = vmatpush3.bf16.msra.mxu1 %v1653_v12 }
 0x3ab   : > { %1427 = vmatprep.subr.bf16.mxu1 %v1544_v0 }
 0x3ae   : > { %1428 = vmatpush3.bf16.msra.mxu1 %v1659_v14 }
 0x3af   : > { %1429 = vmatprep.subr.bf16.mxu1 %v1544_v0 }
 0x3b2   : > { %1430 = vmatpush3.bf16.msra.mxu1 %v1665_v16 }
 0x3b3   : > { %1431 = vmatprep.subr.bf16.mxu1 %v1544_v0 }
 0x3b6   : > { %1432 = vmatpush3.bf16.msra.mxu1 %v1676_v19 }
 0x459   : > { %v752_v15 = vpop.f32.mrf.mxu1 }
 0x45a   : > { %v758_v17 = vadd.f32 %v752_v15, %v717_v13 }
 0x45b   : > { %v1395_v18 = vpop.f32.mrf.mxu1 }
 0x45c   : > { %1512 = vtanh.f32 %v758_v17 }
 0x45d   : > { %v755_v20 = vpop.f32.mrf.mxu1 }
 0x45f   : > { %v1396_v21 = vpop.f32.mrf.mxu1 }
 0x469   : > { %v1513_v22 = vpop.eup %1512 }
 0x46a   : > { %v760_v23 = vpack.c.bf16 %v1513_v22, %v1513_v22 }
 0x46c   : > { %765 = vst [vmem:[%s764_s16] sm:$0xf] %v760_v23  ;;  %1414 = vmatmul.mubr.bf16.vlgmr.msra.gmra.mxu0 %v760_v23  ;;  %s1182_s16 = sshll.u32 %s917_s14, 2 }
 0x46d   : > { %1438 = vmatpush3.bf16.msra.mxu0 %v1631_v5  ;;  %1453 = vmatprep.mubr.msk.bf16.mxu0 %vm1545_vm0, %v1544_v0  ;;  %v769_v5 = vld [vmem:[%s768_s23] sm:$0xff]  ;;  %s263_s23 = scalar_lea.vmem %s1874_s5, %s1145_s15  ;;  %s920_s24 = scalar_lea.vmem %s1729_s10, %s1182_s16 [#allocation3] }
 0x46e   : > { %1439 = vmatprep.subr.bf16.mxu0 %v1544_v0 }
 0x471   : > { %1440 = vmatpush3.bf16.msra.mxu0 %v1635_v6 }
 0x472   : > { %1441 = vmatprep.subr.bf16.mxu0 %v1544_v0 }
 0x475   : > { %1442 = vmatpush3.bf16.msra.mxu0 %v1641_v8 }
 0x476   : > { %1443 = vmatprep.subr.bf16.mxu0 %v1544_v0 }
 0x479   : > { %1444 = vmatpush3.bf16.msra.mxu0 %v1647_v10 }
 0x47a   : > { %1445 = vmatprep.subr.bf16.mxu0 %v1544_v0 }
 0x47d   : > { %1446 = vmatpush3.bf16.msra.mxu0 %v1653_v12 }
 0x47e   : > { %1447 = vmatprep.subr.bf16.mxu0 %v1544_v0 }
 0x481   : > { %1448 = vmatpush3.bf16.msra.mxu0 %v1659_v14 }
 0x482   : > { %1449 = vmatprep.subr.bf16.mxu0 %v1544_v0 }
 0x485   : > { %1450 = vmatpush3.bf16.msra.mxu0 %v1665_v16 }
 0x486   : > { %1451 = vmatprep.subr.bf16.mxu0 %v1544_v0  ;;  %v821_v0 = vld [vmem:[%s820_s7] sm:$0xff] }
 0x489   : > { %1452 = vmatpush3.bf16.msra.mxu0 %v1676_v19 }
 0x52c   : > { %v804_v6 = vpop.f32.mrf.mxu0 }
 0x52d   : > { %v810_v8 = vadd.f32 %v804_v6, %v769_v5 }
 0x52e   : > { %v1415_v10 = vpop.f32.mrf.mxu0 }
 0x52f   : > { %1514 = vtanh.f32 %v810_v8 }
 0x530   : > { %v807_v12 = vpop.f32.mrf.mxu0 }
 0x532   : > { %v1416_v14 = vpop.f32.mrf.mxu0 }
 0x53c   : > { %v1515_v16 = vpop.eup %1514 }
 0x53d   : > { %v812_v24 = vpack.c.bf16 %v1515_v16, %v1515_v16 }
 0x53f   : > { %817 = vst [vmem:[%s816_s28] sm:$0xf] %v812_v24  ;;  %1434 = vmatmul.mubr.bf16.vlgmr.msra.gmra.mxu1 %v812_v24 }
 0x5ff   : > { %v856_v19 = vpop.f32.mrf.mxu1 }
 0x600   : > { %v862_v25 = vadd.f32 %v856_v19, %v821_v0 }
 0x601   : > { %v1435_v26 = vpop.f32.mrf.mxu1 }
 0x602   : > { %1516 = vtanh.f32 %v862_v25 }
 0x603   : > { %v859_v27 = vpop.f32.mrf.mxu1 }
 0x605   : > { %v1436_v28 = vpop.f32.mrf.mxu1 }
 0x60f   : > { %v1517_v29 = vpop.eup %1516 }
 0x610   : > { %v864_v30 = vpack.c.bf16 %v1517_v29, %v1517_v29 }
 0x612   : > { %869 = vst [vmem:[%s868_s11] sm:$0xf] %v864_v30  ;;  %1454 = vmatmul.mubr.bf16.vlgmr.msra.gmra.mxu0 %v864_v30 }
 0x6d2   : > { %v908_v32 = vpop.f32.mrf.mxu0 }
 0x6d3   : > { %v914_v33 = vadd.f32 %v908_v32, %v873_v31 }
 0x6d4   : > { %v1455_v34 = vpop.f32.mrf.mxu0 }
 0x6d5   : > { %1518 = vtanh.f32 %v914_v33 }
 0x6d6   : > { %v911_v35 = vpop.f32.mrf.mxu0 }
 0x6d8   : > { %v1456_v36 = vpop.f32.mrf.mxu0 }
 0x6e1   : > { %933 = sbr.rel (!%p1602_p4) target bundleno = 1778 (0x6f2), region = 40 }
 0x6e2   : > { %v1519_v37 = vpop.eup %1518 }
 0x6e3   : > { %v916_v38 = vpack.c.bf16 %v1519_v37, %v1519_v37  ;;  %922 = vst [vmem:[%s263_s23] sm:$0xff] %v1519_v37 }
 0x6e5   : > { %921 = vst [vmem:[%s920_s24] sm:$0xf] %v916_v38 }
 0x6ec   : > { %v952_v39 = vld [vmem:[%s1729_s10] sm:$0xf]  ;;  %v954_v40 = vld [vmem:[%s1729_s10 + $0x4] sm:$0xf]  ;;  %v956_v41 = vld [vmem:[%s1729_s10 + $0x8] sm:$0xf] }
 0x6ed   : > { %v958_v42 = vld [vmem:[%s1729_s10 + $0xc] sm:$0xf]  ;;  %v960_v43 = vld [vmem:[%s1729_s10 + $0x10] sm:$0xf]  ;;  %953 = vst [vmem:[%s935_s30] sm:$0xf] %v952_v39 }
 0x6ee   : > { %955 = vst [vmem:[%s935_s30 + $0x8] sm:$0xf] %v954_v40  ;;  %957 = vst [vmem:[%s935_s30 + $0x10] sm:$0xf] %v956_v41  ;;  %v962_v44 = vld [vmem:[%s1729_s10 + $0x14] sm:$0xf] }
 0x6ef   : > { %959 = vst [vmem:[%s935_s30 + $0x18] sm:$0xf] %v958_v42  ;;  %961 = vst [vmem:[%s935_s30 + $0x20] sm:$0xf] %v960_v43  ;;  %v964_v45 = vld [vmem:[%s1729_s10 + $0x18] sm:$0xf] }
 0x6f0   : > { %v966_v46 = vld [vmem:[%s1729_s10 + $0x1c] sm:$0xf]  ;;  %963 = vst [vmem:[%s935_s30 + $0x28] sm:$0xf] %v962_v44  ;;  %965 = vst [vmem:[%s935_s30 + $0x30] sm:$0xf] %v964_v45 }
 0x6f1   : > { %967 = vst [vmem:[%s935_s30 + $0x38] sm:$0xf] %v966_v46 }
 0x6f2 PF: > { %p13_p9 = scmp.ge.s32.totalorder %s1592_s22, 4   ;;  %s1876_s18 = smov %s1538_s19 }
 0x6f3   : > { %s1877_s19 = smov %s1600_s25  ;;  %s1878_s20 = smov %s1592_s22 }
 0x6f4   :  { %15 = sbr.rel (!%p13_p9) target bundleno = 2 (0x2), region = 141 }

// kernel: forward.4
= control target key start
LH: loop header
LB: loop body
LE: loop exit
PB: predicated region body
PF: predicated region fallthrough
CT: control target
= control target key end

     0   :  { %11 = vsyncpa [#allocation4], 0  ;;  %s2060_s0 = inlined_call_operand.vmem [shape: bf16[64,256], index: 0, kind: input, shape index: {}]   ;;  %s2061_s1 = inlined_call_operand.vmem [shape: bf16[2,256,128], index: 1, kind: input, shape index: {}]   ;;  %s2062_s2 = inlined_call_operand.vmem [shape: bf16[2,128,128], index: 2, kind: input, shape index: {}]   ;;  %s2063_s3 = inlined_call_operand.vmem [shape: f32[2,1,128], index: 3, kind: input, shape index: {}]   ;;  %s2064_s4 = inlined_call_operand.hbm [shape: bf16[64,256], index: 4, kind: output, shape index: {0}]   ;;  %s2065_s5 = inlined_call_operand.vmem [shape: f32[2,8,128], index: 5, kind: output, shape index: {1}]  }
   0x1   :  { %13 = vsyncpa [#allocation4 + $0x1], 0  ;;  %s1699_s18 = smov 0   ;;  %s1701_s19 = smov 0  }
   0x2   :  { %s1703_s20 = smov 0   ;;  %s1705_s21 = smov 0  }
   0x3 LB: > { %s1720_s22 = sadd.s32 4294967295, %s1660_s21   ;;  %s1166_s23 = sadd.s32 4294967294, %s1660_s21   ;;  %s1660_s21 = sphi %s1705_s21, %s2071_s21   ;;  %s1656_s20 = sphi %s1703_s20, %s2070_s20   ;;  %s1652_s19 = sphi %s1701_s19, %s2069_s19   ;;  %s1648_s18 = sphi %s1699_s18, %s2068_s18  }
   0x4   : > { %s1724_s24 = sadd.s32 1, %s1660_s21   ;;  %s125_s25 = sadd.s32 1, %s1656_s20 }
   0x5   : > { %s122_s26 = ssub.s32 %s1660_s21, %s1724_s24  ;;  %p135_p0 = scmp.ne.s32.totalorder %s1656_s20, %s1652_s19 }
   0x6   : > { %p123_p1 = scmp.eq.s32.totalorder %s122_s26, 0  ;;  %p136_p2 = scmp.eq.s32.totalorder %s1720_s22, 1 }
   0x7   : > { %p141_p3 = scmp.ne.s32.totalorder %s1652_s19, %s1648_s18  ;;  %p142_p4 = scmp.eq.s32.totalorder %s1166_s23, 1 }
   0x8   : > { %s1735_s27 = scalar_select %p123_p1, %s1656_s20, %s125_s25  }
   0x9   : > { %p1737_p5 = por %p136_p2, %p135_p0  ;;  %p1741_p6 = por %p142_p4, %p141_p3 }
   0xa   : > { %p1169_p7 = scmp.ge.s32.totalorder %s1660_s21, 1  ;;  %p211_p8 = scmp.lt.s32.totalorder %s1660_s21, 3 }
   0xc   : > { %p212_p9 = pnand %p1169_p7, %p211_p8 }
   0xd   : > { %p251_p10 = scmp.lt.s32.totalorder (!%p212_p9), %s1720_s22, 1  ;;  %p541_p11 = scmp.eq.s32.totalorder (!%p212_p9), %s1720_s22, 0 }
   0xe   : > { %215 = sbr.rel (%p212_p9) target bundleno = 1801 (0x709), region = 36  ;;  %s242_s30 = sand.u32 (!%p212_p9), 1, %s1652_s19  }
   0xf   : > { %s1170_s6 = sshll.u32 (!%p212_p9), %s242_s30, 5 }
  0x10   : > { %s1893_s10 = scalar_lea.vmem (!%p212_p9), [#allocation3], %s1170_s6 }
  0x13   : > { %v1566_v0 = vld [vmem:[%s2060_s0 + $0x4] ss:$8 sps:$4 sm:$0xff]   ;;  %v1662_v1 = vmov 0.0   ;;  %s1753_s7 = scalar_select %p251_p10, %s1720_s22, 1  ;;  %vm1663_vm0 = vmmov 0   ;;  %v1664_v32 = vmov 0  }
  0x14   : > { %1343 = vmatprep.subr.bf16.mxu1 %v1662_v1  ;;  %1359 = vmatprep.mubr.msk.bf16.mxu1 %vm1663_vm0, %v1662_v1  ;;  %v1564_v22 = vld [vmem:[%s2060_s0] ss:$8 sps:$4 sm:$0xff]   ;;  %v1568_v24 = vld [vmem:[%s2060_s0 + $0x14] ss:$8 sps:$4 sm:$0xff]   ;;  %v1570_v26 = vld [vmem:[%s2060_s0 + $0x10] ss:$8 sps:$4 sm:$0xff]  }
  0x15   : > { %500 = vmatprep.mubr.bf16.mxu0 %v1566_v0  ;;  %s1229_s8 = sshll.u32 %s1753_s7, 7  ;;  %s1230_s12 = sshll.u32 %s1753_s7, 6  ;;  %v1573_v28 = vld [vmem:[%s2060_s0 + $0x24] ss:$8 sps:$4 sm:$0xff]   ;;  %v1575_v30 = vld [vmem:[%s2060_s0 + $0x20] ss:$8 sps:$4 sm:$0xff]  }
  0x16   : > { %s1761_s11 = scalar_lea.vmem %s2061_s1, %s1229_s8  ;;  %s1776_s15 = scalar_lea.vmem %s2062_s2, %s1230_s12  ;;  %v1578_v31 = vld [vmem:[%s2060_s0 + $0x34] ss:$8 sps:$4 sm:$0xff]   ;;  %v1580_v33 = vld [vmem:[%s2060_s0 + $0x30] ss:$8 sps:$4 sm:$0xff]  }
  0x17   : > { %v1548_v2 = vld [vmem:[%s1761_s11 + $0x78] sm:$0xff]   ;;  %v1550_v4 = vld [vmem:[%s1761_s11 + $0x70] sm:$0xff]   ;;  %v1552_v6 = vld [vmem:[%s1761_s11 + $0x68] sm:$0xff]   ;;  %s263_s17 = scalar_lea.vmem %s2063_s3, %s1753_s7 }
  0x18   : > { %v1549_v3 = vld [vmem:[%s1761_s11 + $0x38] sm:$0xff]   ;;  %1231 = vmatprep.subr.bf16.mxu0 %v1548_v2  ;;  %v1551_v5 = vld [vmem:[%s1761_s11 + $0x30] sm:$0xff]   ;;  %v1553_v7 = vld [vmem:[%s1761_s11 + $0x28] sm:$0xff]   ;;  %s542_s23 = scalar_select %p541_p11, 0, 7 }
  0x19   : > { %1232 = vmatpush3.bf16.msra.mxu0 %v1549_v3  ;;  %v1554_v8 = vld [vmem:[%s1761_s11 + $0x60] sm:$0xff]   ;;  %v1556_v10 = vld [vmem:[%s1761_s11 + $0x58] sm:$0xff]   ;;  %v1558_v12 = vld [vmem:[%s1761_s11 + $0x50] sm:$0xff]   ;;  %s642_s12 = scalar_select %p541_p11, 1, 6 }
  0x1a   : > { %1233 = vmatprep.subr.bf16.mxu0 %v1550_v4  ;;  %v1555_v9 = vld [vmem:[%s1761_s11 + $0x20] sm:$0xff]   ;;  %v1557_v11 = vld [vmem:[%s1761_s11 + $0x18] sm:$0xff]   ;;  %v1785_v14 = vld [vmem:[%s1776_s15 + $0x30] sm:$0xff]   ;;  %s1201_s25 = sshll.u32 %s542_s23, 3 }
  0x1b   : > { %v1781_v13 = vld [vmem:[%s1776_s15 + $0x38] sm:$0xff]   ;;  %v1559_v15 = vld [vmem:[%s1761_s11 + $0x10] sm:$0xff]   ;;  %v1560_v16 = vld [vmem:[%s1761_s11 + $0x48] sm:$0xff]   ;;  %s544_s26 = scalar_lea.vmem [#allocation2], %s1201_s25  ;;  %s637_s8 = sshra.s32 %s1201_s25, 3 }
  0x1c   : > { %1344 = vmatpush3.bf16.msra.mxu1 %v1781_v13  ;;  %v1792_v17 = vld [vmem:[%s1776_s15 + $0x28] sm:$0xff]   ;;  %v1562_v19 = vld [vmem:[%s1761_s11 + $0x40] sm:$0xff]   ;;  %v1808_v23 = vld [vmem:[%s1776_s15 + $0x18] sm:$0xff]   ;;  %s1210_s9 = sshll.u32 %s637_s8, 2  ;;  %s1211_s13 = sshll.u32 %s642_s12, 3 }
  0x1d   : > { %1234 = vmatpush3.bf16.msra.mxu0 %v1551_v5  ;;  %1345 = vmatprep.subr.bf16.mxu1 %v1662_v1  ;;  %v1561_v18 = vld [vmem:[%s1761_s11 + $0x8] sm:$0xff]   ;;  %v1799_v20 = vld [vmem:[%s1776_s15 + $0x20] sm:$0xff]   ;;  %v1817_v25 = vld [vmem:[%s1776_s15 + $0x10] sm:$0xff]   ;;  %s644_s14 = scalar_lea.vmem [#allocation2], %s1211_s13 }
  0x1e   : > { %1235 = vmatprep.subr.bf16.mxu0 %v1552_v6  ;;  %v1563_v21 = vld [vmem:[%s1761_s11] sm:$0xff]   ;;  %v1827_v27 = vld [vmem:[%s1776_s15 + $0x8] sm:$0xff]   ;;  %s640_s11 = scalar_lea.vmem %s1893_s10, %s1210_s9 [#allocation3] }
  0x1f   : > { %v1837_v29 = vld [vmem:[%s1776_s15] sm:$0xff]   ;;  %s689_s15 = sshra.s32 %s1211_s13, 3 }
  0x20   : > { %1346 = vmatpush3.bf16.msra.mxu1 %v1785_v14  ;;  %v1176_v35 = vld [vmem:[%s263_s17] ss:$0 sm:$0xff]  ;;  %s1212_s16 = sshll.u32 %s689_s15, 2 }
  0x21   : > { %1236 = vmatpush3.bf16.msra.mxu0 %v1553_v7  ;;  %1347 = vmatprep.subr.bf16.mxu1 %v1662_v1  ;;  %s692_s17 = scalar_lea.vmem %s1893_s10, %s1212_s16 [#allocation3] }
  0x22   : > { %1237 = vmatprep.subr.bf16.mxu0 %v1554_v8  ;;  %s694_s23 = scalar_select %p541_p11, 2, 5 }
  0x24   : > { %1348 = vmatpush3.bf16.msra.mxu1 %v1792_v17  ;;  %s1213_s25 = sshll.u32 %s694_s23, 3 }
  0x25   : > { %1238 = vmatpush3.bf16.msra.mxu0 %v1555_v9  ;;  %1349 = vmatprep.subr.bf16.mxu1 %v1662_v1  ;;  %s741_s6 = sshra.s32 %s1213_s25, 3 }
  0x26   : > { %1239 = vmatprep.subr.bf16.mxu0 %v1556_v10  ;;  %s1214_s8 = sshll.u32 %s741_s6, 2 }
  0x27   : > { %s744_s9 = scalar_lea.vmem %s1893_s10, %s1214_s8 [#allocation3] }
  0x28   : > { %1350 = vmatpush3.bf16.msra.mxu1 %v1799_v20 }
  0x29   : > { %1240 = vmatpush3.bf16.msra.mxu0 %v1557_v11  ;;  %1351 = vmatprep.subr.bf16.mxu1 %v1662_v1 }
  0x2a   : > { %1241 = vmatprep.subr.bf16.mxu0 %v1558_v12 }
  0x2c   : > { %1352 = vmatpush3.bf16.msra.mxu1 %v1808_v23 }
  0x2d   : > { %1242 = vmatpush3.bf16.msra.mxu0 %v1559_v15  ;;  %1353 = vmatprep.subr.bf16.mxu1 %v1662_v1 }
  0x2e   : > { %1243 = vmatprep.subr.bf16.mxu0 %v1560_v16 }
  0x30   : > { %1354 = vmatpush3.bf16.msra.mxu1 %v1817_v25 }
  0x31   : > { %1244 = vmatpush3.bf16.msra.mxu0 %v1561_v18  ;;  %1355 = vmatprep.subr.bf16.mxu1 %v1662_v1 }
  0x32   : > { %1245 = vmatprep.subr.bf16.mxu0 %v1562_v19 }
  0x34   : > { %1356 = vmatpush3.bf16.msra.mxu1 %v1827_v27 }
  0x35   : > { %1246 = vmatpush3.bf16.msra.mxu0 %v1563_v21  ;;  %1357 = vmatprep.subr.bf16.mxu1 %v1662_v1 }
  0x36   : > { %1363 = vmatprep.subr.bf16.mxu0 %v1662_v1 }
  0x38   : > { %501 = vmatmul.mubr.bf16.vlgmr.msra.gmra.mxu0 %v1564_v22  ;;  %1358 = vmatpush3.bf16.msra.mxu1 %v1837_v29 }
  0x39   : > { %508 = vmatprep.mubr.bf16.mxu0 %v1568_v24  ;;  %1364 = vmatpush3.bf16.msra.mxu0 %v1781_v13 }
  0x3a   : > { %1365 = vmatprep.subr.bf16.mxu0 %v1662_v1  ;;  %1383 = vmatprep.subr.bf16.mxu1 %v1662_v1 }
  0x3b   : > { %1360 = vmatmul.mubr.bf16.vlgmr.msra.gmra.mxu1 %v1664_v32 }
  0x3c   : > { %1384 = vmatpush3.bf16.msra.mxu1 %v1781_v13  ;;  %1399 = vmatprep.mubr.msk.bf16.mxu1 %vm1663_vm0, %v1662_v1 }
  0x3d   : > { %1366 = vmatpush3.bf16.msra.mxu0 %v1785_v14  ;;  %1385 = vmatprep.subr.bf16.mxu1 %v1662_v1 }
  0x3e   : > { %1367 = vmatprep.subr.bf16.mxu0 %v1662_v1 }
  0x40   : > { %509 = vmatmul.mubr.bf16.gmra.mxu0 %v1570_v26  ;;  %1386 = vmatpush3.bf16.msra.mxu1 %v1785_v14 }
  0x41   : > { %516 = vmatprep.mubr.bf16.mxu0 %v1573_v28  ;;  %1368 = vmatpush3.bf16.msra.mxu0 %v1792_v17 }
  0x42   : > { %1369 = vmatprep.subr.bf16.mxu0 %v1662_v1  ;;  %1387 = vmatprep.subr.bf16.mxu1 %v1662_v1 }
  0x44   : > { %1388 = vmatpush3.bf16.msra.mxu1 %v1792_v17 }
  0x45   : > { %1370 = vmatpush3.bf16.msra.mxu0 %v1799_v20  ;;  %1389 = vmatprep.subr.bf16.mxu1 %v1662_v1 }
  0x46   : > { %1371 = vmatprep.subr.bf16.mxu0 %v1662_v1 }
  0x48   : > { %517 = vmatmul.mubr.bf16.gmra.mxu0 %v1575_v30  ;;  %1390 = vmatpush3.bf16.msra.mxu1 %v1799_v20 }
  0x49   : > { %524 = vmatprep.mubr.bf16.mxu0 %v1578_v31  ;;  %1372 = vmatpush3.bf16.msra.mxu0 %v1808_v23 }
  0x4a   : > { %1373 = vmatprep.subr.bf16.mxu0 %v1662_v1  ;;  %1391 = vmatprep.subr.bf16.mxu1 %v1662_v1 }
  0x4c   : > { %1392 = vmatpush3.bf16.msra.mxu1 %v1808_v23 }
  0x4d   : > { %1374 = vmatpush3.bf16.msra.mxu0 %v1817_v25  ;;  %1393 = vmatprep.subr.bf16.mxu1 %v1662_v1 }
  0x4e   : > { %1375 = vmatprep.subr.bf16.mxu0 %v1662_v1 }
  0x50   : > { %525 = vmatmul.mubr.bf16.gmra.mxu0 %v1580_v33  ;;  %1394 = vmatpush3.bf16.msra.mxu1 %v1817_v25 }
  0x51   : > { %1379 = vmatprep.mubr.msk.bf16.mxu0 %vm1663_vm0, %v1662_v1  ;;  %1376 = vmatpush3.bf16.msra.mxu0 %v1827_v27 }
  0x52   : > { %1377 = vmatprep.subr.bf16.mxu0 %v1662_v1  ;;  %1395 = vmatprep.subr.bf16.mxu1 %v1662_v1 }
  0x54   : > { %1396 = vmatpush3.bf16.msra.mxu1 %v1827_v27 }
  0x55   : > { %1378 = vmatpush3.bf16.msra.mxu0 %v1837_v29  ;;  %1397 = vmatprep.subr.bf16.mxu1 %v1662_v1 }
  0x56   : > { %1403 = vmatprep.subr.bf16.mxu0 %v1662_v1 }
  0x58   : > { %1398 = vmatpush3.bf16.msra.mxu1 %v1837_v29 }
  0x59   : > { %1423 = vmatprep.subr.bf16.mxu1 %v1662_v1 }
  0xf8   : > { %v1247_v34 = vpop.f32.mrf.mxu0 }
  0xfa   : > { %v1248_v36 = vpop.f32.mrf.mxu0 }
  0xfb   : > { %v1249_v37 = vadd.f32 %v1248_v36, %v1247_v34  ;;  %v628_v50 = vpop.f32.mrf.mxu1 }
  0xfc   : > { %v1250_v38 = vpop.f32.mrf.mxu0 }
  0xfd   : > { %v503_v39 = vadd.f32 %v1249_v37, %v1176_v35  ;;  %v1361_v53 = vpop.f32.mrf.mxu1 }
  0xfe   : > { %v1251_v40 = vpop.f32.mrf.mxu0 }
  0xff   : > { %533 = vst [vmem:[#allocation2] sm:$0xff] %v503_v39  ;;  %v1252_v41 = vadd.f32 %v1251_v40, %v1250_v38  ;;  %v631_v56 = vpop.f32.mrf.mxu1 }
 0x100   : > { %v1253_v42 = vpop.f32.mrf.mxu0 }
 0x101   : > { %v506_v43 = vadd.f32 %v1252_v41, %v1176_v35  ;;  %v1362_v59 = vpop.f32.mrf.mxu1 }
 0x102   : > { %v1254_v44 = vpop.f32.mrf.mxu0 }
 0x103   : > { %534 = vst [vmem:[#allocation2 + $0x8] sm:$0xff] %v506_v43  ;;  %v1255_v45 = vadd.f32 %v1254_v44, %v1253_v42 }
 0x104   : > { %v1256_v46 = vpop.f32.mrf.mxu0 }
 0x105   : > { %v511_v47 = vadd.f32 %v1255_v45, %v1176_v35 }
 0x106   : > { %v1257_v48 = vpop.f32.mrf.mxu0 }
 0x107   : > { %535 = vst [vmem:[#allocation2 + $0x10] sm:$0xff] %v511_v47  ;;  %v1258_v49 = vadd.f32 %v1257_v48, %v1256_v46 }
 0x108   : > { %v1259_v51 = vpop.f32.mrf.mxu0 }
 0x109   : > { %v514_v52 = vadd.f32 %v1258_v49, %v1176_v35 }
 0x10a   : > { %v1260_v54 = vpop.f32.mrf.mxu0 }
 0x10b   : > { %536 = vst [vmem:[#allocation2 + $0x18] sm:$0xff] %v514_v52  ;;  %v1261_v55 = vadd.f32 %v1260_v54, %v1259_v51 }
 0x10c   : > { %v1262_v57 = vpop.f32.mrf.mxu0 }
 0x10d   : > { %v519_v58 = vadd.f32 %v1261_v55, %v1176_v35 }
 0x10e   : > { %v1263_v60 = vpop.f32.mrf.mxu0 }
 0x10f   : > { %537 = vst [vmem:[#allocation2 + $0x20] sm:$0xff] %v519_v58  ;;  %v1264_v61 = vadd.f32 %v1263_v60, %v1262_v57 }
 0x110   : > { %v1265_v62 = vpop.f32.mrf.mxu0 }
 0x111   : > { %v522_v63 = vadd.f32 %v1264_v61, %v1176_v35 }
 0x112   : > { %v1266_v0 = vpop.f32.mrf.mxu0 }
 0x113   : > { %538 = vst [vmem:[#allocation2 + $0x28] sm:$0xff] %v522_v63  ;;  %v1267_v2 = vadd.f32 %v1266_v0, %v1265_v62 }
 0x114   : > { %v1268_v3 = vpop.f32.mrf.mxu0 }
 0x115   : > { %v527_v4 = vadd.f32 %v1267_v2, %v1176_v35 }
 0x116   : > { %v1269_v5 = vpop.f32.mrf.mxu0 }
 0x117   : > { %539 = vst [vmem:[#allocation2 + $0x30] sm:$0xff] %v527_v4  ;;  %v1270_v6 = vadd.f32 %v1269_v5, %v1268_v3 }
 0x119   : > { %v530_v7 = vadd.f32 %v1270_v6, %v1176_v35 }
 0x11b   : > { %540 = vst [vmem:[#allocation2 + $0x38] sm:$0xff] %v530_v7 }
 0x122   : > { %v545_v8 = vld [vmem:[%s544_s26] sm:$0xff]  ;;  %s696_s26 = scalar_lea.vmem [#allocation2], %s1213_s25 }
 0x123   : > { %v634_v9 = vadd.f32 %v628_v50, %v545_v8  ;;  %v645_v12 = vld [vmem:[%s644_s14] sm:$0xff] }
 0x124   : > { %v697_v26 = vld [vmem:[%s696_s26] sm:$0xff] }
 0x125   : > { %1584 = vtanh.f32 %v634_v9 }
 0x132   : > { %v1585_v10 = vpop.eup %1584 }
 0x133   : > { %v636_v11 = vpack.c.bf16 %v1585_v10, %v1585_v10 }
 0x135   : > { %641 = vst [vmem:[%s640_s11] sm:$0xf] %v636_v11  ;;  %1380 = vmatmul.mubr.bf16.vlgmr.msra.gmra.mxu0 %v636_v11  ;;  %s746_s11 = scalar_select %p541_p11, 3, 4 }
 0x136   : > { %1404 = vmatpush3.bf16.msra.mxu0 %v1781_v13  ;;  %1419 = vmatprep.mubr.msk.bf16.mxu0 %vm1663_vm0, %v1662_v1 }
 0x137   : > { %1405 = vmatprep.subr.bf16.mxu0 %v1662_v1  ;;  %s1215_s12 = sshll.u32 %s746_s11, 3 }
 0x138   : > { %s748_s13 = scalar_lea.vmem [#allocation2], %s1215_s12  ;;  %s793_s14 = sshra.s32 %s1215_s12, 3 }
 0x139   : > { %v749_v36 = vld [vmem:[%s748_s13] sm:$0xff]  ;;  %s1216_s15 = sshll.u32 %s793_s14, 2 }
 0x13a   : > { %1406 = vmatpush3.bf16.msra.mxu0 %v1785_v14  ;;  %s796_s16 = scalar_lea.vmem %s1893_s10, %s1216_s15 [#allocation3] }
 0x13b   : > { %1407 = vmatprep.subr.bf16.mxu0 %v1662_v1 }
 0x13e   : > { %1408 = vmatpush3.bf16.msra.mxu0 %v1792_v17 }
 0x13f   : > { %1409 = vmatprep.subr.bf16.mxu0 %v1662_v1 }
 0x142   : > { %1410 = vmatpush3.bf16.msra.mxu0 %v1799_v20 }
 0x143   : > { %1411 = vmatprep.subr.bf16.mxu0 %v1662_v1 }
 0x146   : > { %1412 = vmatpush3.bf16.msra.mxu0 %v1808_v23 }
 0x147   : > { %1413 = vmatprep.subr.bf16.mxu0 %v1662_v1 }
 0x14a   : > { %1414 = vmatpush3.bf16.msra.mxu0 %v1817_v25 }
 0x14b   : > { %1415 = vmatprep.subr.bf16.mxu0 %v1662_v1 }
 0x14e   : > { %1416 = vmatpush3.bf16.msra.mxu0 %v1827_v27 }
 0x14f   : > { %1417 = vmatprep.subr.bf16.mxu0 %v1662_v1 }
 0x152   : > { %1418 = vmatpush3.bf16.msra.mxu0 %v1837_v29 }
 0x153   : > { %1443 = vmatprep.subr.bf16.mxu0 %v1662_v1 }
 0x1f5   : > { %v680_v15 = vpop.f32.mrf.mxu0 }
 0x1f6   : > { %v686_v16 = vadd.f32 %v680_v15, %v645_v12 }
 0x1f7   : > { %v1381_v18 = vpop.f32.mrf.mxu0 }
 0x1f8   : > { %1586 = vtanh.f32 %v686_v16 }
 0x1f9   : > { %v683_v19 = vpop.f32.mrf.mxu0 }
 0x1fb   : > { %v1382_v21 = vpop.f32.mrf.mxu0 }
 0x205   : > { %v1587_v22 = vpop.eup %1586 }
 0x206   : > { %v688_v24 = vpack.c.bf16 %v1587_v22, %v1587_v22 }
 0x208   : > { %693 = vst [vmem:[%s692_s17] sm:$0xf] %v688_v24  ;;  %1400 = vmatmul.mubr.bf16.vlgmr.msra.gmra.mxu1 %v688_v24  ;;  %s798_s17 = scalar_select %p541_p11, 4, 3 }
 0x209   : > { %1424 = vmatpush3.bf16.msra.mxu1 %v1781_v13  ;;  %1439 = vmatprep.mubr.msk.bf16.mxu1 %vm1663_vm0, %v1662_v1 }
 0x20a   : > { %1425 = vmatprep.subr.bf16.mxu1 %v1662_v1  ;;  %s1217_s23 = sshll.u32 %s798_s17, 3 }
 0x20b   : > { %s800_s25 = scalar_lea.vmem [#allocation2], %s1217_s23  ;;  %s845_s26 = sshra.s32 %s1217_s23, 3 }
 0x20c   : > { %v801_v44 = vld [vmem:[%s800_s25] sm:$0xff]  ;;  %s1218_s6 = sshll.u32 %s845_s26, 2 }
 0x20d   : > { %1426 = vmatpush3.bf16.msra.mxu1 %v1785_v14  ;;  %s848_s8 = scalar_lea.vmem %s1893_s10, %s1218_s6 [#allocation3] }
 0x20e   : > { %1427 = vmatprep.subr.bf16.mxu1 %v1662_v1 }
 0x211   : > { %1428 = vmatpush3.bf16.msra.mxu1 %v1792_v17 }
 0x212   : > { %1429 = vmatprep.subr.bf16.mxu1 %v1662_v1 }
 0x215   : > { %1430 = vmatpush3.bf16.msra.mxu1 %v1799_v20 }
 0x216   : > { %1431 = vmatprep.subr.bf16.mxu1 %v1662_v1 }
 0x219   : > { %1432 = vmatpush3.bf16.msra.mxu1 %v1808_v23 }
 0x21a   : > { %1433 = vmatprep.subr.bf16.mxu1 %v1662_v1 }
 0x21d   : > { %1434 = vmatpush3.bf16.msra.mxu1 %v1817_v25 }
 0x21e   : > { %1435 = vmatprep.subr.bf16.mxu1 %v1662_v1 }
 0x221   : > { %1436 = vmatpush3.bf16.msra.mxu1 %v1827_v27 }
 0x222   : > { %1437 = vmatprep.subr.bf16.mxu1 %v1662_v1 }
 0x225   : > { %1438 = vmatpush3.bf16.msra.mxu1 %v1837_v29 }
 0x226   : > { %1463 = vmatprep.subr.bf16.mxu1 %v1662_v1 }
 0x2c8   : > { %v732_v28 = vpop.f32.mrf.mxu1 }
 0x2c9   : > { %v738_v30 = vadd.f32 %v732_v28, %v697_v26 }
 0x2ca   : > { %v1401_v31 = vpop.f32.mrf.mxu1 }
 0x2cb   : > { %1588 = vtanh.f32 %v738_v30 }
 0x2cc   : > { %v735_v32 = vpop.f32.mrf.mxu1 }
 0x2ce   : > { %v1402_v33 = vpop.f32.mrf.mxu1 }
 0x2d8   : > { %v1589_v34 = vpop.eup %1588 }
 0x2d9   : > { %v740_v35 = vpack.c.bf16 %v1589_v34, %v1589_v34 }
 0x2db   : > { %745 = vst [vmem:[%s744_s9] sm:$0xf] %v740_v35  ;;  %1420 = vmatmul.mubr.bf16.vlgmr.msra.gmra.mxu0 %v740_v35  ;;  %s850_s9 = scalar_select %p541_p11, 5, 2 }
 0x2dc   : > { %1444 = vmatpush3.bf16.msra.mxu0 %v1781_v13  ;;  %1459 = vmatprep.mubr.msk.bf16.mxu0 %vm1663_vm0, %v1662_v1 }
 0x2dd   : > { %1445 = vmatprep.subr.bf16.mxu0 %v1662_v1  ;;  %s1219_s11 = sshll.u32 %s850_s9, 3 }
 0x2de   : > { %s852_s12 = scalar_lea.vmem [#allocation2], %s1219_s11  ;;  %s897_s13 = sshra.s32 %s1219_s11, 3 }
 0x2df   : > { %s1220_s14 = sshll.u32 %s897_s13, 2  ;;  %s1175_s13 = sshll.u32 %s1753_s7, 3 }
 0x2e0   : > { %1446 = vmatpush3.bf16.msra.mxu0 %v1785_v14  ;;  %s900_s15 = scalar_lea.vmem %s1893_s10, %s1220_s14 [#allocation3] }
 0x2e1   : > { %1447 = vmatprep.subr.bf16.mxu0 %v1662_v1 }
 0x2e4   : > { %1448 = vmatpush3.bf16.msra.mxu0 %v1792_v17 }
 0x2e5   : > { %1449 = vmatprep.subr.bf16.mxu0 %v1662_v1 }
 0x2e8   : > { %1450 = vmatpush3.bf16.msra.mxu0 %v1799_v20 }
 0x2e9   : > { %1451 = vmatprep.subr.bf16.mxu0 %v1662_v1 }
 0x2ec   : > { %1452 = vmatpush3.bf16.msra.mxu0 %v1808_v23 }
 0x2ed   : > { %1453 = vmatprep.subr.bf16.mxu0 %v1662_v1 }
 0x2f0   : > { %1454 = vmatpush3.bf16.msra.mxu0 %v1817_v25 }
 0x2f1   : > { %1455 = vmatprep.subr.bf16.mxu0 %v1662_v1 }
 0x2f4   : > { %1456 = vmatpush3.bf16.msra.mxu0 %v1827_v27 }
 0x2f5   : > { %1457 = vmatprep.subr.bf16.mxu0 %v1662_v1 }
 0x2f8   : > { %1458 = vmatpush3.bf16.msra.mxu0 %v1837_v29 }
 0x2f9   : > { %1483 = vmatprep.subr.bf16.mxu0 %v1662_v1 }
 0x39b   : > { %v784_v37 = vpop.f32.mrf.mxu0 }
 0x39c   : > { %v790_v38 = vadd.f32 %v784_v37, %v749_v36 }
 0x39d   : > { %v1421_v39 = vpop.f32.mrf.mxu0 }
 0x39e   : > { %1590 = vtanh.f32 %v790_v38 }
 0x39f   : > { %v787_v40 = vpop.f32.mrf.mxu0 }
 0x3a1   : > { %v1422_v41 = vpop.f32.mrf.mxu0 }
 0x3ab   : > { %v1591_v42 = vpop.eup %1590 }
 0x3ac   : > { %v792_v43 = vpack.c.bf16 %v1591_v42, %v1591_v42 }
 0x3ae   : > { %797 = vst [vmem:[%s796_s16] sm:$0xf] %v792_v43  ;;  %1440 = vmatmul.mubr.bf16.vlgmr.msra.gmra.mxu1 %v792_v43  ;;  %s902_s16 = scalar_select %p541_p11, 6, 1 }
 0x3af   : > { %1464 = vmatpush3.bf16.msra.mxu1 %v1781_v13  ;;  %1479 = vmatprep.mubr.msk.bf16.mxu1 %vm1663_vm0, %v1662_v1 }
 0x3b0   : > { %1465 = vmatprep.subr.bf16.mxu1 %v1662_v1  ;;  %s1221_s17 = sshll.u32 %s902_s16, 3  ;;  %s1024_s16 = sshll.u32 %s1893_s10, 4  ;;  %s2016_s16 = int_to_ptr.vmem [resolvable:$true] %s1024_s16 }
 0x3b1   : > { %s904_s23 = scalar_lea.vmem [#allocation2], %s1221_s17  ;;  %s949_s25 = sshra.s32 %s1221_s17, 3 }
 0x3b2   : > { %s1222_s26 = sshll.u32 %s949_s25, 2  ;;  %s267_s25 = scalar_lea.vmem %s2065_s5, %s1175_s13 }
 0x3b3   : > { %1466 = vmatpush3.bf16.msra.mxu1 %v1785_v14  ;;  %s952_s6 = scalar_lea.vmem %s1893_s10, %s1222_s26 [#allocation3]  ;;  %s1600_s7 = scalar_lea.vmem %s2016_s16, 512 }
 0x3b4   : > { %1467 = vmatprep.subr.bf16.mxu1 %v1662_v1  ;;  %p1601_p12 = scmp.ne.s32.totalorder %s2016_s16, %s1600_s7 }
 0x3b6   : > { %p1602_p13 = pnand %p1601_p12, %p1737_p5 }
 0x3b7   : > { %1468 = vmatpush3.bf16.msra.mxu1 %v1792_v17 }
 0x3b8   : > { %1469 = vmatprep.subr.bf16.mxu1 %v1662_v1  ;;  %p1603_p0 = pneg %p1602_p13 }
 0x3bb   : > { %1470 = vmatpush3.bf16.msra.mxu1 %v1799_v20 }
 0x3bc   : > { %1471 = vmatprep.subr.bf16.mxu1 %v1662_v1 }
 0x3bf   : > { %1472 = vmatpush3.bf16.msra.mxu1 %v1808_v23 }
 0x3c0   : > { %1473 = vmatprep.subr.bf16.mxu1 %v1662_v1 }
 0x3c3   : > { %1474 = vmatpush3.bf16.msra.mxu1 %v1817_v25 }
 0x3c4   : > { %1475 = vmatprep.subr.bf16.mxu1 %v1662_v1 }
 0x3c7   : > { %1476 = vmatpush3.bf16.msra.mxu1 %v1827_v27 }
 0x3c8   : > { %1477 = vmatprep.subr.bf16.mxu1 %v1662_v1 }
 0x3cb   : > { %1478 = vmatpush3.bf16.msra.mxu1 %v1837_v29 }
 0x46e   : > { %v836_v45 = vpop.f32.mrf.mxu1 }
 0x46f   : > { %v842_v46 = vadd.f32 %v836_v45, %v801_v44 }
 0x470   : > { %v1441_v47 = vpop.f32.mrf.mxu1 }
 0x471   : > { %1592 = vtanh.f32 %v842_v46 }
 0x472   : > { %v839_v48 = vpop.f32.mrf.mxu1 }
 0x474   : > { %v1442_v49 = vpop.f32.mrf.mxu1 }
 0x47e   : > { %v1593_v50 = vpop.eup %1592 }
 0x47f   : > { %v844_v51 = vpack.c.bf16 %v1593_v50, %v1593_v50 }
 0x481   : > { %849 = vst [vmem:[%s848_s8] sm:$0xf] %v844_v51  ;;  %1460 = vmatmul.mubr.bf16.vlgmr.msra.gmra.mxu0 %v844_v51  ;;  %s954_s8 = scalar_select %p541_p11, 7, 0 }
 0x482   : > { %1484 = vmatpush3.bf16.msra.mxu0 %v1781_v13  ;;  %1499 = vmatprep.mubr.msk.bf16.mxu0 %vm1663_vm0, %v1662_v1  ;;  %v853_v13 = vld [vmem:[%s852_s12] sm:$0xff] }
 0x483   : > { %1485 = vmatprep.subr.bf16.mxu0 %v1662_v1  ;;  %s1223_s9 = sshll.u32 %s954_s8, 3 }
 0x484   : > { %s956_s11 = scalar_lea.vmem [#allocation2], %s1223_s9  ;;  %s1001_s12 = sshra.s32 %s1223_s9, 3 }
 0x485   : > { %v957_v59 = vld [vmem:[%s956_s11] sm:$0xff]  ;;  %s1224_s14 = sshll.u32 %s1001_s12, 2 }
 0x486   : > { %1486 = vmatpush3.bf16.msra.mxu0 %v1785_v14  ;;  %s1004_s26 = scalar_lea.vmem %s1893_s10, %s1224_s14 [#allocation3]  ;;  %s1665_s10 = smov [#allocation3]  }
 0x487   : > { %1487 = vmatprep.subr.bf16.mxu0 %v1662_v1  ;;  %s1604_s9 = sshll.u32 %s1665_s10, 4  ;;  %s1605_s9 = int_to_ptr.vmem [resolvable:$false] %s1604_s9 }
 0x488   : > { %s1606_s12 = scalar_lea.vmem %s1605_s9, 1024  ;;  %p1607_p1 = scmp.lt.s32.totalorder %s2016_s16, %s1605_s9 }
 0x489   : > { %p1608_p2 = scmp.lt.s32.totalorder %s1606_s12, %s1600_s7 }
 0x48a   : > { %1488 = vmatpush3.bf16.msra.mxu0 %v1792_v17 }
 0x48b   : > { %1489 = vmatprep.subr.bf16.mxu0 %v1662_v1  ;;  %p1609_p3 = por %p1608_p2, %p1607_p1 }
 0x48d   : > { %p1610_p4 = pnand %p1609_p3, %p1603_p0 }
 0x48e   : > { %1490 = vmatpush3.bf16.msra.mxu0 %v1799_v20 }
 0x48f   : > { %1491 = vmatprep.subr.bf16.mxu0 %v1662_v1 }
 0x492   : > { %1492 = vmatpush3.bf16.msra.mxu0 %v1808_v23 }
 0x493   : > { %1493 = vmatprep.subr.bf16.mxu0 %v1662_v1 }
 0x496   : > { %1494 = vmatpush3.bf16.msra.mxu0 %v1817_v25 }
 0x497   : > { %1495 = vmatprep.subr.bf16.mxu0 %v1662_v1 }
 0x49a   : > { %1496 = vmatpush3.bf16.msra.mxu0 %v1827_v27 }
 0x49b   : > { %1497 = vmatprep.subr.bf16.mxu0 %v1662_v1  ;;  %v905_v1 = vld [vmem:[%s904_s23] sm:$0xff] }
 0x49e   : > { %1498 = vmatpush3.bf16.msra.mxu0 %v1837_v29 }
 0x541   : > { %v888_v14 = vpop.f32.mrf.mxu0 }
 0x542   : > { %v894_v17 = vadd.f32 %v888_v14, %v853_v13 }
 0x543   : > { %v1461_v20 = vpop.f32.mrf.mxu0 }
 0x544   : > { %1594 = vtanh.f32 %v894_v17 }
 0x545   : > { %v891_v23 = vpop.f32.mrf.mxu0 }
 0x547   : > { %v1462_v25 = vpop.f32.mrf.mxu0 }
 0x551   : > { %v1595_v27 = vpop.eup %1594 }
 0x552   : > { %v896_v52 = vpack.c.bf16 %v1595_v27, %v1595_v27 }
 0x554   : > { %901 = vst [vmem:[%s900_s15] sm:$0xf] %v896_v52  ;;  %1480 = vmatmul.mubr.bf16.vlgmr.msra.gmra.mxu1 %v896_v52  ;;  %s1226_s15 = sshll.u32 %s1720_s22, 6  ;;  %s2020_s22 = scalar_lea.sflag [#allocation4], %s242_s30 }
 0x555   : > { %s2014_s11 = scalar_lea.hbm %s2064_s4, %s1226_s15 }
 0x614   : > { %v940_v29 = vpop.f32.mrf.mxu1 }
 0x615   : > { %v946_v53 = vadd.f32 %v940_v29, %v905_v1 }
 0x616   : > { %v1481_v54 = vpop.f32.mrf.mxu1 }
 0x617   : > { %1596 = vtanh.f32 %v946_v53 }
 0x618   : > { %v943_v55 = vpop.f32.mrf.mxu1 }
 0x61a   : > { %v1482_v56 = vpop.f32.mrf.mxu1 }
 0x624   : > { %v1597_v57 = vpop.eup %1596 }
 0x625   : > { %v948_v58 = vpack.c.bf16 %v1597_v57, %v1597_v57 }
 0x627   : > { %953 = vst [vmem:[%s952_s6] sm:$0xf] %v948_v58  ;;  %1500 = vmatmul.mubr.bf16.vlgmr.msra.gmra.mxu0 %v948_v58 }
 0x6e7   : > { %v992_v60 = vpop.f32.mrf.mxu0 }
 0x6e8   : > { %v998_v61 = vadd.f32 %v992_v60, %v957_v59 }
 0x6e9   : > { %v1501_v62 = vpop.f32.mrf.mxu0 }
 0x6ea   : > { %1598 = vtanh.f32 %v998_v61 }
 0x6eb   : > { %v995_v63 = vpop.f32.mrf.mxu0 }
 0x6ed   : > { %v1502_v0 = vpop.f32.mrf.mxu0 }
 0x6f7   : > { %v1599_v2 = vpop.eup %1598 }
 0x6f8   : > { %v1000_v3 = vpack.c.bf16 %v1599_v2, %v1599_v2  ;;  %1006 = vst [vmem:[%s267_s25] sm:$0xff] %v1599_v2 }
 0x6fa   : > { %1005 = vst [vmem:[%s1004_s26] sm:$0xf] %v1000_v3 }
 0x6fb   : > { %1613 = shalt.err (!%p1610_p4)
}
 0x6fc   : > { %s1614_s30 = scalar_lea.hbm %s2014_s11, 512  ;;  %s1618_s15 = scalar_lea.hbm %s2064_s4, 1024 }
 0x6fd   : > { %p1615_p7 = scmp.ne.s32.totalorder %s2014_s11, %s1614_s30  ;;  %p1619_p10 = scmp.lt.s32.totalorder %s2014_s11, %s2064_s4 }
 0x6fe   : > { %p1620_p11 = scmp.lt.s32.totalorder %s1618_s15, %s1614_s30 }
 0x6ff   : > { %p1616_p8 = pnand %p1615_p7, %p1737_p5 }
 0x700   : > { %p1621_p12 = por %p1620_p11, %p1619_p10 }
 0x701   : > { %p1617_p9 = pneg %p1616_p8 }
 0x703   : > { %p1622_p13 = pnand %p1621_p12, %p1617_p9 }
 0x705   : > { %1625 = shalt.err (!%p1622_p13)
}
 0x706   : > { %s1666_s25 = smov 64   ;;  %s1667_s26 = smov 128  }
 0x707   : > { %s1668_s6 = smov 4  }
 0x708   : > { %1503 = dma.vmem_to_hbm [thread:$0]  (%p1737_p5), %s2016_s16, 512, %s2014_s11, %s2020_s22, %s1666_s25, %s1667_s26, %s1668_s6  }
 0x709 PF: > { %p1509_p0 = scmp.ge.s32.totalorder %s1660_s21, 2  ;;  %s1042_s8 = sand.u32 1, %s1648_s18  }
 0x70a   : > { %s1043_s7 = scalar_lea.sflag [#allocation4], %s1042_s8 }
 0x70b   : > { %p1506_p1 = pnand %p1509_p0, %p1741_p6 }
 0x70d   : > { %p1507_p2 = pneg %p1506_p1 }
 0x70f   : > { %1643 = dma.done.wait (%p1507_p2), %s1043_s7, 512  }
 0x710   : > { %1645 = vsyncadd (%p1507_p2), %s1043_s7, 4294966784  ;;  %p16_p3 = scmp.ge.s32.totalorder %s1724_s24, 4   ;;  %s2068_s18 = smov %s1652_s19 }
 0x711   : > { %s2069_s19 = smov %s1656_s20  ;;  %s2070_s20 = smov %s1735_s27 }
 0x712   : > { %s2071_s21 = smov %s1724_s24  ;;  %18 = sbr.rel (!%p16_p3) target bundleno = 3 (0x3), region = 105 }
 0x717   :  { %1055 = vsyncpa [#allocation4], 1 }
 0x718   :  { %1057 = vsyncpa [#allocation4 + $0x1], 1 }

// kernel: forward.5
= control target key start
LH: loop header
LB: loop body
LE: loop exit
PB: predicated region body
PF: predicated region fallthrough
CT: control target
= control target key end

     0   :  { %v4919_v0 = vmov 0.0   ;;  %vm3541_vm0 = vmmov 0   ;;  %s4902_s1 = inlined_call_operand.vmem [shape: f32[128,128], index: 1, kind: input, shape index: {}]   ;;  %s4903_s4 = inlined_call_operand.vmem [shape: bf16[2,128,128], index: 4, kind: input, shape index: {}]   ;;  %s4904_s5 = inlined_call_operand.vmem [shape: bf16[2,128,128], index: 5, kind: input, shape index: {}]   ;;  %s4905_s0 = inlined_call_operand.vmem [shape: f32[2,8,128], index: 0, kind: input, shape index: {}]   ;;  %s4906_s3 = inlined_call_operand.vmem [shape: bf16[8,128], index: 3, kind: input, shape index: {}]   ;;  %s4907_s2 = inlined_call_operand.vmem [shape: f32[1,128], index: 2, kind: input, shape index: {}]   ;;  %s4908_s7 = inlined_call_operand.vmem [shape: bf16[128,128], index: 7, kind: input, shape index: {}]   ;;  %s4909_s6 = inlined_call_operand.vmem [shape: f32[2,1,128], index: 6, kind: input, shape index: {}]   ;;  %s4910_s8 = inlined_call_operand.vmem [shape: f32[1,128], index: 8, kind: input, shape index: {}]   ;;  %s4911_s10 = inlined_call_operand.vmem [shape: f32[6,8,128], index: 10, kind: output, shape index: {}]   ;;  %s4912_s9 = inlined_call_operand.vmem [shape: bf16[128,128], index: 9, kind: input, shape index: {}]  }
   0x1   :  { %2643 = vmatprep.subr.mxu0 %v4919_v0  ;;  %v51_v1 = vld [vmem:[%s4902_s1 + $0x78] sm:$0xff]  ;;  %v50_v2 = vld [vmem:[%s4902_s1 + $0x70] sm:$0xff]  ;;  %2675 = vmatprep.mubr.msk.f32.mxu0 %vm3541_vm0, %v4919_v0  ;;  %v49_v3 = vld [vmem:[%s4902_s1 + $0x68] sm:$0xff] }
   0x2   :  { %2644 = vmatpush3.msra.mxu0 %v51_v1  ;;  %2678 = vmatprep.subr.mxu1 %v4919_v0  ;;  %v48_v4 = vld [vmem:[%s4902_s1 + $0x60] sm:$0xff]  ;;  %v47_v5 = vld [vmem:[%s4902_s1 + $0x58] sm:$0xff]  ;;  %v46_v6 = vld [vmem:[%s4902_s1 + $0x50] sm:$0xff] }
   0x3   :  { %2645 = vmatprep.subr.mxu0 %v4919_v0  ;;  %2679 = vmatpush3.msra.mxu1 %v51_v1  ;;  %v45_v7 = vld [vmem:[%s4902_s1 + $0x48] sm:$0xff]  ;;  %v44_v8 = vld [vmem:[%s4902_s1 + $0x40] sm:$0xff]  ;;  %v43_v9 = vld [vmem:[%s4902_s1 + $0x38] sm:$0xff] }
   0x4   :  { %2646 = vmatpush3.msra.mxu0 %v50_v2  ;;  %2680 = vmatprep.subr.mxu1 %v4919_v0  ;;  %v42_v10 = vld [vmem:[%s4902_s1 + $0x30] sm:$0xff]  ;;  %v41_v11 = vld [vmem:[%s4902_s1 + $0x28] sm:$0xff]  ;;  %v40_v12 = vld [vmem:[%s4902_s1 + $0x20] sm:$0xff] }
   0x5   :  { %2647 = vmatprep.subr.mxu0 %v4919_v0  ;;  %2681 = vmatpush3.msra.mxu1 %v50_v2  ;;  %v39_v13 = vld [vmem:[%s4902_s1 + $0x18] sm:$0xff]  ;;  %v38_v14 = vld [vmem:[%s4902_s1 + $0x10] sm:$0xff]  ;;  %v37_v15 = vld [vmem:[%s4902_s1 + $0x8] sm:$0xff] }
   0x6   :  { %2648 = vmatpush3.msra.mxu0 %v49_v3  ;;  %2682 = vmatprep.subr.mxu1 %v4919_v0  ;;  %v36_v16 = vld [vmem:[%s4902_s1] sm:$0xff]  ;;  %v2222_v18 = vld [vmem:[%s4905_s0 + $0x8] sm:$0xff]  ;;  %v3688_v19 = vld [vmem:[%s4903_s4 + $0x38] sm:$0xff]  }
   0x7   :  { %2649 = vmatprep.subr.mxu0 %v4919_v0  ;;  %2683 = vmatpush3.msra.mxu1 %v49_v3  ;;  %v155_v17 = vld [vmem:[%s4905_s0] sm:$0xff]  ;;  %v3693_v20 = vld [vmem:[%s4904_s5 + $0x38] sm:$0xff]   ;;  %v3705_v21 = vld [vmem:[%s4903_s4 + $0x30] sm:$0xff]  }
   0x8   :  { %2650 = vmatpush3.msra.mxu0 %v48_v4  ;;  %2684 = vmatprep.subr.mxu1 %v4919_v0  ;;  %v3711_v22 = vld [vmem:[%s4904_s5 + $0x30] sm:$0xff]   ;;  %v3723_v23 = vld [vmem:[%s4903_s4 + $0x28] sm:$0xff]   ;;  %v3737_v25 = vld [vmem:[%s4903_s4 + $0x20] sm:$0xff]  }
   0x9   :  { %2651 = vmatprep.subr.mxu0 %v4919_v0  ;;  %2685 = vmatpush3.msra.mxu1 %v48_v4  ;;  %v3729_v24 = vld [vmem:[%s4904_s5 + $0x28] sm:$0xff]   ;;  %v3743_v26 = vld [vmem:[%s4904_s5 + $0x20] sm:$0xff]   ;;  %v3751_v27 = vld [vmem:[%s4903_s4 + $0x18] sm:$0xff]  }
   0xa   :  { %2652 = vmatpush3.msra.mxu0 %v47_v5  ;;  %2686 = vmatprep.subr.mxu1 %v4919_v0  ;;  %v3757_v28 = vld [vmem:[%s4904_s5 + $0x18] sm:$0xff]   ;;  %v3765_v29 = vld [vmem:[%s4903_s4 + $0x10] sm:$0xff]   ;;  %v3779_v31 = vld [vmem:[%s4903_s4 + $0x8] sm:$0xff]  }
   0xb   :  { %2653 = vmatprep.subr.mxu0 %v4919_v0  ;;  %2687 = vmatpush3.msra.mxu1 %v47_v5  ;;  %v3771_v30 = vld [vmem:[%s4904_s5 + $0x10] sm:$0xff]   ;;  %v3785_v32 = vld [vmem:[%s4904_s5 + $0x8] sm:$0xff]   ;;  %v3793_v33 = vld [vmem:[%s4903_s4] sm:$0xff]  }
   0xc   :  { %2654 = vmatpush3.msra.mxu0 %v46_v6  ;;  %2688 = vmatprep.subr.mxu1 %v4919_v0  ;;  %v308_v34 = vld [vmem:[%s4906_s3] sm:$0xf]  ;;  %v3815_v36 = vld [vmem:[%s4903_s4 + $0x78] sm:$0xff]   ;;  %v3821_v37 = vld [vmem:[%s4903_s4 + $0x70] sm:$0xff]  }
   0xd   :  { %2655 = vmatprep.subr.mxu0 %v4919_v0  ;;  %2689 = vmatpush3.msra.mxu1 %v46_v6  ;;  %v3808_v35 = vld [vmem:[%s4904_s5] sm:$0xff]   ;;  %v3828_v38 = vld [vmem:[%s4903_s4 + $0x68] sm:$0xff]   ;;  %v3839_v43 = vld [vmem:[%s4904_s5 + $0x78] sm:$0xff]  }
   0xe   :  { %2656 = vmatpush3.msra.mxu0 %v45_v7  ;;  %2690 = vmatprep.subr.mxu1 %v4919_v0  ;;  %v2221_v39 = vld [vmem:[%s4907_s2] ss:$0 sm:$0xff]  ;;  %v3845_v47 = vld [vmem:[%s4904_s5 + $0x70] sm:$0xff]   ;;  %v3854_v48 = vld [vmem:[%s4904_s5 + $0x68] sm:$0xff]  }
   0xf   :  { %2657 = vmatprep.subr.mxu0 %v4919_v0  ;;  %2691 = vmatpush3.msra.mxu1 %v45_v7  ;;  %v3861_v49 = vld [vmem:[%s4904_s5 + $0x60] sm:$0xff]   ;;  %v3868_v50 = vld [vmem:[%s4904_s5 + $0x58] sm:$0xff]   ;;  %v3875_v51 = vld [vmem:[%s4904_s5 + $0x50] sm:$0xff]  }
  0x10   :  { %2658 = vmatpush3.msra.mxu0 %v44_v8  ;;  %2692 = vmatprep.subr.mxu1 %v4919_v0  ;;  %v3882_v52 = vld [vmem:[%s4904_s5 + $0x48] sm:$0xff]   ;;  %v3889_v54 = vld [vmem:[%s4904_s5 + $0x40] sm:$0xff]   ;;  %v3906_v61 = vld [vmem:[%s4903_s4 + $0x58] sm:$0xff]  }
  0x11   :  { %2659 = vmatprep.subr.mxu0 %v4919_v0  ;;  %2693 = vmatpush3.msra.mxu1 %v44_v8  ;;  %v3899_v60 = vld [vmem:[%s4903_s4 + $0x60] sm:$0xff]   ;;  %v3913_v62 = vld [vmem:[%s4903_s4 + $0x50] sm:$0xff]   ;;  %v3920_v63 = vld [vmem:[%s4903_s4 + $0x48] sm:$0xff]  }
  0x12   :  { %2660 = vmatpush3.msra.mxu0 %v43_v9  ;;  %2694 = vmatprep.subr.mxu1 %v4919_v0  ;;  %v3927_v1 = vld [vmem:[%s4903_s4 + $0x40] sm:$0xff]   ;;  %v3934_v2 = vld [vmem:[%s4908_s7 + $0x38] sm:$0xff]   ;;  %v3940_v3 = vld [vmem:[%s4908_s7 + $0x30] sm:$0xff]  }
  0x13   :  { %2661 = vmatprep.subr.mxu0 %v4919_v0  ;;  %2695 = vmatpush3.msra.mxu1 %v43_v9  ;;  %v3947_v4 = vld [vmem:[%s4908_s7 + $0x28] sm:$0xff]   ;;  %v3955_v5 = vld [vmem:[%s4909_s6] ss:$0 sm:$0xff] }
  0x14   :  { %2662 = vmatpush3.msra.mxu0 %v42_v10  ;;  %2696 = vmatprep.subr.mxu1 %v4919_v0 }
  0x15   :  { %2663 = vmatprep.subr.mxu0 %v4919_v0  ;;  %2697 = vmatpush3.msra.mxu1 %v42_v10 }
  0x16   :  { %2664 = vmatpush3.msra.mxu0 %v41_v11  ;;  %2698 = vmatprep.subr.mxu1 %v4919_v0 }
  0x17   :  { %2665 = vmatprep.subr.mxu0 %v4919_v0  ;;  %2699 = vmatpush3.msra.mxu1 %v41_v11 }
  0x18   :  { %2666 = vmatpush3.msra.mxu0 %v40_v12  ;;  %2700 = vmatprep.subr.mxu1 %v4919_v0 }
  0x19   :  { %2667 = vmatprep.subr.mxu0 %v4919_v0  ;;  %2701 = vmatpush3.msra.mxu1 %v40_v12 }
  0x1a   :  { %2668 = vmatpush3.msra.mxu0 %v39_v13  ;;  %2702 = vmatprep.subr.mxu1 %v4919_v0 }
  0x1b   :  { %2669 = vmatprep.subr.mxu0 %v4919_v0  ;;  %2703 = vmatpush3.msra.mxu1 %v39_v13 }
  0x1c   :  { %2670 = vmatpush3.msra.mxu0 %v38_v14  ;;  %2704 = vmatprep.subr.mxu1 %v4919_v0 }
  0x1d   :  { %2671 = vmatprep.subr.mxu0 %v4919_v0  ;;  %2705 = vmatpush3.msra.mxu1 %v38_v14 }
  0x1e   :  { %2672 = vmatpush3.msra.mxu0 %v37_v15  ;;  %2706 = vmatprep.subr.mxu1 %v4919_v0 }
  0x1f   :  { %2673 = vmatprep.subr.mxu0 %v4919_v0  ;;  %2707 = vmatpush3.msra.mxu1 %v37_v15 }
  0x20   :  { %2674 = vmatpush3.msra.mxu0 %v36_v16  ;;  %2708 = vmatprep.subr.mxu1 %v4919_v0 }
  0x21   :  { %2676 = vmatmul.mubr.f32.vlgmr.msra.gmra.mxu0 %v155_v17  ;;  %2709 = vmatpush3.msra.mxu1 %v36_v16 }
  0x22   :  { %2710 = vmatprep.mubr.msk.f32.mxu1 %vm3541_vm0, %v4919_v0  ;;  %2733 = vmatprep.subr.bf16.mxu1 %v4919_v0 }
  0x23   :  { %2711 = vmatmul.mubr.f32.vlgmr.msra.gmra.mxu1 %v2222_v18  ;;  %2713 = vmatprep.subr.bf16.mxu0 %v4919_v0  ;;  %v3963_v18 = vld [vmem:[%s4908_s7 + $0x20] sm:$0xff]  }
  0x24   :  { %2734 = vmatpush3.bf16.msra.mxu1 %v3688_v19  ;;  %2714 = vmatpush3.bf16.msra.mxu0 %v3693_v20 }
  0x25   :  { %2735 = vmatprep.subr.bf16.mxu1 %v4919_v0  ;;  %2715 = vmatprep.subr.bf16.mxu0 %v4919_v0 }
  0x26   :  { %2749 = vmatprep.mubr.msk.bf16.mxu1 %vm3541_vm0, %v4919_v0  ;;  %2729 = vmatprep.mubr.msk.bf16.mxu0 %vm3541_vm0, %v4919_v0 }
  0x28   :  { %2736 = vmatpush3.bf16.msra.mxu1 %v3705_v21  ;;  %2716 = vmatpush3.bf16.msra.mxu0 %v3711_v22 }
  0x29   :  { %2737 = vmatprep.subr.bf16.mxu1 %v4919_v0  ;;  %2717 = vmatprep.subr.bf16.mxu0 %v4919_v0 }
  0x2c   :  { %2738 = vmatpush3.bf16.msra.mxu1 %v3723_v23  ;;  %2718 = vmatpush3.bf16.msra.mxu0 %v3729_v24 }
  0x2d   :  { %2739 = vmatprep.subr.bf16.mxu1 %v4919_v0  ;;  %2719 = vmatprep.subr.bf16.mxu0 %v4919_v0 }
  0x30   :  { %2740 = vmatpush3.bf16.msra.mxu1 %v3737_v25  ;;  %2720 = vmatpush3.bf16.msra.mxu0 %v3743_v26 }
  0x31   :  { %2741 = vmatprep.subr.bf16.mxu1 %v4919_v0  ;;  %2721 = vmatprep.subr.bf16.mxu0 %v4919_v0 }
  0x34   :  { %2742 = vmatpush3.bf16.msra.mxu1 %v3751_v27  ;;  %2722 = vmatpush3.bf16.msra.mxu0 %v3757_v28 }
  0x35   :  { %2743 = vmatprep.subr.bf16.mxu1 %v4919_v0  ;;  %2723 = vmatprep.subr.bf16.mxu0 %v4919_v0 }
  0x38   :  { %2744 = vmatpush3.bf16.msra.mxu1 %v3765_v29  ;;  %2724 = vmatpush3.bf16.msra.mxu0 %v3771_v30 }
  0x39   :  { %2745 = vmatprep.subr.bf16.mxu1 %v4919_v0  ;;  %2725 = vmatprep.subr.bf16.mxu0 %v4919_v0 }
  0x3c   :  { %2746 = vmatpush3.bf16.msra.mxu1 %v3779_v31  ;;  %2726 = vmatpush3.bf16.msra.mxu0 %v3785_v32 }
  0x3d   :  { %2747 = vmatprep.subr.bf16.mxu1 %v4919_v0  ;;  %2727 = vmatprep.subr.bf16.mxu0 %v4919_v0 }
  0x40   :  { %2748 = vmatpush3.bf16.msra.mxu1 %v3793_v33  ;;  %2728 = vmatpush3.bf16.msra.mxu0 %v3808_v35 }
  0x41   :  { %2773 = vmatprep.subr.bf16.mxu1 %v4919_v0  ;;  %2753 = vmatprep.subr.bf16.mxu0 %v4919_v0 }
  0x43   :  { %2750 = vmatmul.mubr.bf16.vlgmr.msra.gmra.mxu1 %v308_v34  ;;  %v3970_v34 = vld [vmem:[%s4908_s7 + $0x18] sm:$0xff]  }
  0x44   :  { %2789 = vmatprep.mubr.msk.bf16.mxu1 %vm3541_vm0, %v4919_v0  ;;  %2774 = vmatpush3.bf16.msra.mxu1 %v3815_v36 }
  0x45   :  { %2775 = vmatprep.subr.bf16.mxu1 %v4919_v0 }
  0x48   :  { %2776 = vmatpush3.bf16.msra.mxu1 %v3821_v37 }
  0x49   :  { %2777 = vmatprep.subr.bf16.mxu1 %v4919_v0 }
  0x4c   :  { %2778 = vmatpush3.bf16.msra.mxu1 %v3828_v38 }
  0x4d   :  { %2779 = vmatprep.subr.bf16.mxu1 %v4919_v0 }
  0x50   :  { %2780 = vmatpush3.bf16.msra.mxu1 %v3899_v60 }
  0x51   :  { %2781 = vmatprep.subr.bf16.mxu1 %v4919_v0 }
  0x54   :  { %2782 = vmatpush3.bf16.msra.mxu1 %v3906_v61 }
  0x55   :  { %2783 = vmatprep.subr.bf16.mxu1 %v4919_v0 }
  0x58   :  { %2784 = vmatpush3.bf16.msra.mxu1 %v3913_v62 }
  0x59   :  { %2785 = vmatprep.subr.bf16.mxu1 %v4919_v0 }
  0x5c   :  { %2786 = vmatpush3.bf16.msra.mxu1 %v3920_v63 }
  0x5d   :  { %2787 = vmatprep.subr.bf16.mxu1 %v4919_v0 }
  0x60   :  { %2788 = vmatpush3.bf16.msra.mxu1 %v3927_v1 }
  0x61   :  { %2813 = vmatprep.subr.bf16.mxu1 %v4919_v0 }
  0xe1   :  { %v228_v40 = vpop.f32.mrf.mxu0 }
  0xe2   :  { %v229_v41 = vadd.f32 %v2221_v39, %v228_v40  ;;  %v3984_v40 = vld [vmem:[%s4908_s7 + $0x8] sm:$0xff]  }
  0xe3   :  { %v2677_v42 = vpop.f32.mrf.mxu0  ;;  %v300_v44 = vpop.f32.mrf.mxu1 }
  0xe4   :  { %v309_v45 = vpack.c.bf16 %v229_v41, %v229_v41  ;;  %v301_v53 = vadd.f32 %v2221_v39, %v300_v44  ;;  %v3977_v39 = vld [vmem:[%s4908_s7 + $0x10] sm:$0xff]   ;;  %v3991_v41 = vld [vmem:[%s4908_s7] sm:$0xff]  }
  0xe5   :  { %v2712_v46 = vpop.f32.mrf.mxu1  ;;  %4921 = vst [vmem:[#allocation2_spill] sm:$0xff] %v3991_v41  ;;  %v3998_v42 = vld [vmem:[%s4909_s6 + $0x1] ss:$0 sm:$0xff] }
  0xe6   :  { %2730 = vmatmul.mubr.bf16.vlgmr.msra.gmra.mxu0 %v309_v45  ;;  %v495_v55 = vpack.c.bf16 %v301_v53, %v301_v53 }
  0xe7   :  { %2754 = vmatpush3.bf16.msra.mxu0 %v3839_v43  ;;  %2769 = vmatprep.mubr.msk.bf16.mxu0 %vm3541_vm0, %v4919_v0 }
  0xe8   :  { %2755 = vmatprep.subr.bf16.mxu0 %v4919_v0 }
  0xeb   :  { %2756 = vmatpush3.bf16.msra.mxu0 %v3845_v47 }
  0xec   :  { %2757 = vmatprep.subr.bf16.mxu0 %v4919_v0 }
  0xef   :  { %2758 = vmatpush3.bf16.msra.mxu0 %v3854_v48 }
  0xf0   :  { %2759 = vmatprep.subr.bf16.mxu0 %v4919_v0 }
  0xf3   :  { %2760 = vmatpush3.bf16.msra.mxu0 %v3861_v49 }
  0xf4   :  { %2761 = vmatprep.subr.bf16.mxu0 %v4919_v0 }
  0xf7   :  { %2762 = vmatpush3.bf16.msra.mxu0 %v3868_v50 }
  0xf8   :  { %2763 = vmatprep.subr.bf16.mxu0 %v4919_v0 }
  0xfb   :  { %2764 = vmatpush3.bf16.msra.mxu0 %v3875_v51 }
  0xfc   :  { %2765 = vmatprep.subr.bf16.mxu0 %v4919_v0 }
  0xff   :  { %2766 = vmatpush3.bf16.msra.mxu0 %v3882_v52 }
 0x100   :  { %2767 = vmatprep.subr.bf16.mxu0 %v4919_v0 }
 0x103   :  { %2768 = vmatpush3.bf16.msra.mxu0 %v3889_v54  ;;  %v480_v56 = vpop.f32.mrf.mxu1 }
 0x104   :  { %2793 = vmatprep.subr.bf16.mxu0 %v4919_v0 }
 0x105   :  { %v2751_v57 = vpop.f32.mrf.mxu1 }
 0x106   :  { %2770 = vmatmul.mubr.bf16.vlgmr.msra.gmra.mxu0 %v495_v55 }
 0x107   :  { %v483_v58 = vpop.f32.mrf.mxu1  ;;  %2809 = vmatprep.mubr.msk.bf16.mxu0 %vm3541_vm0, %v4919_v0  ;;  %2794 = vmatpush3.bf16.msra.mxu0 %v3934_v2 }
 0x108   :  { %2795 = vmatprep.subr.bf16.mxu0 %v4919_v0 }
 0x109   :  { %v2752_v59 = vpop.f32.mrf.mxu1 }
 0x10a   :  { %v304_v59 = vlaneseq }
 0x10b   :  { %2796 = vmatpush3.bf16.msra.mxu0 %v3940_v3 }
 0x10c   :  { %2797 = vmatprep.subr.bf16.mxu0 %v4919_v0 }
 0x10f   :  { %2798 = vmatpush3.bf16.msra.mxu0 %v3947_v4 }
 0x110   :  { %2799 = vmatprep.subr.bf16.mxu0 %v4919_v0 }
 0x113   :  { %2800 = vmatpush3.bf16.msra.mxu0 %v3963_v18 }
 0x114   :  { %2801 = vmatprep.subr.bf16.mxu0 %v4919_v0 }
 0x117   :  { %2802 = vmatpush3.bf16.msra.mxu0 %v3970_v34 }
 0x118   :  { %2803 = vmatprep.subr.bf16.mxu0 %v4919_v0 }
 0x11b   :  { %2804 = vmatpush3.bf16.msra.mxu0 %v3977_v39 }
 0x11c   :  { %2805 = vmatprep.subr.bf16.mxu0 %v4919_v0 }
 0x11f   :  { %2806 = vmatpush3.bf16.msra.mxu0 %v3984_v40 }
 0x120   :  { %2807 = vmatprep.subr.bf16.mxu0 %v4919_v0 }
 0x123   :  { %2808 = vmatpush3.bf16.msra.mxu0 %v3991_v41 }
 0x124   :  { %2833 = vmatprep.subr.bf16.mxu0 %v4919_v0 }
 0x1a6   :  { %v392_v6 = vpop.f32.mrf.mxu0 }
 0x1a7   :  { %v481_v7 = vadd.f32 %v480_v56, %v392_v6  ;;  %v4055_v6 = vand.u32 127, %v304_v59 }
 0x1a8   :  { %v2731_v8 = vpop.f32.mrf.mxu0 }
 0x1a9   :  { %v492_v9 = vadd.f32 %v3955_v5, %v481_v7  ;;  %vm306_vm1 = vcmp.lt.s32.totalorder %v4055_v6, 24  ;;  %v4061_v7 = vld [vmem:[%s4910_s8] ss:$0 sm:$0xff] }
 0x1aa   :  { %v395_v10 = vpop.f32.mrf.mxu0  ;;  %4922 = vst [vmem:[#allocation3_spill] sm:$0xff] %v4061_v7 }
 0x1ab   :  { %3465 = vtanh.f32 %v492_v9  ;;  %v3542_v9 = vmov -1e+30  }
 0x1ac   :  { %v2732_v11 = vpop.f32.mrf.mxu0  ;;  %v4063_v10 = vsel %vm306_vm1, 0.0, %v3542_v9  ;;  %v4078_v9 = vld [vmem:[%s4912_s9 + $0x38] sm:$0xff]  }
 0x1ad   :  { %4923 = vst [vmem:[#allocation4_spill] sm:$0xff] %v4063_v10 }
 0x1b8   :  { %v3466_v12 = vpop.eup %3465 }
 0x1b9   :  { %v494_v13 = vpack.c.bf16 %v3466_v12, %v3466_v12 }
 0x1bb   :  { %2790 = vmatmul.mubr.bf16.vlgmr.msra.gmra.mxu1 %v494_v13 }
 0x1bc   :  { %2829 = vmatprep.mubr.msk.bf16.mxu1 %vm3541_vm0, %v4919_v0  ;;  %2814 = vmatpush3.bf16.msra.mxu1 %v4078_v9 }
 0x1bd   :  { %2815 = vmatprep.subr.bf16.mxu1 %v4919_v0 }
 0x1c6   :  { %v578_v14 = vpop.f32.mrf.mxu0 }
 0x1c8   :  { %v2771_v15 = vpop.f32.mrf.mxu0 }
 0x1ca   :  { %v581_v16 = vpop.f32.mrf.mxu0 }
 0x1cc   :  { %v2772_v17 = vpop.f32.mrf.mxu0 }
 0x27b   :  { %v666_v44 = vpop.f32.mrf.mxu1 }
 0x27c   :  { %v667_v45 = vadd.f32 %v666_v44, %v578_v14 }
 0x27d   :  { %v2791_v46 = vpop.f32.mrf.mxu1 }
 0x27e   :  { %v678_v53 = vadd.f32 %v3998_v42, %v667_v45 }
 0x27f   :  { %v669_v55 = vpop.f32.mrf.mxu1 }
 0x280   :  { %3467 = vtanh.f32 %v678_v53 }
 0x281   :  { %v2792_v56 = vpop.f32.mrf.mxu1 }
 0x28d   :  { %v3468_v57 = vpop.eup %3467 }
 0x28e   :  { %v680_v58 = vpack.c.bf16 %v3468_v57, %v3468_v57 }
 0x290   :  { %2810 = vmatmul.mubr.bf16.vlgmr.msra.gmra.mxu0 %v680_v58 }
 0x291   :  { %2834 = vmatpush3.bf16.msra.mxu0 %v3693_v20  ;;  %2849 = vmatprep.mubr.msk.bf16.mxu0 %vm3541_vm0, %v4919_v0 }
 0x292   :  { %2835 = vmatprep.subr.bf16.mxu0 %v4919_v0 }
 0x295   :  { %2836 = vmatpush3.bf16.msra.mxu0 %v3711_v22 }
 0x296   :  { %2837 = vmatprep.subr.bf16.mxu0 %v4919_v0 }
 0x299   :  { %2838 = vmatpush3.bf16.msra.mxu0 %v3729_v24 }
 0x29a   :  { %2839 = vmatprep.subr.bf16.mxu0 %v4919_v0 }
 0x29d   :  { %2840 = vmatpush3.bf16.msra.mxu0 %v3743_v26 }
 0x29e   :  { %2841 = vmatprep.subr.bf16.mxu0 %v4919_v0 }
 0x2a1   :  { %2842 = vmatpush3.bf16.msra.mxu0 %v3757_v28 }
 0x2a2   :  { %2843 = vmatprep.subr.bf16.mxu0 %v4919_v0 }
 0x2a5   :  { %2844 = vmatpush3.bf16.msra.mxu0 %v3771_v30 }
 0x2a6   :  { %2845 = vmatprep.subr.bf16.mxu0 %v4919_v0 }
 0x2a9   :  { %2846 = vmatpush3.bf16.msra.mxu0 %v3785_v32 }
 0x2aa   :  { %2847 = vmatprep.subr.bf16.mxu0 %v4919_v0 }
 0x2ad   :  { %2848 = vmatpush3.bf16.msra.mxu0 %v3808_v35 }
 0x2ae   :  { %2873 = vmatprep.subr.bf16.mxu0 %v4919_v0 }
 0x2b0   :  { %2850 = vmatmul.mubr.bf16.vlgmr.msra.gmra.mxu0 %v494_v13 }
 0x2b1   :  { %2874 = vmatpush3.bf16.msra.mxu0 %v3839_v43  ;;  %2889 = vmatprep.mubr.msk.bf16.mxu0 %vm3541_vm0, %v4919_v0 }
 0x2b2   :  { %2875 = vmatprep.subr.bf16.mxu0 %v4919_v0 }
 0x2b5   :  { %2876 = vmatpush3.bf16.msra.mxu0 %v3845_v47 }
 0x2b6   :  { %2877 = vmatprep.subr.bf16.mxu0 %v4919_v0 }
 0x2b9   :  { %2878 = vmatpush3.bf16.msra.mxu0 %v3854_v48 }
 0x2ba   :  { %2879 = vmatprep.subr.bf16.mxu0 %v4919_v0 }
 0x2bd   :  { %2880 = vmatpush3.bf16.msra.mxu0 %v3861_v49 }
 0x2be   :  { %2881 = vmatprep.subr.bf16.mxu0 %v4919_v0 }
 0x2c1   :  { %2882 = vmatpush3.bf16.msra.mxu0 %v3868_v50 }
 0x2c2   :  { %2883 = vmatprep.subr.bf16.mxu0 %v4919_v0 }
 0x2c5   :  { %2884 = vmatpush3.bf16.msra.mxu0 %v3875_v51 }
 0x2c6   :  { %2885 = vmatprep.subr.bf16.mxu0 %v4919_v0 }
 0x2c9   :  { %2886 = vmatpush3.bf16.msra.mxu0 %v3882_v52 }
 0x2ca   :  { %2887 = vmatprep.subr.bf16.mxu0 %v4919_v0 }
 0x2cd   :  { %2888 = vmatpush3.bf16.msra.mxu0 %v3889_v54 }
 0x2ce   :  { %2913 = vmatprep.subr.bf16.mxu0 %v4919_v0 }
 0x2d0   :  { %2890 = vmatmul.mubr.bf16.vlgmr.msra.gmra.mxu0 %v680_v58 }
 0x2d1   :  { %2914 = vmatpush3.bf16.msra.mxu0 %v3934_v2  ;;  %2929 = vmatprep.mubr.msk.bf16.mxu0 %vm3541_vm0, %v4919_v0 }
 0x2d2   :  { %2915 = vmatprep.subr.bf16.mxu0 %v4919_v0 }
 0x2d5   :  { %2916 = vmatpush3.bf16.msra.mxu0 %v3940_v3 }
 0x2d6   :  { %2917 = vmatprep.subr.bf16.mxu0 %v4919_v0 }
 0x2d9   :  { %2918 = vmatpush3.bf16.msra.mxu0 %v3947_v4 }
 0x2da   :  { %2919 = vmatprep.subr.bf16.mxu0 %v4919_v0 }
 0x2dd   :  { %2920 = vmatpush3.bf16.msra.mxu0 %v3963_v18 }
 0x2de   :  { %2921 = vmatprep.subr.bf16.mxu0 %v4919_v0 }
 0x2e1   :  { %2922 = vmatpush3.bf16.msra.mxu0 %v3970_v34 }
 0x2e2   :  { %2923 = vmatprep.subr.bf16.mxu0 %v4919_v0 }
 0x2e5   :  { %2924 = vmatpush3.bf16.msra.mxu0 %v3977_v39 }
 0x2e6   :  { %2925 = vmatprep.subr.bf16.mxu0 %v4919_v0 }
 0x2e9   :  { %2926 = vmatpush3.bf16.msra.mxu0 %v3984_v40 }
 0x2ea   :  { %2927 = vmatprep.subr.bf16.mxu0 %v4919_v0 }
 0x2ed   :  { %2928 = vmatpush3.bf16.msra.mxu0 %v3991_v41 }
 0x2ee   :  { %2953 = vmatprep.subr.bf16.mxu0 %v4919_v0 }
 0x350   :  { %v769_v8 = vpop.f32.mrf.mxu0 }
 0x351   :  { %v770_v11 = vadd.f32 %v4061_v7, %v769_v8 }
 0x352   :  { %v2811_v12 = vpop.f32.mrf.mxu0 }
 0x353   :  { %775 = vst [vmem:[%s4911_s10] sm:$0xff] %v770_v11  ;;  %v776_v13 = vadd.f32 %v770_v11, %v4063_v10  ;;  %v4084_v11 = vld [vmem:[%s4912_s9 + $0x30] sm:$0xff]   ;;  %v4091_v12 = vld [vmem:[%s4912_s9 + $0x28] sm:$0xff]  }
 0x354   :  { %v772_v14 = vpop.f32.mrf.mxu0  ;;  %2816 = vmatpush3.bf16.msra.mxu1 %v4084_v11 }
 0x355   :  { %777 = vmax.xlane.f32.xlu0 %v776_v13  ;;  %2817 = vmatprep.subr.bf16.mxu1 %v4919_v0  ;;  %v4105_v14 = vld [vmem:[%s4912_s9 + $0x18] sm:$0xff]  }
 0x356   :  { %v2812_v15 = vpop.f32.mrf.mxu0 }
 0x357   :  { %v4112_v15 = vld [vmem:[%s4912_s9 + $0x10] sm:$0xff]  }
 0x358   :  { %2818 = vmatpush3.bf16.msra.mxu1 %v4091_v12 }
 0x359   :  { %2819 = vmatprep.subr.bf16.mxu1 %v4919_v0 }
 0x370   :  { %v4070_v16 = vpop.f32.mrf.mxu0 }
 0x372   :  { %v2851_v17 = vpop.f32.mrf.mxu0 }
 0x373   :  { %v4119_v17 = vld [vmem:[%s4912_s9 + $0x8] sm:$0xff]  }
 0x374   :  { %v925_v44 = vpop.f32.mrf.mxu0 }
 0x376   :  { %v2852_v45 = vpop.f32.mrf.mxu0 }
 0x390   :  { %v4072_v46 = vpop.f32.mrf.mxu0 }
 0x392   :  { %v2891_v53 = vpop.f32.mrf.mxu0 }
 0x394   :  { %v1008_v55 = vpop.f32.mrf.mxu0 }
 0x396   :  { %v2892_v56 = vpop.f32.mrf.mxu0 }
 0x397   :  { %v4127_v56 = vld [vmem:[%s4912_s9] sm:$0xff]  }
 0x3de   :  { %v778_v57 = vpop.xlane.xlu0 %777 }
 0x3df   :  { %vm779_vm2 = vcmp.eq.f32.partialorder %v776_v13, %v778_v57  ;;  %v4098_v13 = vld [vmem:[%s4912_s9 + $0x20] sm:$0xff]  }
 0x3e0   :  { %v780_v58 = vsel %vm779_vm2, %v4055_v6, 128  ;;  %2820 = vmatpush3.bf16.msra.mxu1 %v4098_v13 }
 0x3e1   :  { %v782_v59 = vshra.s32 %v780_v58, 16  ;;  %2821 = vmatprep.subr.bf16.mxu1 %v4919_v0  ;;  %v781_v44 = vand.u32 65535, %v780_v58  ;;  %v3543_v58 = vmov 1.0|1.0  }
 0x3e3   :  { %v784_v8 = vcvt.s32.f32 %v782_v59  ;;  %v783_v53 = vcvt.s32.f32 %v781_v44 }
 0x3e4   :  { %2822 = vmatpush3.bf16.msra.mxu1 %v4105_v14 }
 0x3e5   :  { %785 = vmin.xlane.f32.xlu0 %v784_v8  ;;  %2823 = vmatprep.subr.bf16.mxu1 %v4919_v0 }
 0x3e8   :  { %2824 = vmatpush3.bf16.msra.mxu1 %v4112_v15 }
 0x3e9   :  { %2825 = vmatprep.subr.bf16.mxu1 %v4919_v0 }
 0x3ec   :  { %2826 = vmatpush3.bf16.msra.mxu1 %v4119_v17 }
 0x3ed   :  { %2827 = vmatprep.subr.bf16.mxu1 %v4919_v0 }
 0x3f0   :  { %2828 = vmatpush3.bf16.msra.mxu1 %v4127_v56 }
 0x3f1   :  { %2853 = vmatprep.subr.bf16.mxu1 %v4919_v0 }
 0x46e   :  { %v786_v45 = vpop.xlane.xlu0 %785 }
 0x46f   :  { %vm787_vm3 = vcmp.eq.f32.partialorder %v784_v8, %v786_v45  ;;  %v792_v57 = vcvt.f32.s32 %v786_v45 }
 0x470   :  { %v788_v55 = vsel %vm787_vm3, %v783_v53, inf }
 0x471   :  { %789 = vmin.xlane.f32.xlu1 %v788_v55  ;;  %v793_v10 = vshll.u32 %v792_v57, 16 }
 0x4fa   :  { %v790_v59 = vpop.xlane.xlu1 %789 }
 0x4fb   :  { %v791_v7 = vcvt.f32.s32 %v790_v59 }
 0x4fd   :  { %v794_v41 = vadd.s32 %v793_v10, %v791_v7 }
 0x4ff   :  { %vm795_vm4 = vcmp.eq.s32.totalorder %v4055_v6, %v794_v41 }
 0x500   :  { %vm2275_vm5 = vmpackc.low %vm795_vm4, %vm795_vm4 }
 0x501   :  { %2830 = vmatmul.mubr.msk.bf16.vlgmr.msra.gmra.mxu1 %vm2275_vm5, %v3543_v58 }
 0x502   :  { %2854 = vmatpush3.bf16.msra.mxu1 %v3688_v19  ;;  %2869 = vmatprep.mubr.msk.bf16.mxu1 %vm3541_vm0, %v4919_v0 }
 0x503   :  { %2855 = vmatprep.subr.bf16.mxu1 %v4919_v0 }
 0x506   :  { %2856 = vmatpush3.bf16.msra.mxu1 %v3705_v21 }
 0x507   :  { %2857 = vmatprep.subr.bf16.mxu1 %v4919_v0 }
 0x50a   :  { %2858 = vmatpush3.bf16.msra.mxu1 %v3723_v23 }
 0x50b   :  { %2859 = vmatprep.subr.bf16.mxu1 %v4919_v0 }
 0x50e   :  { %2860 = vmatpush3.bf16.msra.mxu1 %v3737_v25 }
 0x50f   :  { %2861 = vmatprep.subr.bf16.mxu1 %v4919_v0 }
 0x512   :  { %2862 = vmatpush3.bf16.msra.mxu1 %v3751_v27 }
 0x513   :  { %2863 = vmatprep.subr.bf16.mxu1 %v4919_v0 }
 0x516   :  { %2864 = vmatpush3.bf16.msra.mxu1 %v3765_v29 }
 0x517   :  { %2865 = vmatprep.subr.bf16.mxu1 %v4919_v0 }
 0x51a   :  { %2866 = vmatpush3.bf16.msra.mxu1 %v3779_v31 }
 0x51b   :  { %2867 = vmatprep.subr.bf16.mxu1 %v4919_v0 }
 0x51e   :  { %2868 = vmatpush3.bf16.msra.mxu1 %v3793_v33 }
 0x51f   :  { %2893 = vmatprep.subr.bf16.mxu1 %v4919_v0 }
 0x5c1   :  { %v881_v19 = vpop.f32.mrf.mxu1 }
 0x5c2   :  { %v887_v41 = vpack.c.bf16 %v881_v19, %v881_v19 }
 0x5c3   :  { %v2831_v7 = vpop.f32.mrf.mxu1 }
 0x5c4   :  { %2870 = vmatmul.mubr.bf16.vlgmr.msra.gmra.mxu1 %v887_v41 }
 0x5c5   :  { %v884_v10 = vpop.f32.mrf.mxu1  ;;  %2894 = vmatpush3.bf16.msra.mxu1 %v3815_v36  ;;  %2909 = vmatprep.mubr.msk.bf16.mxu1 %vm3541_vm0, %v4919_v0 }
 0x5c6   :  { %2895 = vmatprep.subr.bf16.mxu1 %v4919_v0 }
 0x5c7   :  { %v2832_v8 = vpop.f32.mrf.mxu1 }
 0x5c9   :  { %2896 = vmatpush3.bf16.msra.mxu1 %v3821_v37 }
 0x5ca   :  { %2897 = vmatprep.subr.bf16.mxu1 %v4919_v0 }
 0x5cd   :  { %2898 = vmatpush3.bf16.msra.mxu1 %v3828_v38 }
 0x5ce   :  { %2899 = vmatprep.subr.bf16.mxu1 %v4919_v0 }
 0x5d1   :  { %2900 = vmatpush3.bf16.msra.mxu1 %v3899_v60 }
 0x5d2   :  { %2901 = vmatprep.subr.bf16.mxu1 %v4919_v0 }
 0x5d5   :  { %2902 = vmatpush3.bf16.msra.mxu1 %v3906_v61 }
 0x5d6   :  { %2903 = vmatprep.subr.bf16.mxu1 %v4919_v0 }
 0x5d9   :  { %2904 = vmatpush3.bf16.msra.mxu1 %v3913_v62 }
 0x5da   :  { %2905 = vmatprep.subr.bf16.mxu1 %v4919_v0 }
 0x5dd   :  { %2906 = vmatpush3.bf16.msra.mxu1 %v3920_v63 }
 0x5de   :  { %2907 = vmatprep.subr.bf16.mxu1 %v4919_v0 }
 0x5e1   :  { %2908 = vmatpush3.bf16.msra.mxu1 %v3927_v1 }
 0x5e2   :  { %2933 = vmatprep.subr.bf16.mxu1 %v4919_v0 }
 0x684   :  { %v962_v44 = vpop.f32.mrf.mxu1 }
 0x685   :  { %v963_v45 = vadd.f32 %v962_v44, %v4070_v16 }
 0x686   :  { %v2871_v53 = vpop.f32.mrf.mxu1 }
 0x687   :  { %v968_v55 = vadd.f32 %v3955_v5, %v963_v45 }
 0x688   :  { %v965_v57 = vpop.f32.mrf.mxu1 }
 0x689   :  { %3469 = vtanh.f32 %v968_v55 }
 0x68a   :  { %v2872_v59 = vpop.f32.mrf.mxu1 }
 0x696   :  { %v3470_v19 = vpop.eup %3469 }
 0x697   :  { %v970_v41 = vpack.c.bf16 %v3470_v19, %v3470_v19 }
 0x699   :  { %2910 = vmatmul.mubr.bf16.vlgmr.msra.gmra.mxu1 %v970_v41 }
 0x69a   :  { %2934 = vmatpush3.bf16.msra.mxu1 %v4078_v9  ;;  %2949 = vmatprep.mubr.msk.bf16.mxu1 %vm3541_vm0, %v4919_v0 }
 0x69b   :  { %2935 = vmatprep.subr.bf16.mxu1 %v4919_v0 }
 0x69e   :  { %2936 = vmatpush3.bf16.msra.mxu1 %v4084_v11 }
 0x69f   :  { %2937 = vmatprep.subr.bf16.mxu1 %v4919_v0 }
 0x6a2   :  { %2938 = vmatpush3.bf16.msra.mxu1 %v4091_v12 }
 0x6a3   :  { %2939 = vmatprep.subr.bf16.mxu1 %v4919_v0 }
 0x6a6   :  { %2940 = vmatpush3.bf16.msra.mxu1 %v4098_v13 }
 0x6a7   :  { %2941 = vmatprep.subr.bf16.mxu1 %v4919_v0 }
 0x6aa   :  { %2942 = vmatpush3.bf16.msra.mxu1 %v4105_v14 }
 0x6ab   :  { %2943 = vmatprep.subr.bf16.mxu1 %v4919_v0 }
 0x6ae   :  { %2944 = vmatpush3.bf16.msra.mxu1 %v4112_v15 }
 0x6af   :  { %2945 = vmatprep.subr.bf16.mxu1 %v4919_v0 }
 0x6b2   :  { %2946 = vmatpush3.bf16.msra.mxu1 %v4119_v17 }
 0x6b3   :  { %2947 = vmatprep.subr.bf16.mxu1 %v4919_v0 }
 0x6b6   :  { %2948 = vmatpush3.bf16.msra.mxu1 %v4127_v56 }
 0x6b7   :  { %2973 = vmatprep.subr.bf16.mxu1 %v4919_v0 }
 0x759   :  { %v1045_v16 = vpop.f32.mrf.mxu1 }
 0x75a   :  { %v1046_v7 = vadd.f32 %v1045_v16, %v4072_v46 }
 0x75b   :  { %v2911_v10 = vpop.f32.mrf.mxu1 }
 0x75c   :  { %v1051_v8 = vadd.f32 %v3998_v42, %v1046_v7 }
 0x75d   :  { %v1048_v44 = vpop.f32.mrf.mxu1 }
 0x75e   :  { %3471 = vtanh.f32 %v1051_v8 }
 0x75f   :  { %v2912_v45 = vpop.f32.mrf.mxu1 }
 0x76b   :  { %v3472_v53 = vpop.eup %3471 }
 0x76c   :  { %v1053_v55 = vpack.c.bf16 %v3472_v53, %v3472_v53 }
 0x76e   :  { %2930 = vmatmul.mubr.bf16.vlgmr.msra.gmra.mxu0 %v1053_v55 }
 0x76f   :  { %2954 = vmatpush3.bf16.msra.mxu0 %v3693_v20  ;;  %2969 = vmatprep.mubr.msk.bf16.mxu0 %vm3541_vm0, %v4919_v0  ;;  %v4924_v20 = vld [vmem:[#allocation2_spill] sm:$0xff] }
 0x770   :  { %2955 = vmatprep.subr.bf16.mxu0 %v4919_v0 }
 0x773   :  { %2956 = vmatpush3.bf16.msra.mxu0 %v3711_v22 }
 0x774   :  { %2957 = vmatprep.subr.bf16.mxu0 %v4919_v0 }
 0x777   :  { %2958 = vmatpush3.bf16.msra.mxu0 %v3729_v24  ;;  %v4925_v24 = vld [vmem:[#allocation3_spill] sm:$0xff] }
 0x778   :  { %2959 = vmatprep.subr.bf16.mxu0 %v4919_v0 }
 0x77b   :  { %2960 = vmatpush3.bf16.msra.mxu0 %v3743_v26 }
 0x77c   :  { %2961 = vmatprep.subr.bf16.mxu0 %v4919_v0 }
 0x77f   :  { %2962 = vmatpush3.bf16.msra.mxu0 %v3757_v28 }
 0x780   :  { %2963 = vmatprep.subr.bf16.mxu0 %v4919_v0 }
 0x783   :  { %2964 = vmatpush3.bf16.msra.mxu0 %v3771_v30  ;;  %v4926_v30 = vld [vmem:[#allocation4_spill] sm:$0xff] }
 0x784   :  { %2965 = vmatprep.subr.bf16.mxu0 %v4919_v0 }
 0x787   :  { %2966 = vmatpush3.bf16.msra.mxu0 %v3785_v32 }
 0x788   :  { %2967 = vmatprep.subr.bf16.mxu0 %v4919_v0 }
 0x78b   :  { %2968 = vmatpush3.bf16.msra.mxu0 %v3808_v35 }
 0x78c   :  { %2993 = vmatprep.subr.bf16.mxu0 %v4919_v0 }
 0x78e   :  { %2970 = vmatmul.mubr.bf16.vlgmr.msra.gmra.mxu0 %v970_v41 }
 0x78f   :  { %2994 = vmatpush3.bf16.msra.mxu0 %v3839_v43  ;;  %3009 = vmatprep.mubr.msk.bf16.mxu0 %vm3541_vm0, %v4919_v0 }
 0x790   :  { %2995 = vmatprep.subr.bf16.mxu0 %v4919_v0 }
 0x793   :  { %2996 = vmatpush3.bf16.msra.mxu0 %v3845_v47 }
 0x794   :  { %2997 = vmatprep.subr.bf16.mxu0 %v4919_v0 }
 0x797   :  { %2998 = vmatpush3.bf16.msra.mxu0 %v3854_v48 }
 0x798   :  { %2999 = vmatprep.subr.bf16.mxu0 %v4919_v0 }
 0x79b   :  { %3000 = vmatpush3.bf16.msra.mxu0 %v3861_v49 }
 0x79c   :  { %3001 = vmatprep.subr.bf16.mxu0 %v4919_v0 }
 0x79f   :  { %3002 = vmatpush3.bf16.msra.mxu0 %v3868_v50 }
 0x7a0   :  { %3003 = vmatprep.subr.bf16.mxu0 %v4919_v0 }
 0x7a3   :  { %3004 = vmatpush3.bf16.msra.mxu0 %v3875_v51 }
 0x7a4   :  { %3005 = vmatprep.subr.bf16.mxu0 %v4919_v0 }
 0x7a7   :  { %3006 = vmatpush3.bf16.msra.mxu0 %v3882_v52 }
 0x7a8   :  { %3007 = vmatprep.subr.bf16.mxu0 %v4919_v0 }
 0x7ab   :  { %3008 = vmatpush3.bf16.msra.mxu0 %v3889_v54 }
 0x7ac   :  { %3033 = vmatprep.subr.bf16.mxu0 %v4919_v0 }
 0x7ae   :  { %3010 = vmatmul.mubr.bf16.vlgmr.msra.gmra.mxu0 %v1053_v55 }
 0x7af   :  { %3034 = vmatpush3.bf16.msra.mxu0 %v3934_v2  ;;  %3049 = vmatprep.mubr.msk.bf16.mxu0 %vm3541_vm0, %v4919_v0 }
 0x7b0   :  { %3035 = vmatprep.subr.bf16.mxu0 %v4919_v0 }
 0x7b3   :  { %3036 = vmatpush3.bf16.msra.mxu0 %v3940_v3 }
 0x7b4   :  { %3037 = vmatprep.subr.bf16.mxu0 %v4919_v0 }
 0x7b7   :  { %3038 = vmatpush3.bf16.msra.mxu0 %v3947_v4 }
 0x7b8   :  { %3039 = vmatprep.subr.bf16.mxu0 %v4919_v0 }
 0x7bb   :  { %3040 = vmatpush3.bf16.msra.mxu0 %v3963_v18 }
 0x7bc   :  { %3041 = vmatprep.subr.bf16.mxu0 %v4919_v0 }
 0x7bf   :  { %3042 = vmatpush3.bf16.msra.mxu0 %v3970_v34 }
 0x7c0   :  { %3043 = vmatprep.subr.bf16.mxu0 %v4919_v0 }
 0x7c3   :  { %3044 = vmatpush3.bf16.msra.mxu0 %v3977_v39 }
 0x7c4   :  { %3045 = vmatprep.subr.bf16.mxu0 %v4919_v0 }
 0x7c7   :  { %3046 = vmatpush3.bf16.msra.mxu0 %v3984_v40 }
 0x7c8   :  { %3047 = vmatprep.subr.bf16.mxu0 %v4919_v0 }
 0x7cb   :  { %3048 = vmatpush3.bf16.msra.mxu0 %v4924_v20 }
 0x7cc   :  { %3073 = vmatprep.subr.bf16.mxu0 %v4919_v0 }
 0x82e   :  { %v1088_v22 = vpop.f32.mrf.mxu0 }
 0x82f   :  { %v1089_v26 = vadd.f32 %v4925_v24, %v1088_v22 }
 0x830   :  { %v2931_v28 = vpop.f32.mrf.mxu0 }
 0x831   :  { %2277 = vst [vmem:[%s4911_s10 + $0x8] sm:$0xff] %v1089_v26  ;;  %v1096_v32 = vadd.f32 %v1089_v26, %v4926_v30  ;;  %v4260_v28 = vld [vmem:[%s4903_s4 + $0x38] sm:$0xff]  }
 0x832   :  { %v1091_v35 = vpop.f32.mrf.mxu0 }
 0x833   :  { %1097 = vmax.xlane.f32.xlu1 %v1096_v32 }
 0x834   :  { %v2932_v43 = vpop.f32.mrf.mxu0 }
 0x84e   :  { %v4250_v47 = vpop.f32.mrf.mxu0 }
 0x850   :  { %v2971_v48 = vpop.f32.mrf.mxu0 }
 0x852   :  { %v1197_v49 = vpop.f32.mrf.mxu0 }
 0x853   :  { %v4323_v49 = vld [vmem:[%s4904_s5 + $0x38] sm:$0xff]  }
 0x854   :  { %v2972_v50 = vpop.f32.mrf.mxu0 }
 0x855   :  { %v4339_v50 = vld [vmem:[%s4904_s5 + $0x28] sm:$0xff]  }
 0x86e   :  { %v4252_v51 = vpop.f32.mrf.mxu0 }
 0x870   :  { %v3011_v52 = vpop.f32.mrf.mxu0 }
 0x871   :  { %v4353_v52 = vld [vmem:[%s4904_s5 + $0x18] sm:$0xff]  }
 0x872   :  { %v1280_v46 = vpop.f32.mrf.mxu0 }
 0x873   :  { %v4360_v46 = vld [vmem:[%s4904_s5 + $0x10] sm:$0xff]  }
 0x874   :  { %v3012_v57 = vpop.f32.mrf.mxu0 }
 0x875   :  { %v4367_v57 = vld [vmem:[%s4904_s5 + $0x8] sm:$0xff]  }
 0x8bc   :  { %v1098_v59 = vpop.xlane.xlu1 %1097 }
 0x8bd   :  { %vm1099_vm6 = vcmp.eq.f32.partialorder %v1096_v32, %v1098_v59  ;;  %v4374_v59 = vld [vmem:[%s4904_s5] sm:$0xff]  }
 0x8be   :  { %v1100_v19 = vsel %vm1099_vm6, %v4055_v6, 128 }
 0x8bf   :  { %v1102_v41 = vshra.s32 %v1100_v19, 16  ;;  %v1101_v7 = vand.u32 65535, %v1100_v19  ;;  %v4381_v19 = vld [vmem:[%s4904_s5 + $0x78] sm:$0xff]  }
 0x8c1   :  { %v1104_v16 = vcvt.s32.f32 %v1102_v41  ;;  %v1103_v8 = vcvt.s32.f32 %v1101_v7  ;;  %v4390_v41 = vld [vmem:[%s4904_s5 + $0x70] sm:$0xff]   ;;  %v4404_v7 = vld [vmem:[%s4904_s5 + $0x60] sm:$0xff]  }
 0x8c3   :  { %1105 = vmin.xlane.f32.xlu0 %v1104_v16 }
 0x94c   :  { %v1106_v10 = vpop.xlane.xlu0 %1105 }
 0x94d   :  { %vm1107_vm7 = vcmp.eq.f32.partialorder %v1104_v16, %v1106_v10  ;;  %v1112_v45 = vcvt.f32.s32 %v1106_v10  ;;  %v4397_v16 = vld [vmem:[%s4904_s5 + $0x68] sm:$0xff]   ;;  %v4411_v10 = vld [vmem:[%s4904_s5 + $0x58] sm:$0xff]  }
 0x94e   :  { %v1108_v44 = vsel %vm1107_vm7, %v1103_v8, inf  ;;  %v4418_v8 = vld [vmem:[%s4904_s5 + $0x50] sm:$0xff]  }
 0x94f   :  { %1109 = vmin.xlane.f32.xlu1 %v1108_v44  ;;  %v1113_v55 = vshll.u32 %v1112_v45, 16  ;;  %v4425_v44 = vld [vmem:[%s4904_s5 + $0x48] sm:$0xff]  }
 0x9d8   :  { %v1110_v53 = vpop.xlane.xlu1 %1109 }
 0x9d9   :  { %v1111_v22 = vcvt.f32.s32 %v1110_v53 }
 0x9db   :  { %v1114_v26 = vadd.s32 %v1113_v55, %v1111_v22 }
 0x9dd   :  { %vm1115_vm8 = vcmp.eq.s32.totalorder %v4055_v6, %v1114_v26 }
 0x9de   :  { %vm2279_vm9 = vmpackc.low %vm1115_vm8, %vm1115_vm8 }
 0x9df   :  { %2950 = vmatmul.mubr.msk.bf16.vlgmr.msra.gmra.mxu1 %vm2279_vm9, %v3543_v58 }
 0x9e0   :  { %2974 = vmatpush3.bf16.msra.mxu1 %v4260_v28  ;;  %2989 = vmatprep.mubr.msk.bf16.mxu1 %vm3541_vm0, %v4919_v0 }
 0x9e1   :  { %2975 = vmatprep.subr.bf16.mxu1 %v4919_v0 }
 0x9e4   :  { %2976 = vmatpush3.bf16.msra.mxu1 %v3705_v21 }
 0x9e5   :  { %2977 = vmatprep.subr.bf16.mxu1 %v4919_v0 }
 0x9e8   :  { %2978 = vmatpush3.bf16.msra.mxu1 %v3723_v23 }
 0x9e9   :  { %2979 = vmatprep.subr.bf16.mxu1 %v4919_v0 }
 0x9ec   :  { %2980 = vmatpush3.bf16.msra.mxu1 %v3737_v25 }
 0x9ed   :  { %2981 = vmatprep.subr.bf16.mxu1 %v4919_v0 }
 0x9f0   :  { %2982 = vmatpush3.bf16.msra.mxu1 %v3751_v27 }
 0x9f1   :  { %2983 = vmatprep.subr.bf16.mxu1 %v4919_v0 }
 0x9f4   :  { %2984 = vmatpush3.bf16.msra.mxu1 %v3765_v29 }
 0x9f5   :  { %2985 = vmatprep.subr.bf16.mxu1 %v4919_v0 }
 0x9f8   :  { %2986 = vmatpush3.bf16.msra.mxu1 %v3779_v31 }
 0x9f9   :  { %2987 = vmatprep.subr.bf16.mxu1 %v4919_v0 }
 0x9fc   :  { %2988 = vmatpush3.bf16.msra.mxu1 %v3793_v33 }
 0x9fd   :  { %3013 = vmatprep.subr.bf16.mxu1 %v4919_v0 }
 0xa9f   :  { %v1153_v21 = vpop.f32.mrf.mxu1 }
 0xaa0   :  { %v1159_v23 = vpack.c.bf16 %v1153_v21, %v1153_v21 }
 0xaa1   :  { %v2951_v25 = vpop.f32.mrf.mxu1 }
 0xaa2   :  { %2990 = vmatmul.mubr.bf16.vlgmr.msra.gmra.mxu1 %v1159_v23 }
 0xaa3   :  { %v1156_v32 = vpop.f32.mrf.mxu1  ;;  %3014 = vmatpush3.bf16.msra.mxu1 %v3815_v36  ;;  %3029 = vmatprep.mubr.msk.bf16.mxu1 %vm3541_vm0, %v4919_v0 }
 0xaa4   :  { %3015 = vmatprep.subr.bf16.mxu1 %v4919_v0 }
 0xaa5   :  { %v2952_v27 = vpop.f32.mrf.mxu1 }
 0xaa7   :  { %3016 = vmatpush3.bf16.msra.mxu1 %v3821_v37 }
 0xaa8   :  { %3017 = vmatprep.subr.bf16.mxu1 %v4919_v0 }
 0xaab   :  { %3018 = vmatpush3.bf16.msra.mxu1 %v3828_v38 }
 0xaac   :  { %3019 = vmatprep.subr.bf16.mxu1 %v4919_v0 }
 0xaaf   :  { %3020 = vmatpush3.bf16.msra.mxu1 %v3899_v60 }
 0xab0   :  { %3021 = vmatprep.subr.bf16.mxu1 %v4919_v0 }
 0xab3   :  { %3022 = vmatpush3.bf16.msra.mxu1 %v3906_v61 }
 0xab4   :  { %3023 = vmatprep.subr.bf16.mxu1 %v4919_v0 }
 0xab7   :  { %3024 = vmatpush3.bf16.msra.mxu1 %v3913_v62 }
 0xab8   :  { %3025 = vmatprep.subr.bf16.mxu1 %v4919_v0 }
 0xabb   :  { %3026 = vmatpush3.bf16.msra.mxu1 %v3920_v63 }
 0xabc   :  { %3027 = vmatprep.subr.bf16.mxu1 %v4919_v0 }
 0xabf   :  { %3028 = vmatpush3.bf16.msra.mxu1 %v3927_v1 }
 0xac0   :  { %3053 = vmatprep.subr.bf16.mxu1 %v4919_v0 }
 0xb62   :  { %v1234_v29 = vpop.f32.mrf.mxu1 }
 0xb63   :  { %v1235_v31 = vadd.f32 %v1234_v29, %v4250_v47 }
 0xb64   :  { %v2991_v33 = vpop.f32.mrf.mxu1 }
 0xb65   :  { %v1240_v36 = vadd.f32 %v3955_v5, %v1235_v31 }
 0xb66   :  { %v1237_v37 = vpop.f32.mrf.mxu1 }
 0xb67   :  { %3473 = vtanh.f32 %v1240_v36 }
 0xb68   :  { %v2992_v38 = vpop.f32.mrf.mxu1 }
 0xb74   :  { %v3474_v60 = vpop.eup %3473 }
 0xb75   :  { %v1242_v61 = vpack.c.bf16 %v3474_v60, %v3474_v60 }
 0xb77   :  { %3030 = vmatmul.mubr.bf16.vlgmr.msra.gmra.mxu1 %v1242_v61 }
 0xb78   :  { %3054 = vmatpush3.bf16.msra.mxu1 %v4078_v9  ;;  %3069 = vmatprep.mubr.msk.bf16.mxu1 %vm3541_vm0, %v4919_v0 }
 0xb79   :  { %3055 = vmatprep.subr.bf16.mxu1 %v4919_v0 }
 0xb7c   :  { %3056 = vmatpush3.bf16.msra.mxu1 %v4084_v11 }
 0xb7d   :  { %3057 = vmatprep.subr.bf16.mxu1 %v4919_v0 }
 0xb80   :  { %3058 = vmatpush3.bf16.msra.mxu1 %v4091_v12 }
 0xb81   :  { %3059 = vmatprep.subr.bf16.mxu1 %v4919_v0 }
 0xb84   :  { %3060 = vmatpush3.bf16.msra.mxu1 %v4098_v13 }
 0xb85   :  { %3061 = vmatprep.subr.bf16.mxu1 %v4919_v0 }
 0xb88   :  { %3062 = vmatpush3.bf16.msra.mxu1 %v4105_v14 }
 0xb89   :  { %3063 = vmatprep.subr.bf16.mxu1 %v4919_v0 }
 0xb8c   :  { %3064 = vmatpush3.bf16.msra.mxu1 %v4112_v15 }
 0xb8d   :  { %3065 = vmatprep.subr.bf16.mxu1 %v4919_v0 }
 0xb90   :  { %3066 = vmatpush3.bf16.msra.mxu1 %v4119_v17 }
 0xb91   :  { %3067 = vmatprep.subr.bf16.mxu1 %v4919_v0 }
 0xb94   :  { %3068 = vmatpush3.bf16.msra.mxu1 %v4127_v56 }
 0xb95   :  { %3093 = vmatprep.subr.bf16.mxu1 %v4919_v0 }
 0xc37   :  { %v1317_v62 = vpop.f32.mrf.mxu1 }
 0xc38   :  { %v1318_v63 = vadd.f32 %v1317_v62, %v4252_v51  ;;  %v4346_v51 = vld [vmem:[%s4904_s5 + $0x20] sm:$0xff]   ;;  %v4475_v62 = vld [vmem:[%s4903_s4 + $0x28] sm:$0xff]  }
 0xc39   :  { %v3031_v1 = vpop.f32.mrf.mxu1 }
 0xc3a   :  { %v1323_v5 = vadd.f32 %v3998_v42, %v1318_v63  ;;  %v4332_v42 = vld [vmem:[%s4904_s5 + $0x30] sm:$0xff]   ;;  %v4482_v63 = vld [vmem:[%s4903_s4 + $0x20] sm:$0xff]   ;;  %v4489_v1 = vld [vmem:[%s4903_s4 + $0x18] sm:$0xff]  }
 0xc3b   :  { %v1320_v35 = vpop.f32.mrf.mxu1 }
 0xc3c   :  { %3475 = vtanh.f32 %v1323_v5  ;;  %v4496_v5 = vld [vmem:[%s4903_s4 + $0x10] sm:$0xff]   ;;  %v4503_v35 = vld [vmem:[%s4903_s4 + $0x8] sm:$0xff]  }
 0xc3d   :  { %v3032_v43 = vpop.f32.mrf.mxu1 }
 0xc3e   :  { %v4510_v43 = vld [vmem:[%s4903_s4] sm:$0xff]  }
 0xc49   :  { %v3476_v47 = vpop.eup %3475 }
 0xc4a   :  { %v1325_v48 = vpack.c.bf16 %v3476_v47, %v3476_v47 }
 0xc4c   :  { %3050 = vmatmul.mubr.bf16.vlgmr.msra.gmra.mxu0 %v1325_v48 }
 0xc4d   :  { %3074 = vmatpush3.bf16.msra.mxu0 %v4323_v49  ;;  %3089 = vmatprep.mubr.msk.bf16.mxu0 %vm3541_vm0, %v4919_v0 }
 0xc4e   :  { %3075 = vmatprep.subr.bf16.mxu0 %v4919_v0 }
 0xc51   :  { %3076 = vmatpush3.bf16.msra.mxu0 %v4332_v42 }
 0xc52   :  { %3077 = vmatprep.subr.bf16.mxu0 %v4919_v0 }
 0xc55   :  { %3078 = vmatpush3.bf16.msra.mxu0 %v4339_v50 }
 0xc56   :  { %3079 = vmatprep.subr.bf16.mxu0 %v4919_v0 }
 0xc59   :  { %3080 = vmatpush3.bf16.msra.mxu0 %v4346_v51 }
 0xc5a   :  { %3081 = vmatprep.subr.bf16.mxu0 %v4919_v0 }
 0xc5d   :  { %3082 = vmatpush3.bf16.msra.mxu0 %v4353_v52 }
 0xc5e   :  { %3083 = vmatprep.subr.bf16.mxu0 %v4919_v0 }
 0xc61   :  { %3084 = vmatpush3.bf16.msra.mxu0 %v4360_v46 }
 0xc62   :  { %3085 = vmatprep.subr.bf16.mxu0 %v4919_v0 }
 0xc65   :  { %3086 = vmatpush3.bf16.msra.mxu0 %v4367_v57 }
 0xc66   :  { %3087 = vmatprep.subr.bf16.mxu0 %v4919_v0 }
 0xc69   :  { %3088 = vmatpush3.bf16.msra.mxu0 %v4374_v59 }
 0xc6a   :  { %3113 = vmatprep.subr.bf16.mxu0 %v4919_v0 }
 0xc6c   :  { %3090 = vmatmul.mubr.bf16.vlgmr.msra.gmra.mxu0 %v1242_v61  ;;  %v4468_v61 = vld [vmem:[%s4903_s4 + $0x30] sm:$0xff]  }
 0xc6d   :  { %3114 = vmatpush3.bf16.msra.mxu0 %v4381_v19  ;;  %3129 = vmatprep.mubr.msk.bf16.mxu0 %vm3541_vm0, %v4919_v0 }
 0xc6e   :  { %3115 = vmatprep.subr.bf16.mxu0 %v4919_v0 }
 0xc71   :  { %3116 = vmatpush3.bf16.msra.mxu0 %v4390_v41 }
 0xc72   :  { %3117 = vmatprep.subr.bf16.mxu0 %v4919_v0 }
 0xc75   :  { %3118 = vmatpush3.bf16.msra.mxu0 %v4397_v16 }
 0xc76   :  { %3119 = vmatprep.subr.bf16.mxu0 %v4919_v0 }
 0xc79   :  { %3120 = vmatpush3.bf16.msra.mxu0 %v4404_v7 }
 0xc7a   :  { %3121 = vmatprep.subr.bf16.mxu0 %v4919_v0 }
 0xc7d   :  { %3122 = vmatpush3.bf16.msra.mxu0 %v4411_v10 }
 0xc7e   :  { %3123 = vmatprep.subr.bf16.mxu0 %v4919_v0 }
 0xc81   :  { %3124 = vmatpush3.bf16.msra.mxu0 %v4418_v8 }
 0xc82   :  { %3125 = vmatprep.subr.bf16.mxu0 %v4919_v0 }
 0xc85   :  { %3126 = vmatpush3.bf16.msra.mxu0 %v4425_v44 }
 0xc86   :  { %3127 = vmatprep.subr.bf16.mxu0 %v4919_v0 }
 0xc89   :  { %3128 = vmatpush3.bf16.msra.mxu0 %v3889_v54 }
 0xc8a   :  { %3153 = vmatprep.subr.bf16.mxu0 %v4919_v0 }
 0xc8c   :  { %3130 = vmatmul.mubr.bf16.vlgmr.msra.gmra.mxu0 %v1325_v48 }
 0xc8d   :  { %3154 = vmatpush3.bf16.msra.mxu0 %v3934_v2  ;;  %3169 = vmatprep.mubr.msk.bf16.mxu0 %vm3541_vm0, %v4919_v0 }
 0xc8e   :  { %3155 = vmatprep.subr.bf16.mxu0 %v4919_v0 }
 0xc91   :  { %3156 = vmatpush3.bf16.msra.mxu0 %v3940_v3 }
 0xc92   :  { %3157 = vmatprep.subr.bf16.mxu0 %v4919_v0 }
 0xc95   :  { %3158 = vmatpush3.bf16.msra.mxu0 %v3947_v4 }
 0xc96   :  { %3159 = vmatprep.subr.bf16.mxu0 %v4919_v0 }
 0xc99   :  { %3160 = vmatpush3.bf16.msra.mxu0 %v3963_v18 }
 0xc9a   :  { %3161 = vmatprep.subr.bf16.mxu0 %v4919_v0 }
 0xc9d   :  { %3162 = vmatpush3.bf16.msra.mxu0 %v3970_v34 }
 0xc9e   :  { %3163 = vmatprep.subr.bf16.mxu0 %v4919_v0 }
 0xca1   :  { %3164 = vmatpush3.bf16.msra.mxu0 %v3977_v39 }
 0xca2   :  { %3165 = vmatprep.subr.bf16.mxu0 %v4919_v0 }
 0xca5   :  { %3166 = vmatpush3.bf16.msra.mxu0 %v3984_v40 }
 0xca6   :  { %3167 = vmatprep.subr.bf16.mxu0 %v4919_v0 }
 0xca9   :  { %3168 = vmatpush3.bf16.msra.mxu0 %v4924_v20 }
 0xcaa   :  { %3193 = vmatprep.subr.bf16.mxu0 %v4919_v0 }
 0xd0c   :  { %v1360_v54 = vpop.f32.mrf.mxu0 }
 0xd0d   :  { %v1361_v2 = vadd.f32 %v4925_v24, %v1360_v54 }
 0xd0e   :  { %v3051_v3 = vpop.f32.mrf.mxu0 }
 0xd0f   :  { %2281 = vst [vmem:[%s4911_s10 + $0x10] sm:$0xff] %v1361_v2  ;;  %v1368_v4 = vadd.f32 %v1361_v2, %v4926_v30  ;;  %v4517_v3 = vld [vmem:[%s4903_s4 + $0x78] sm:$0xff]  }
 0xd10   :  { %v1363_v18 = vpop.f32.mrf.mxu0 }
 0xd11   :  { %1369 = vmax.xlane.f32.xlu0 %v1368_v4  ;;  %v4526_v18 = vld [vmem:[%s4903_s4 + $0x70] sm:$0xff]  }
 0xd12   :  { %v3052_v34 = vpop.f32.mrf.mxu0 }
 0xd13   :  { %v4533_v34 = vld [vmem:[%s4903_s4 + $0x68] sm:$0xff]  }
 0xd2c   :  { %v4454_v39 = vpop.f32.mrf.mxu0 }
 0xd2e   :  { %v3091_v40 = vpop.f32.mrf.mxu0 }
 0xd2f   :  { %v4540_v40 = vld [vmem:[%s4903_s4 + $0x60] sm:$0xff]  }
 0xd30   :  { %v1469_v45 = vpop.f32.mrf.mxu0 }
 0xd31   :  { %v4547_v45 = vld [vmem:[%s4903_s4 + $0x58] sm:$0xff]  }
 0xd32   :  { %v3092_v20 = vpop.f32.mrf.mxu0 }
 0xd33   :  { %v4554_v20 = vld [vmem:[%s4903_s4 + $0x50] sm:$0xff]  }
 0xd4c   :  { %v4456_v53 = vpop.f32.mrf.mxu0 }
 0xd4e   :  { %v3131_v55 = vpop.f32.mrf.mxu0 }
 0xd4f   :  { %v4561_v55 = vld [vmem:[%s4903_s4 + $0x48] sm:$0xff]  }
 0xd50   :  { %v1552_v22 = vpop.f32.mrf.mxu0 }
 0xd51   :  { %v4568_v22 = vld [vmem:[%s4903_s4 + $0x40] sm:$0xff]  }
 0xd52   :  { %v3132_v24 = vpop.f32.mrf.mxu0 }
 0xd9a   :  { %v1370_v26 = vpop.xlane.xlu0 %1369 }
 0xd9b   :  { %vm1371_vm10 = vcmp.eq.f32.partialorder %v1368_v4, %v1370_v26 }
 0xd9c   :  { %v1372_v21 = vsel %vm1371_vm10, %v4055_v6, 128 }
 0xd9d   :  { %v1374_v23 = vshra.s32 %v1372_v21, 16  ;;  %v1373_v32 = vand.u32 65535, %v1372_v21 }
 0xd9f   :  { %v1376_v25 = vcvt.s32.f32 %v1374_v23  ;;  %v1375_v29 = vcvt.s32.f32 %v1373_v32  ;;  %v4576_v23 = vld [vmem:[%s4909_s6] ss:$0 sm:$0xff] }
 0xda1   :  { %1377 = vmin.xlane.f32.xlu1 %v1376_v25 }
 0xe2a   :  { %v1378_v27 = vpop.xlane.xlu1 %1377 }
 0xe2b   :  { %vm1379_vm11 = vcmp.eq.f32.partialorder %v1376_v25, %v1378_v27  ;;  %v1384_v33 = vcvt.f32.s32 %v1378_v27 }
 0xe2c   :  { %v1380_v31 = vsel %vm1379_vm11, %v1375_v29, inf }
 0xe2d   :  { %1381 = vmin.xlane.f32.xlu0 %v1380_v31  ;;  %v1385_v37 = vshll.u32 %v1384_v33, 16 }
 0xeb6   :  { %v1382_v36 = vpop.xlane.xlu0 %1381 }
 0xeb7   :  { %v1383_v38 = vcvt.f32.s32 %v1382_v36  ;;  %v4657_v36 = vld [vmem:[%s4908_s7 + $0x30] sm:$0xff]  }
 0xeb9   :  { %v1386_v60 = vadd.s32 %v1385_v37, %v1383_v38  ;;  %v4664_v37 = vld [vmem:[%s4908_s7 + $0x28] sm:$0xff]   ;;  %v4671_v38 = vld [vmem:[%s4908_s7 + $0x20] sm:$0xff]  }
 0xebb   :  { %vm1387_vm12 = vcmp.eq.s32.totalorder %v4055_v6, %v1386_v60  ;;  %v4678_v60 = vld [vmem:[%s4908_s7 + $0x18] sm:$0xff]  }
 0xebc   :  { %vm2283_vm13 = vmpackc.low %vm1387_vm12, %vm1387_vm12 }
 0xebd   :  { %3070 = vmatmul.mubr.msk.bf16.vlgmr.msra.gmra.mxu1 %vm2283_vm13, %v3543_v58 }
 0xebe   :  { %3094 = vmatpush3.bf16.msra.mxu1 %v4260_v28  ;;  %3109 = vmatprep.mubr.msk.bf16.mxu1 %vm3541_vm0, %v4919_v0 }
 0xebf   :  { %3095 = vmatprep.subr.bf16.mxu1 %v4919_v0 }
 0xec2   :  { %3096 = vmatpush3.bf16.msra.mxu1 %v4468_v61 }
 0xec3   :  { %3097 = vmatprep.subr.bf16.mxu1 %v4919_v0 }
 0xec6   :  { %3098 = vmatpush3.bf16.msra.mxu1 %v4475_v62 }
 0xec7   :  { %3099 = vmatprep.subr.bf16.mxu1 %v4919_v0 }
 0xeca   :  { %3100 = vmatpush3.bf16.msra.mxu1 %v4482_v63 }
 0xecb   :  { %3101 = vmatprep.subr.bf16.mxu1 %v4919_v0 }
 0xece   :  { %3102 = vmatpush3.bf16.msra.mxu1 %v4489_v1 }
 0xecf   :  { %3103 = vmatprep.subr.bf16.mxu1 %v4919_v0 }
 0xed2   :  { %3104 = vmatpush3.bf16.msra.mxu1 %v4496_v5 }
 0xed3   :  { %3105 = vmatprep.subr.bf16.mxu1 %v4919_v0 }
 0xed6   :  { %3106 = vmatpush3.bf16.msra.mxu1 %v4503_v35 }
 0xed7   :  { %3107 = vmatprep.subr.bf16.mxu1 %v4919_v0 }
 0xeda   :  { %3108 = vmatpush3.bf16.msra.mxu1 %v4510_v43 }
 0xedb   :  { %3133 = vmatprep.subr.bf16.mxu1 %v4919_v0 }
 0xf7d   :  { %v1425_v47 = vpop.f32.mrf.mxu1 }
 0xf7e   :  { %v1431_v48 = vpack.c.bf16 %v1425_v47, %v1425_v47  ;;  %v4685_v47 = vld [vmem:[%s4908_s7 + $0x10] sm:$0xff]  }
 0xf7f   :  { %v3071_v54 = vpop.f32.mrf.mxu1 }
 0xf80   :  { %3110 = vmatmul.mubr.bf16.vlgmr.msra.gmra.mxu1 %v1431_v48  ;;  %v4692_v48 = vld [vmem:[%s4908_s7 + $0x8] sm:$0xff]   ;;  %v4699_v54 = vld [vmem:[%s4908_s7] sm:$0xff]  }
 0xf81   :  { %v1428_v2 = vpop.f32.mrf.mxu1  ;;  %3134 = vmatpush3.bf16.msra.mxu1 %v4517_v3  ;;  %3149 = vmatprep.mubr.msk.bf16.mxu1 %vm3541_vm0, %v4919_v0 }
 0xf82   :  { %3135 = vmatprep.subr.bf16.mxu1 %v4919_v0 }
 0xf83   :  { %v3072_v4 = vpop.f32.mrf.mxu1 }
 0xf84   :  { %v4706_v4 = vld [vmem:[%s4910_s8] ss:$0 sm:$0xff] }
 0xf85   :  { %3136 = vmatpush3.bf16.msra.mxu1 %v4526_v18 }
 0xf86   :  { %3137 = vmatprep.subr.bf16.mxu1 %v4919_v0 }
 0xf89   :  { %3138 = vmatpush3.bf16.msra.mxu1 %v4533_v34 }
 0xf8a   :  { %3139 = vmatprep.subr.bf16.mxu1 %v4919_v0 }
 0xf8d   :  { %3140 = vmatpush3.bf16.msra.mxu1 %v4540_v40 }
 0xf8e   :  { %3141 = vmatprep.subr.bf16.mxu1 %v4919_v0 }
 0xf91   :  { %3142 = vmatpush3.bf16.msra.mxu1 %v4547_v45 }
 0xf92   :  { %3143 = vmatprep.subr.bf16.mxu1 %v4919_v0 }
 0xf95   :  { %3144 = vmatpush3.bf16.msra.mxu1 %v4554_v20 }
 0xf96   :  { %3145 = vmatprep.subr.bf16.mxu1 %v4919_v0 }
 0xf99   :  { %3146 = vmatpush3.bf16.msra.mxu1 %v4561_v55 }
 0xf9a   :  { %3147 = vmatprep.subr.bf16.mxu1 %v4919_v0 }
 0xf9d   :  { %3148 = vmatpush3.bf16.msra.mxu1 %v4568_v22 }
 0xf9e   :  { %3173 = vmatprep.subr.bf16.mxu1 %v4919_v0 }
0x1040   :  { %v1506_v24 = vpop.f32.mrf.mxu1 }
0x1041   :  { %v1507_v26 = vadd.f32 %v1506_v24, %v4454_v39 }
0x1042   :  { %v3111_v21 = vpop.f32.mrf.mxu1 }
0x1043   :  { %v1512_v25 = vadd.f32 %v4576_v23, %v1507_v26 }
0x1044   :  { %v1509_v32 = vpop.f32.mrf.mxu1 }
0x1045   :  { %3477 = vtanh.f32 %v1512_v25 }
0x1046   :  { %v3112_v27 = vpop.f32.mrf.mxu1 }
0x1052   :  { %v3478_v29 = vpop.eup %3477 }
0x1053   :  { %v1514_v31 = vpack.c.bf16 %v3478_v29, %v3478_v29 }
0x1055   :  { %3150 = vmatmul.mubr.bf16.vlgmr.msra.gmra.mxu1 %v1514_v31 }
0x1056   :  { %3174 = vmatpush3.bf16.msra.mxu1 %v4078_v9  ;;  %3189 = vmatprep.mubr.msk.bf16.mxu1 %vm3541_vm0, %v4919_v0 }
0x1057   :  { %3175 = vmatprep.subr.bf16.mxu1 %v4919_v0 }
0x105a   :  { %3176 = vmatpush3.bf16.msra.mxu1 %v4084_v11 }
0x105b   :  { %3177 = vmatprep.subr.bf16.mxu1 %v4919_v0 }
0x105e   :  { %3178 = vmatpush3.bf16.msra.mxu1 %v4091_v12 }
0x105f   :  { %3179 = vmatprep.subr.bf16.mxu1 %v4919_v0 }
0x1062   :  { %3180 = vmatpush3.bf16.msra.mxu1 %v4098_v13  ;;  %v4601_v13 = vld [vmem:[%s4909_s6 + $0x1] ss:$0 sm:$0xff] }
0x1063   :  { %3181 = vmatprep.subr.bf16.mxu1 %v4919_v0 }
0x1066   :  { %3182 = vmatpush3.bf16.msra.mxu1 %v4105_v14 }
0x1067   :  { %3183 = vmatprep.subr.bf16.mxu1 %v4919_v0 }
0x106a   :  { %3184 = vmatpush3.bf16.msra.mxu1 %v4112_v15 }
0x106b   :  { %3185 = vmatprep.subr.bf16.mxu1 %v4919_v0 }
0x106e   :  { %3186 = vmatpush3.bf16.msra.mxu1 %v4119_v17 }
0x106f   :  { %3187 = vmatprep.subr.bf16.mxu1 %v4919_v0 }
0x1072   :  { %3188 = vmatpush3.bf16.msra.mxu1 %v4127_v56  ;;  %v4641_v56 = vld [vmem:[%s4904_s5 + $0x40] sm:$0xff]  }
0x1073   :  { %3213 = vmatprep.subr.bf16.mxu1 %v4919_v0 }
0x1115   :  { %v1589_v9 = vpop.f32.mrf.mxu1 }
0x1116   :  { %v1590_v11 = vadd.f32 %v1589_v9, %v4456_v53  ;;  %v4648_v53 = vld [vmem:[%s4908_s7 + $0x38] sm:$0xff]  }
0x1117   :  { %v3151_v12 = vpop.f32.mrf.mxu1 }
0x1118   :  { %v1595_v14 = vadd.f32 %v4601_v13, %v1590_v11 }
0x1119   :  { %v1592_v15 = vpop.f32.mrf.mxu1 }
0x111a   :  { %3479 = vtanh.f32 %v1595_v14 }
0x111b   :  { %v3152_v17 = vpop.f32.mrf.mxu1 }
0x1127   :  { %v3480_v39 = vpop.eup %3479 }
0x1128   :  { %v1597_v33 = vpack.c.bf16 %v3480_v39, %v3480_v39 }
0x112a   :  { %3170 = vmatmul.mubr.bf16.vlgmr.msra.gmra.mxu0 %v1597_v33 }
0x112b   :  { %3194 = vmatpush3.bf16.msra.mxu0 %v4323_v49  ;;  %3209 = vmatprep.mubr.msk.bf16.mxu0 %vm3541_vm0, %v4919_v0 }
0x112c   :  { %3195 = vmatprep.subr.bf16.mxu0 %v4919_v0 }
0x112f   :  { %3196 = vmatpush3.bf16.msra.mxu0 %v4332_v42 }
0x1130   :  { %3197 = vmatprep.subr.bf16.mxu0 %v4919_v0 }
0x1133   :  { %3198 = vmatpush3.bf16.msra.mxu0 %v4339_v50 }
0x1134   :  { %3199 = vmatprep.subr.bf16.mxu0 %v4919_v0 }
0x1137   :  { %3200 = vmatpush3.bf16.msra.mxu0 %v4346_v51 }
0x1138   :  { %3201 = vmatprep.subr.bf16.mxu0 %v4919_v0 }
0x113b   :  { %3202 = vmatpush3.bf16.msra.mxu0 %v4353_v52 }
0x113c   :  { %3203 = vmatprep.subr.bf16.mxu0 %v4919_v0 }
0x113f   :  { %3204 = vmatpush3.bf16.msra.mxu0 %v4360_v46 }
0x1140   :  { %3205 = vmatprep.subr.bf16.mxu0 %v4919_v0 }
0x1143   :  { %3206 = vmatpush3.bf16.msra.mxu0 %v4367_v57 }
0x1144   :  { %3207 = vmatprep.subr.bf16.mxu0 %v4919_v0 }
0x1147   :  { %3208 = vmatpush3.bf16.msra.mxu0 %v4374_v59 }
0x1148   :  { %3233 = vmatprep.subr.bf16.mxu0 %v4919_v0 }
0x114a   :  { %3210 = vmatmul.mubr.bf16.vlgmr.msra.gmra.mxu0 %v1514_v31 }
0x114b   :  { %3234 = vmatpush3.bf16.msra.mxu0 %v4381_v19  ;;  %3249 = vmatprep.mubr.msk.bf16.mxu0 %vm3541_vm0, %v4919_v0 }
0x114c   :  { %3235 = vmatprep.subr.bf16.mxu0 %v4919_v0 }
0x114f   :  { %3236 = vmatpush3.bf16.msra.mxu0 %v4390_v41 }
0x1150   :  { %3237 = vmatprep.subr.bf16.mxu0 %v4919_v0 }
0x1153   :  { %3238 = vmatpush3.bf16.msra.mxu0 %v4397_v16 }
0x1154   :  { %3239 = vmatprep.subr.bf16.mxu0 %v4919_v0 }
0x1157   :  { %3240 = vmatpush3.bf16.msra.mxu0 %v4404_v7 }
0x1158   :  { %3241 = vmatprep.subr.bf16.mxu0 %v4919_v0 }
0x115b   :  { %3242 = vmatpush3.bf16.msra.mxu0 %v4411_v10 }
0x115c   :  { %3243 = vmatprep.subr.bf16.mxu0 %v4919_v0 }
0x115f   :  { %3244 = vmatpush3.bf16.msra.mxu0 %v4418_v8 }
0x1160   :  { %3245 = vmatprep.subr.bf16.mxu0 %v4919_v0 }
0x1163   :  { %3246 = vmatpush3.bf16.msra.mxu0 %v4425_v44 }
0x1164   :  { %3247 = vmatprep.subr.bf16.mxu0 %v4919_v0 }
0x1167   :  { %3248 = vmatpush3.bf16.msra.mxu0 %v4641_v56 }
0x1168   :  { %3273 = vmatprep.subr.bf16.mxu0 %v4919_v0 }
0x116a   :  { %3250 = vmatmul.mubr.bf16.vlgmr.msra.gmra.mxu0 %v1597_v33 }
0x116b   :  { %3274 = vmatpush3.bf16.msra.mxu0 %v4648_v53  ;;  %3289 = vmatprep.mubr.msk.bf16.mxu0 %vm3541_vm0, %v4919_v0 }
0x116c   :  { %3275 = vmatprep.subr.bf16.mxu0 %v4919_v0 }
0x116f   :  { %3276 = vmatpush3.bf16.msra.mxu0 %v4657_v36 }
0x1170   :  { %3277 = vmatprep.subr.bf16.mxu0 %v4919_v0 }
0x1173   :  { %3278 = vmatpush3.bf16.msra.mxu0 %v4664_v37 }
0x1174   :  { %3279 = vmatprep.subr.bf16.mxu0 %v4919_v0 }
0x1177   :  { %3280 = vmatpush3.bf16.msra.mxu0 %v4671_v38 }
0x1178   :  { %3281 = vmatprep.subr.bf16.mxu0 %v4919_v0 }
0x117b   :  { %3282 = vmatpush3.bf16.msra.mxu0 %v4678_v60 }
0x117c   :  { %3283 = vmatprep.subr.bf16.mxu0 %v4919_v0 }
0x117f   :  { %3284 = vmatpush3.bf16.msra.mxu0 %v4685_v47 }
0x1180   :  { %3285 = vmatprep.subr.bf16.mxu0 %v4919_v0 }
0x1183   :  { %3286 = vmatpush3.bf16.msra.mxu0 %v4692_v48 }
0x1184   :  { %3287 = vmatprep.subr.bf16.mxu0 %v4919_v0 }
0x1187   :  { %3288 = vmatpush3.bf16.msra.mxu0 %v4699_v54 }
0x1188   :  { %3313 = vmatprep.subr.bf16.mxu0 %v4919_v0 }
0x11ea   :  { %v1632_v2 = vpop.f32.mrf.mxu0 }
0x11eb   :  { %v1633_v24 = vadd.f32 %v4706_v4, %v1632_v2 }
0x11ec   :  { %v3171_v26 = vpop.f32.mrf.mxu0 }
0x11ed   :  { %2285 = vst [vmem:[%s4911_s10 + $0x18] sm:$0xff] %v1633_v24  ;;  %v1640_v21 = vadd.f32 %v1633_v24, %v4926_v30 }
0x11ee   :  { %v1635_v25 = vpop.f32.mrf.mxu0 }
0x11ef   :  { %1641 = vmax.xlane.f32.xlu1 %v1640_v21 }
0x11f0   :  { %v3172_v32 = vpop.f32.mrf.mxu0 }
0x120a   :  { %v4713_v27 = vpop.f32.mrf.mxu0 }
0x120c   :  { %v3211_v29 = vpop.f32.mrf.mxu0 }
0x120e   :  { %v1741_v31 = vpop.f32.mrf.mxu0 }
0x1210   :  { %v3212_v9 = vpop.f32.mrf.mxu0 }
0x122a   :  { %v4715_v11 = vpop.f32.mrf.mxu0 }
0x122c   :  { %v3251_v12 = vpop.f32.mrf.mxu0 }
0x122e   :  { %v1824_v14 = vpop.f32.mrf.mxu0 }
0x1230   :  { %v3252_v15 = vpop.f32.mrf.mxu0 }
0x1278   :  { %v1642_v17 = vpop.xlane.xlu1 %1641 }
0x1279   :  { %vm1643_vm14 = vcmp.eq.f32.partialorder %v1640_v21, %v1642_v17  ;;  %v4927_v21 = vmov 0.0  }
0x127a   :  { %v1644_v39 = vsel %vm1643_vm14, %v4055_v6, 128 }
0x127b   :  { %v1646_v33 = vshra.s32 %v1644_v39, 16  ;;  %v1645_v24 = vand.u32 65535, %v1644_v39 }
0x127d   :  { %v1648_v2 = vcvt.s32.f32 %v1646_v33  ;;  %v1647_v25 = vcvt.s32.f32 %v1645_v24 }
0x127f   :  { %1649 = vmin.xlane.f32.xlu0 %v1648_v2 }
0x1308   :  { %v1650_v26 = vpop.xlane.xlu0 %1649 }
0x1309   :  { %vm1651_vm15 = vcmp.eq.f32.partialorder %v1648_v2, %v1650_v26  ;;  %v1656_v29 = vcvt.f32.s32 %v1650_v26 }
0x130a   :  { %v1652_v32 = vsel %vm1651_vm15, %v1647_v25, inf }
0x130b   :  { %1653 = vmin.xlane.f32.xlu1 %v1652_v32  ;;  %v1657_v9 = vshll.u32 %v1656_v29, 16 }
0x1394   :  { %v1654_v31 = vpop.xlane.xlu1 %1653 }
0x1395   :  { %v1655_v0 = vcvt.f32.s32 %v1654_v31 }
0x1397   :  { %v1658_v12 = vadd.s32 %v1657_v9, %v1655_v0  ;;  %v3532_v9 = vld [vmem:[%s4912_s9 + $0x38] sm:$0xff]  }
0x1399   :  { %vm1659_vm1 = vcmp.eq.s32.totalorder %v4055_v6, %v1658_v12  ;;  %v3534_v12 = vld [vmem:[%s4912_s9 + $0x28] sm:$0xff]  }
0x139a   :  { %vm2287_vm2 = vmpackc.low %vm1659_vm1, %vm1659_vm1 }
0x139b   :  { %3190 = vmatmul.mubr.msk.bf16.vlgmr.msra.gmra.mxu1 %vm2287_vm2, %v3543_v58 }
0x139c   :  { %3214 = vmatpush3.bf16.msra.mxu1 %v4260_v28  ;;  %3229 = vmatprep.mubr.msk.bf16.mxu1 %vm3541_vm0, %v4927_v21 }
0x139d   :  { %3215 = vmatprep.subr.bf16.mxu1 %v4927_v21 }
0x13a0   :  { %3216 = vmatpush3.bf16.msra.mxu1 %v4468_v61 }
0x13a1   :  { %3217 = vmatprep.subr.bf16.mxu1 %v4927_v21 }
0x13a4   :  { %3218 = vmatpush3.bf16.msra.mxu1 %v4475_v62 }
0x13a5   :  { %3219 = vmatprep.subr.bf16.mxu1 %v4927_v21 }
0x13a8   :  { %3220 = vmatpush3.bf16.msra.mxu1 %v4482_v63 }
0x13a9   :  { %3221 = vmatprep.subr.bf16.mxu1 %v4927_v21 }
0x13ac   :  { %3222 = vmatpush3.bf16.msra.mxu1 %v4489_v1 }
0x13ad   :  { %3223 = vmatprep.subr.bf16.mxu1 %v4927_v21 }
0x13b0   :  { %3224 = vmatpush3.bf16.msra.mxu1 %v4496_v5 }
0x13b1   :  { %3225 = vmatprep.subr.bf16.mxu1 %v4927_v21 }
0x13b4   :  { %3226 = vmatpush3.bf16.msra.mxu1 %v4503_v35 }
0x13b5   :  { %3227 = vmatprep.subr.bf16.mxu1 %v4927_v21 }
0x13b8   :  { %3228 = vmatpush3.bf16.msra.mxu1 %v4510_v43 }
0x13b9   :  { %3253 = vmatprep.subr.bf16.mxu1 %v4927_v21 }
0x145b   :  { %v1697_v0 = vpop.f32.mrf.mxu1 }
0x145c   :  { %v1703_v14 = vpack.c.bf16 %v1697_v0, %v1697_v0  ;;  %v3535_v0 = vld [vmem:[%s4912_s9 + $0x20] sm:$0xff]  }
0x145d   :  { %v3191_v15 = vpop.f32.mrf.mxu1 }
0x145e   :  { %3230 = vmatmul.mubr.bf16.vlgmr.msra.gmra.mxu1 %v1703_v14  ;;  %v3536_v14 = vld [vmem:[%s4912_s9 + $0x18] sm:$0xff]   ;;  %v3537_v15 = vld [vmem:[%s4912_s9 + $0x10] sm:$0xff]  }
0x145f   :  { %v1700_v17 = vpop.f32.mrf.mxu1  ;;  %3254 = vmatpush3.bf16.msra.mxu1 %v4517_v3  ;;  %3269 = vmatprep.mubr.msk.bf16.mxu1 %vm3541_vm0, %v4927_v21 }
0x1460   :  { %3255 = vmatprep.subr.bf16.mxu1 %v4927_v21  ;;  %v3538_v17 = vld [vmem:[%s4912_s9 + $0x8] sm:$0xff]  }
0x1461   :  { %v3192_v39 = vpop.f32.mrf.mxu1 }
0x1462   :  { %v3539_v39 = vld [vmem:[%s4912_s9] sm:$0xff]  }
0x1463   :  { %3256 = vmatpush3.bf16.msra.mxu1 %v4526_v18 }
0x1464   :  { %3257 = vmatprep.subr.bf16.mxu1 %v4927_v21 }
0x1467   :  { %3258 = vmatpush3.bf16.msra.mxu1 %v4533_v34 }
0x1468   :  { %3259 = vmatprep.subr.bf16.mxu1 %v4927_v21 }
0x146b   :  { %3260 = vmatpush3.bf16.msra.mxu1 %v4540_v40 }
0x146c   :  { %3261 = vmatprep.subr.bf16.mxu1 %v4927_v21 }
0x146f   :  { %3262 = vmatpush3.bf16.msra.mxu1 %v4547_v45 }
0x1470   :  { %3263 = vmatprep.subr.bf16.mxu1 %v4927_v21 }
0x1473   :  { %3264 = vmatpush3.bf16.msra.mxu1 %v4554_v20 }
0x1474   :  { %3265 = vmatprep.subr.bf16.mxu1 %v4927_v21 }
0x1477   :  { %3266 = vmatpush3.bf16.msra.mxu1 %v4561_v55 }
0x1478   :  { %3267 = vmatprep.subr.bf16.mxu1 %v4927_v21 }
0x147b   :  { %3268 = vmatpush3.bf16.msra.mxu1 %v4568_v22 }
0x147c   :  { %3293 = vmatprep.subr.bf16.mxu1 %v4927_v21 }
0x151e   :  { %v1778_v33 = vpop.f32.mrf.mxu1 }
0x151f   :  { %v1779_v2 = vadd.f32 %v1778_v33, %v4713_v27  ;;  %v3533_v27 = vld [vmem:[%s4912_s9 + $0x30] sm:$0xff]  }
0x1520   :  { %v3231_v24 = vpop.f32.mrf.mxu1 }
0x1521   :  { %v1784_v26 = vadd.f32 %v4576_v23, %v1779_v2 }
0x1522   :  { %v1781_v25 = vpop.f32.mrf.mxu1 }
0x1523   :  { %3481 = vtanh.f32 %v1784_v26 }
0x1524   :  { %v3232_v32 = vpop.f32.mrf.mxu1 }
0x1530   :  { %v3482_v29 = vpop.eup %3481 }
0x1531   :  { %v1786_v31 = vpack.c.bf16 %v3482_v29, %v3482_v29 }
0x1533   :  { %3270 = vmatmul.mubr.bf16.vlgmr.msra.gmra.mxu1 %v1786_v31 }
0x1534   :  { %3294 = vmatpush3.bf16.msra.mxu1 %v3532_v9  ;;  %3309 = vmatprep.mubr.msk.bf16.mxu1 %vm3541_vm0, %v4927_v21 }
0x1535   :  { %3295 = vmatprep.subr.bf16.mxu1 %v4927_v21 }
0x1538   :  { %3296 = vmatpush3.bf16.msra.mxu1 %v3533_v27 }
0x1539   :  { %3297 = vmatprep.subr.bf16.mxu1 %v4927_v21 }
0x153c   :  { %3298 = vmatpush3.bf16.msra.mxu1 %v3534_v12 }
0x153d   :  { %3299 = vmatprep.subr.bf16.mxu1 %v4927_v21 }
0x1540   :  { %3300 = vmatpush3.bf16.msra.mxu1 %v3535_v0 }
0x1541   :  { %3301 = vmatprep.subr.bf16.mxu1 %v4927_v21 }
0x1544   :  { %3302 = vmatpush3.bf16.msra.mxu1 %v3536_v14 }
0x1545   :  { %3303 = vmatprep.subr.bf16.mxu1 %v4927_v21 }
0x1548   :  { %3304 = vmatpush3.bf16.msra.mxu1 %v3537_v15 }
0x1549   :  { %3305 = vmatprep.subr.bf16.mxu1 %v4927_v21 }
0x154c   :  { %3306 = vmatpush3.bf16.msra.mxu1 %v3538_v17 }
0x154d   :  { %3307 = vmatprep.subr.bf16.mxu1 %v4927_v21 }
0x1550   :  { %3308 = vmatpush3.bf16.msra.mxu1 %v3539_v39 }
0x1551   :  { %3333 = vmatprep.subr.bf16.mxu1 %v4927_v21 }
0x15f3   :  { %v1861_v33 = vpop.f32.mrf.mxu1 }
0x15f4   :  { %v1862_v2 = vadd.f32 %v1861_v33, %v4715_v11 }
0x15f5   :  { %v3271_v24 = vpop.f32.mrf.mxu1 }
0x15f6   :  { %v1867_v26 = vadd.f32 %v4601_v13, %v1862_v2 }
0x15f7   :  { %v1864_v25 = vpop.f32.mrf.mxu1 }
0x15f8   :  { %3483 = vtanh.f32 %v1867_v26 }
0x15f9   :  { %v3272_v32 = vpop.f32.mrf.mxu1 }
0x1605   :  { %v3484_v29 = vpop.eup %3483 }
0x1606   :  { %v1869_v9 = vpack.c.bf16 %v3484_v29, %v3484_v29 }
0x1608   :  { %3290 = vmatmul.mubr.bf16.vlgmr.msra.gmra.mxu0 %v1869_v9 }
0x1609   :  { %3314 = vmatpush3.bf16.msra.mxu0 %v4323_v49  ;;  %3329 = vmatprep.mubr.msk.bf16.mxu0 %vm3541_vm0, %v4927_v21 }
0x160a   :  { %3315 = vmatprep.subr.bf16.mxu0 %v4927_v21 }
0x160d   :  { %3316 = vmatpush3.bf16.msra.mxu0 %v4332_v42 }
0x160e   :  { %3317 = vmatprep.subr.bf16.mxu0 %v4927_v21 }
0x1611   :  { %3318 = vmatpush3.bf16.msra.mxu0 %v4339_v50 }
0x1612   :  { %3319 = vmatprep.subr.bf16.mxu0 %v4927_v21 }
0x1615   :  { %3320 = vmatpush3.bf16.msra.mxu0 %v4346_v51 }
0x1616   :  { %3321 = vmatprep.subr.bf16.mxu0 %v4927_v21 }
0x1619   :  { %3322 = vmatpush3.bf16.msra.mxu0 %v4353_v52 }
0x161a   :  { %3323 = vmatprep.subr.bf16.mxu0 %v4927_v21 }
0x161d   :  { %3324 = vmatpush3.bf16.msra.mxu0 %v4360_v46 }
0x161e   :  { %3325 = vmatprep.subr.bf16.mxu0 %v4927_v21 }
0x1621   :  { %3326 = vmatpush3.bf16.msra.mxu0 %v4367_v57 }
0x1622   :  { %3327 = vmatprep.subr.bf16.mxu0 %v4927_v21 }
0x1625   :  { %3328 = vmatpush3.bf16.msra.mxu0 %v4374_v59 }
0x1626   :  { %3353 = vmatprep.subr.bf16.mxu0 %v4927_v21 }
0x1628   :  { %3330 = vmatmul.mubr.bf16.vlgmr.msra.gmra.mxu0 %v1786_v31 }
0x1629   :  { %3354 = vmatpush3.bf16.msra.mxu0 %v4381_v19  ;;  %3369 = vmatprep.mubr.msk.bf16.mxu0 %vm3541_vm0, %v4927_v21 }
0x162a   :  { %3355 = vmatprep.subr.bf16.mxu0 %v4927_v21 }
0x162d   :  { %3356 = vmatpush3.bf16.msra.mxu0 %v4390_v41 }
0x162e   :  { %3357 = vmatprep.subr.bf16.mxu0 %v4927_v21 }
0x1631   :  { %3358 = vmatpush3.bf16.msra.mxu0 %v4397_v16 }
0x1632   :  { %3359 = vmatprep.subr.bf16.mxu0 %v4927_v21 }
0x1635   :  { %3360 = vmatpush3.bf16.msra.mxu0 %v4404_v7 }
0x1636   :  { %3361 = vmatprep.subr.bf16.mxu0 %v4927_v21 }
0x1639   :  { %3362 = vmatpush3.bf16.msra.mxu0 %v4411_v10 }
0x163a   :  { %3363 = vmatprep.subr.bf16.mxu0 %v4927_v21 }
0x163d   :  { %3364 = vmatpush3.bf16.msra.mxu0 %v4418_v8 }
0x163e   :  { %3365 = vmatprep.subr.bf16.mxu0 %v4927_v21 }
0x1641   :  { %3366 = vmatpush3.bf16.msra.mxu0 %v4425_v44 }
0x1642   :  { %3367 = vmatprep.subr.bf16.mxu0 %v4927_v21 }
0x1645   :  { %3368 = vmatpush3.bf16.msra.mxu0 %v4641_v56 }
0x1646   :  { %3393 = vmatprep.subr.bf16.mxu0 %v4927_v21 }
0x1648   :  { %3370 = vmatmul.mubr.bf16.vlgmr.msra.gmra.mxu0 %v1869_v9 }
0x1649   :  { %3394 = vmatpush3.bf16.msra.mxu0 %v4648_v53  ;;  %3409 = vmatprep.mubr.msk.bf16.mxu0 %vm3541_vm0, %v4927_v21 }
0x164a   :  { %3395 = vmatprep.subr.bf16.mxu0 %v4927_v21 }
0x164d   :  { %3396 = vmatpush3.bf16.msra.mxu0 %v4657_v36 }
0x164e   :  { %3397 = vmatprep.subr.bf16.mxu0 %v4927_v21 }
0x1651   :  { %3398 = vmatpush3.bf16.msra.mxu0 %v4664_v37 }
0x1652   :  { %3399 = vmatprep.subr.bf16.mxu0 %v4927_v21 }
0x1655   :  { %3400 = vmatpush3.bf16.msra.mxu0 %v4671_v38 }
0x1656   :  { %3401 = vmatprep.subr.bf16.mxu0 %v4927_v21 }
0x1659   :  { %3402 = vmatpush3.bf16.msra.mxu0 %v4678_v60 }
0x165a   :  { %3403 = vmatprep.subr.bf16.mxu0 %v4927_v21 }
0x165d   :  { %3404 = vmatpush3.bf16.msra.mxu0 %v4685_v47 }
0x165e   :  { %3405 = vmatprep.subr.bf16.mxu0 %v4927_v21 }
0x1661   :  { %3406 = vmatpush3.bf16.msra.mxu0 %v4692_v48 }
0x1662   :  { %3407 = vmatprep.subr.bf16.mxu0 %v4927_v21 }
0x1665   :  { %3408 = vmatpush3.bf16.msra.mxu0 %v4699_v54 }
0x16c8   :  { %v1904_v49 = vpop.f32.mrf.mxu0 }
0x16c9   :  { %v1905_v42 = vadd.f32 %v4706_v4, %v1904_v49 }
0x16ca   :  { %v3291_v50 = vpop.f32.mrf.mxu0 }
0x16cb   :  { %2289 = vst [vmem:[%s4911_s10 + $0x20] sm:$0xff] %v1905_v42  ;;  %v1912_v51 = vadd.f32 %v1905_v42, %v4926_v30 }
0x16cc   :  { %v1907_v52 = vpop.f32.mrf.mxu0 }
0x16cd   :  { %1913 = vmax.xlane.f32.xlu0 %v1912_v51 }
0x16ce   :  { %v3292_v46 = vpop.f32.mrf.mxu0 }
0x16e8   :  { %v4852_v57 = vpop.f32.mrf.mxu0 }
0x16ea   :  { %v3331_v59 = vpop.f32.mrf.mxu0 }
0x16ec   :  { %v2013_v19 = vpop.f32.mrf.mxu0 }
0x16ee   :  { %v3332_v41 = vpop.f32.mrf.mxu0 }
0x1708   :  { %v4854_v16 = vpop.f32.mrf.mxu0 }
0x170a   :  { %v3371_v7 = vpop.f32.mrf.mxu0 }
0x170c   :  { %v2096_v10 = vpop.f32.mrf.mxu0 }
0x170e   :  { %v3372_v8 = vpop.f32.mrf.mxu0 }
0x1756   :  { %v1914_v44 = vpop.xlane.xlu0 %1913 }
0x1757   :  { %vm1915_vm3 = vcmp.eq.f32.partialorder %v1912_v51, %v1914_v44 }
0x1758   :  { %v1916_v56 = vsel %vm1915_vm3, %v4055_v6, 128 }
0x1759   :  { %v1918_v53 = vshra.s32 %v1916_v56, 16  ;;  %v1917_v30 = vand.u32 65535, %v1916_v56 }
0x175b   :  { %v1920_v36 = vcvt.s32.f32 %v1918_v53  ;;  %v1919_v38 = vcvt.s32.f32 %v1917_v30 }
0x175d   :  { %1921 = vmin.xlane.f32.xlu1 %v1920_v36 }
0x17e6   :  { %v1922_v37 = vpop.xlane.xlu1 %1921 }
0x17e7   :  { %vm1923_vm4 = vcmp.eq.f32.partialorder %v1920_v36, %v1922_v37  ;;  %v1928_v47 = vcvt.f32.s32 %v1922_v37 }
0x17e8   :  { %v1924_v60 = vsel %vm1923_vm4, %v1919_v38, inf }
0x17e9   :  { %1925 = vmin.xlane.f32.xlu0 %v1924_v60  ;;  %v1929_v54 = vshll.u32 %v1928_v47, 16 }
0x1872   :  { %v1926_v48 = vpop.xlane.xlu0 %1925 }
0x1873   :  { %v1927_v11 = vcvt.f32.s32 %v1926_v48 }
0x1875   :  { %v1930_v31 = vadd.s32 %v1929_v54, %v1927_v11 }
0x1877   :  { %vm1931_vm5 = vcmp.eq.s32.totalorder %v4055_v6, %v1930_v31 }
0x1878   :  { %vm2291_vm6 = vmpackc.low %vm1931_vm5, %vm1931_vm5 }
0x1879   :  { %3310 = vmatmul.mubr.msk.bf16.vlgmr.msra.gmra.mxu1 %vm2291_vm6, %v3543_v58 }
0x187a   :  { %3334 = vmatpush3.bf16.msra.mxu1 %v4260_v28  ;;  %3349 = vmatprep.mubr.msk.bf16.mxu1 %vm3541_vm0, %v4927_v21 }
0x187b   :  { %3335 = vmatprep.subr.bf16.mxu1 %v4927_v21 }
0x187e   :  { %3336 = vmatpush3.bf16.msra.mxu1 %v4468_v61 }
0x187f   :  { %3337 = vmatprep.subr.bf16.mxu1 %v4927_v21 }
0x1882   :  { %3338 = vmatpush3.bf16.msra.mxu1 %v4475_v62 }
0x1883   :  { %3339 = vmatprep.subr.bf16.mxu1 %v4927_v21 }
0x1886   :  { %3340 = vmatpush3.bf16.msra.mxu1 %v4482_v63 }
0x1887   :  { %3341 = vmatprep.subr.bf16.mxu1 %v4927_v21 }
0x188a   :  { %3342 = vmatpush3.bf16.msra.mxu1 %v4489_v1 }
0x188b   :  { %3343 = vmatprep.subr.bf16.mxu1 %v4927_v21 }
0x188e   :  { %3344 = vmatpush3.bf16.msra.mxu1 %v4496_v5 }
0x188f   :  { %3345 = vmatprep.subr.bf16.mxu1 %v4927_v21 }
0x1892   :  { %3346 = vmatpush3.bf16.msra.mxu1 %v4503_v35 }
0x1893   :  { %3347 = vmatprep.subr.bf16.mxu1 %v4927_v21 }
0x1896   :  { %3348 = vmatpush3.bf16.msra.mxu1 %v4510_v43 }
0x1897   :  { %3373 = vmatprep.subr.bf16.mxu1 %v4927_v21 }
0x1939   :  { %v1969_v6 = vpop.f32.mrf.mxu1 }
0x193a   :  { %v1975_v58 = vpack.c.bf16 %v1969_v6, %v1969_v6 }
0x193b   :  { %v3311_v28 = vpop.f32.mrf.mxu1 }
0x193c   :  { %3350 = vmatmul.mubr.bf16.vlgmr.msra.gmra.mxu1 %v1975_v58 }
0x193d   :  { %v1972_v61 = vpop.f32.mrf.mxu1  ;;  %3374 = vmatpush3.bf16.msra.mxu1 %v4517_v3  ;;  %3389 = vmatprep.mubr.msk.bf16.mxu1 %vm3541_vm0, %v4927_v21 }
0x193e   :  { %3375 = vmatprep.subr.bf16.mxu1 %v4927_v21 }
0x193f   :  { %v3312_v62 = vpop.f32.mrf.mxu1 }
0x1941   :  { %3376 = vmatpush3.bf16.msra.mxu1 %v4526_v18 }
0x1942   :  { %3377 = vmatprep.subr.bf16.mxu1 %v4927_v21 }
0x1945   :  { %3378 = vmatpush3.bf16.msra.mxu1 %v4533_v34 }
0x1946   :  { %3379 = vmatprep.subr.bf16.mxu1 %v4927_v21 }
0x1949   :  { %3380 = vmatpush3.bf16.msra.mxu1 %v4540_v40 }
0x194a   :  { %3381 = vmatprep.subr.bf16.mxu1 %v4927_v21 }
0x194d   :  { %3382 = vmatpush3.bf16.msra.mxu1 %v4547_v45 }
0x194e   :  { %3383 = vmatprep.subr.bf16.mxu1 %v4927_v21 }
0x1951   :  { %3384 = vmatpush3.bf16.msra.mxu1 %v4554_v20 }
0x1952   :  { %3385 = vmatprep.subr.bf16.mxu1 %v4927_v21 }
0x1955   :  { %3386 = vmatpush3.bf16.msra.mxu1 %v4561_v55 }
0x1956   :  { %3387 = vmatprep.subr.bf16.mxu1 %v4927_v21 }
0x1959   :  { %3388 = vmatpush3.bf16.msra.mxu1 %v4568_v22 }
0x19fc   :  { %v2050_v63 = vpop.f32.mrf.mxu1 }
0x19fd   :  { %v2051_v1 = vadd.f32 %v2050_v63, %v4852_v57 }
0x19fe   :  { %v3351_v5 = vpop.f32.mrf.mxu1 }
0x19ff   :  { %v2056_v35 = vadd.f32 %v4576_v23, %v2051_v1 }
0x1a00   :  { %v2053_v43 = vpop.f32.mrf.mxu1 }
0x1a01   :  { %3485 = vtanh.f32 %v2056_v35 }
0x1a02   :  { %v3352_v3 = vpop.f32.mrf.mxu1 }
0x1a0e   :  { %v3486_v18 = vpop.eup %3485 }
0x1a0f   :  { %v2058_v34 = vpack.c.bf16 %v3486_v18, %v3486_v18 }
0x1a11   :  { %3390 = vmatmul.mubr.bf16.vlgmr.msra.gmra.mxu1 %v2058_v34 }
0x1ad1   :  { %v2133_v40 = vpop.f32.mrf.mxu1 }
0x1ad2   :  { %v2134_v45 = vadd.f32 %v2133_v40, %v4854_v16 }
0x1ad3   :  { %v3391_v20 = vpop.f32.mrf.mxu1 }
0x1ad4   :  { %v2139_v55 = vadd.f32 %v4601_v13, %v2134_v45 }
0x1ad5   :  { %v2136_v21 = vpop.f32.mrf.mxu1 }
0x1ad6   :  { %3487 = vtanh.f32 %v2139_v55 }
0x1ad7   :  { %v3392_v22 = vpop.f32.mrf.mxu1 }
0x1ae3   :  { %v3488_v27 = vpop.eup %3487 }
0x1ae4   :  { %v2141_v12 = vpack.c.bf16 %v3488_v27, %v3488_v27 }
0x1ae6   :  { %3410 = vmatmul.mubr.bf16.vlgmr.msra.gmra.mxu0 %v2141_v12 }
0x1ba6   :  { %v2176_v0 = vpop.f32.mrf.mxu0 }
0x1ba7   :  { %v2177_v23 = vadd.f32 %v4706_v4, %v2176_v0 }
0x1ba8   :  { %v3411_v14 = vpop.f32.mrf.mxu0 }
0x1ba9   :  { %2293 = vst [vmem:[%s4911_s10 + $0x28] sm:$0xff] %v2177_v23 }
0x1baa   :  { %v2179_v15 = vpop.f32.mrf.mxu0 }
0x1bac   :  { %v3412_v17 = vpop.f32.mrf.mxu0 }

</bundles_post_ra>
